<compile_context>
chip_gen: v5e
topology: v5e:2x2
jax: 0.10.0
libtpu: 0.0.40
codegen_flags: <defaults>
</compile_context>

<pallas_src>
import functools
import math

import jax
import jax.numpy as jnp
import numpy as np
from jax.experimental import pallas as pl
from jax.experimental.pallas import tpu as pltpu


# ----------------------------------------------------------------------------
# Small synthetic "whisper-base"-like configuration (tiny shapes)
# ----------------------------------------------------------------------------
CFG = dict(
    sr=16000,            # input sample rate
    sampling_rate=16000, # feature-extractor sample rate -> Resample is identity
    n_fft=32,
    hop=8,
    n_samples=256,       # max chunk length in samples
    n_mels=16,
    d_model=32,
    n_heads=4,
    n_layers=2,
    ffn=64,
    max_positions=16,    # encoder positions after stride-2 conv: 256/8/2 = 16
)

_LOG10_INV = 1.0 / math.log(10.0)
_INV_SQRT2 = 1.0 / math.sqrt(2.0)


# ----------------------------------------------------------------------------
# In-kernel helpers (all f32, VMEM-resident)
# ----------------------------------------------------------------------------
def _gelu(x):
    # exact (erf-based) GELU, matching torch.nn.GELU() / HF "gelu"
    return 0.5 * x * (1.0 + jax.lax.erf(x * _INV_SQRT2))


def _layernorm(x, g, b):
    # x: [M, D] f32, g/b: [1, D] f32 ; eps = 1e-5 like nn.LayerNorm
    mu = jnp.mean(x, axis=-1, keepdims=True)
    var = jnp.mean(jnp.square(x - mu), axis=-1, keepdims=True)
    return (x - mu) * jax.lax.rsqrt(var + 1e-5) * g + b


def _conv1d(x, sel_ref, w_ref, b_ref):
    """1-D conv, kernel=3 (padding handled by the precomputed selection matrices).

    x: [t_in, c_in] f32, sel_ref: [3, t_out, t_in] f32 constants,
    w_ref: [3, c_in, c_out] f32, b_ref: [1, c_out] f32.
    """
    t_out = sel_ref.shape[1]
    c_out = w_ref.shape[-1]
    acc = jnp.zeros((t_out, c_out), jnp.float32)
    for kk in range(3):
        g = jnp.dot(sel_ref[kk], x, preferred_element_type=jnp.float32)
        acc = acc + jnp.dot(g, w_ref[kk], preferred_element_type=jnp.float32)
    return acc + b_ref[...]


# ----------------------------------------------------------------------------
# Single fused kernel: STFT power -> mel -> log-mel -> conv stem -> transformer
# encoder (all layers + final LayerNorm) -> transposed [d, T] output.
# ----------------------------------------------------------------------------
def _whisper_kernel(fr_ref, dft_ref, fbank2_ref,
                    sel1_ref, w1_ref, b1_ref, sel2_ref, w2_ref, b2_ref, pos_ref,
                    hmask_ref, eye_ref,
                    ln1g_ref, ln1b_ref, qw_ref, qb_ref, kw_ref, vw_ref, vb_ref,
                    ow_ref, ob_ref, ln2g_ref, ln2b_ref,
                    f1w_ref, f1b_ref, f2w_ref, f2b_ref, lnfg_ref, lnfb_ref,
                    o_ref, *, n_layers, n_heads):
    # ---- STFT power spectrum (hann window folded into dft at pack time) ----
    frames = fr_ref[0]                                       # [F, n_fft] f32
    spec = jnp.dot(frames, dft_ref[...],
                   preferred_element_type=jnp.float32)       # [F, 2*n_freq]
    power = spec * spec                                      # re^2 and im^2 interleaved

    # ---- mel projection (doubled fbank sums re^2 + im^2 in one matmul) ----
    mel = jnp.dot(power, fbank2_ref[...],
                  preferred_element_type=jnp.float32)        # [F, n_mels]
    logmel = jnp.log(jnp.maximum(mel, 1e-10)) * _LOG10_INV
    gmax = jnp.max(jnp.max(logmel, axis=-1, keepdims=True), axis=-2, keepdims=True)
    logmel = (jnp.maximum(logmel, gmax - 8.0) + 4.0) / 4.0   # [F, n_mels] (per-sample max)

    # ---- conv stem: conv1 (s=1) + GELU, conv2 (s=2) + GELU, + pos embed ----
    h = _gelu(_conv1d(logmel, sel1_ref, w1_ref, b1_ref))     # [F, d]
    h = _gelu(_conv1d(h, sel2_ref, w2_ref, b2_ref))          # [T_enc, d]
    x = h + pos_ref[...]                                     # [T_enc, d]

    # per-head column masks, loaded once (shared by all layers)
    hmasks = [hmask_ref[hh] for hh in range(n_heads)]        # each [1, d]

    # NOTE: unrolled layer loop is fine at toy size; switch to a streamed layer grid
    # axis for real whisper-base dimensions (v7x 64 MiB VMEM).
    for l in range(n_layers):
        # ---- self-attention block (pre-LN) --------------------------------
        resid = x
        y = _layernorm(x, ln1g_ref[l], ln1b_ref[l])
        # 1/sqrt(dh) already folded into qw/qb at pack time; k_proj has no bias.
        q = jnp.dot(y, qw_ref[l], preferred_element_type=jnp.float32) + qb_ref[l]
        k = jnp.dot(y, kw_ref[l], preferred_element_type=jnp.float32)
        v = jnp.dot(y, vw_ref[l], preferred_element_type=jnp.float32) + vb_ref[l]

        attn = jnp.zeros_like(x)                             # [T, d]
        for hh in range(n_heads):
            # mask Q's non-head columns -> scores only see head hh's channels
            s = jax.lax.dot_general(q * hmasks[hh], k, (((1,), (1,)), ((), ())),
                                    preferred_element_type=jnp.float32)   # [T, T]
            m = jnp.max(s, axis=-1, keepdims=True)
            p = jnp.exp(s - m)
            p = p * pl.reciprocal(jnp.sum(p, axis=-1, keepdims=True), approx=True)
            # head output lands directly in its own column block (no concat/slices)
            attn = attn + jnp.dot(p, v * hmasks[hh],
                                  preferred_element_type=jnp.float32)
        x = resid + jnp.dot(attn, ow_ref[l],
                            preferred_element_type=jnp.float32) + ob_ref[l]

        # ---- MLP block (pre-LN) -------------------------------------------
        resid = x
        y = _layernorm(x, ln2g_ref[l], ln2b_ref[l])
        y = _gelu(jnp.dot(y, f1w_ref[l], preferred_element_type=jnp.float32)
                  + f1b_ref[l])
        x = resid + jnp.dot(y, f2w_ref[l],
                            preferred_element_type=jnp.float32) + f2b_ref[l]

    # ---- final LayerNorm, then emit transposed [d, T] (MXU identity-contraction
    # transpose, so the wrapper needs no XLA transpose op) ----------------------
    xf = _layernorm(x, lnfg_ref[...], lnfb_ref[...])          # [T, d]
    o_ref[0] = jax.lax.dot_general(xf, eye_ref[...], (((0,), (0,)), ((), ())),
                                   preferred_element_type=jnp.float32)   # [d, T]


def pallas_whisper(frames, pk, cfg):
    B, F, n_fft = frames.shape
    n_freq = n_fft // 2 + 1
    n_mels, d, ffn = cfg["n_mels"], cfg["d_model"], cfg["ffn"]
    L, H = cfg["n_layers"], cfg["n_heads"]
    T_enc = pk["pos"].shape[0]
    kernel = functools.partial(_whisper_kernel, n_layers=L, n_heads=H)

    def full(*shape):
        rank = len(shape)
        return pl.BlockSpec(shape, lambda b, _r=rank: (0,) * _r)

    return pl.pallas_call(
        kernel,
        out_shape=jax.ShapeDtypeStruct((B, d, T_enc), jnp.float32),
        grid=(B,),
        in_specs=[
            pl.BlockSpec((1, F, n_fft), lambda b: (b, 0, 0)),  # frames
            full(n_fft, 2 * n_freq),                           # windowed DFT matrix
            full(2 * n_freq, n_mels),                          # doubled filterbank
            full(3, F, F),                                     # conv1 selection
            full(3, n_mels, d), full(1, d),                    # conv1 w/b
            full(3, T_enc, F),                                 # conv2 selection
            full(3, d, d), full(1, d),                         # conv2 w/b
            full(T_enc, d),                                    # pos embed
            full(H, 1, d),                                     # per-head column masks
            full(T_enc, T_enc),                                # identity (transpose)
            full(L, 1, d), full(L, 1, d),                      # ln1 gamma/beta
            full(L, d, d), full(L, 1, d),                      # q (scaled) w/b
            full(L, d, d),                                     # k w (no bias)
            full(L, d, d), full(L, 1, d),                      # v w/b
            full(L, d, d), full(L, 1, d),                      # out-proj w/b
            full(L, 1, d), full(L, 1, d),                      # ln2 gamma/beta
            full(L, d, ffn), full(L, 1, ffn),                  # fc1 w/b
            full(L, ffn, d), full(L, 1, d),                    # fc2 w/b
            full(1, d), full(1, d),                            # final layer norm
        ],
        out_specs=pl.BlockSpec((1, d, T_enc), lambda b: (b, 0, 0)),
        compiler_params=pltpu.CompilerParams(
            dimension_semantics=("parallel",)),
    )(frames, pk["dft"], pk["fbank2"],
      pk["sel1"], pk["w1"], pk["b1"], pk["sel2"], pk["w2"], pk["b2"], pk["pos"],
      pk["hmask"], pk["eye_t"],
      pk["ln1_g"], pk["ln1_b"], pk["q_w"], pk["q_b"], pk["k_w"],
      pk["v_w"], pk["v_b"], pk["o_w"], pk["o_b"], pk["ln2_g"], pk["ln2_b"],
      pk["fc1_w"], pk["fc1_b"], pk["fc2_w"], pk["fc2_b"],
      pk["lnf_g"], pk["lnf_b"])


# ----------------------------------------------------------------------------
# Parameter init (torch-like layout) and one-time packing for the fused kernel
# ----------------------------------------------------------------------------
def init_params(key, cfg):
    n_fft, n_mels, d, ffn = cfg["n_fft"], cfg["n_mels"], cfg["d_model"], cfg["ffn"]
    n_freq = n_fft // 2 + 1

    def nrm(k, shape, scale=0.02):
        return scale * jax.random.normal(k, shape, dtype=jnp.float32)

    keys = iter(jax.random.split(key, 64))
    p = {}
    # buffers (fbank, hann window) and DFT matrices
    p["fbank"] = jax.random.uniform(next(keys), (n_mels, n_freq),
                                    dtype=jnp.float32) * 0.1          # [n_mels, n_freq]
    n = np.arange(n_fft, dtype=np.float64)
    p["window"] = np.asarray(0.5 - 0.5 * np.cos(2.0 * np.pi * n / n_fft),
                             dtype=np.float64)                        # periodic hann
    k_idx = np.arange(n_freq, dtype=np.float64)
    ang = 2.0 * np.pi * np.outer(n, k_idx) / n_fft
    p["cos"] = np.cos(ang)
    p["sin"] = np.sin(ang)
    # encoder convs (PyTorch Conv1d layout [C_out, C_in, K])
    p["conv1_w"] = nrm(next(keys), (d, n_mels, 3))
    p["conv1_b"] = nrm(next(keys), (d,))
    p["conv2_w"] = nrm(next(keys), (d, d, 3))
    p["conv2_b"] = nrm(next(keys), (d,))
    p["pos_embed"] = nrm(next(keys), (cfg["max_positions"], d))
    # transformer layers
    layers = []
    for _ in range(cfg["n_layers"]):
        lp = {
            "ln1_g": jnp.ones((d,), jnp.float32), "ln1_b": jnp.zeros((d,), jnp.float32),
            "q_w": nrm(next(keys), (d, d)), "q_b": nrm(next(keys), (d,)),
            "k_w": nrm(next(keys), (d, d)),                      # k_proj has no bias
            "v_w": nrm(next(keys), (d, d)), "v_b": nrm(next(keys), (d,)),
            "o_w": nrm(next(keys), (d, d)), "o_b": nrm(next(keys), (d,)),
            "ln2_g": jnp.ones((d,), jnp.float32), "ln2_b": jnp.zeros((d,), jnp.float32),
            "fc1_w": nrm(next(keys), (d, ffn)), "fc1_b": nrm(next(keys), (ffn,)),
            "fc2_w": nrm(next(keys), (ffn, d)), "fc2_b": nrm(next(keys), (d,)),
        }
        layers.append(lp)
    p["layers"] = layers
    p["ln_f_g"] = jnp.ones((d,), jnp.float32)
    p["ln_f_b"] = jnp.zeros((d,), jnp.float32)
    return p


def _make_sel(t_out, t_in, stride):
    """Selection matrices for a k=3, pad=1 conv: out[t] uses rows stride*t + k - 1."""
    sel = np.zeros((3, t_out, t_in), np.float32)
    for k in range(3):
        for t in range(t_out):
            src = stride * t + k - 1
            if 0 <= src < t_in:
                sel[k, t, src] = 1.0
    return jnp.asarray(sel)


def pack_params(params, cfg):
    """One-time conversion: fold window into DFT, double the fbank, precompute the conv
    selection matrices, fold the attention scale into q, stack per-layer weights."""
    d, ffn, n_fft = cfg["d_model"], cfg["ffn"], cfg["n_fft"]
    n_mels, hop = cfg["n_mels"], cfg["hop"]
    L, H = cfg["n_layers"], cfg["n_heads"]
    F = cfg["n_samples"] // hop
    T_enc = cfg["max_positions"]
    dh = d // H
    scale = dh ** -0.5
    f32 = jnp.float32
    pk = {}

    # window folded into the [cos | -sin] DFT matrix (all f32 for parity with torch)
    dft_np = np.concatenate([params["cos"], -params["sin"]], axis=1)   # [n_fft, 2*n_freq]
    dft_np = params["window"][:, None] * dft_np
    pk["dft"] = jnp.asarray(dft_np, dtype=f32)
    fbank_t = params["fbank"].T.astype(f32)                            # [n_freq, n_mels]
    pk["fbank2"] = jnp.concatenate([fbank_t, fbank_t], axis=0)         # [2*n_freq, n_mels]

    pk["sel1"] = _make_sel(F, F, stride=1)                             # [3, F, F]
    pk["sel2"] = _make_sel(T_enc, F, stride=2)                         # [3, T_enc, F]
    pk["w1"] = jnp.transpose(params["conv1_w"], (2, 1, 0)).astype(f32) # [3, n_mels, d]
    pk["b1"] = params["conv1_b"].reshape(1, d).astype(f32)
    pk["w2"] = jnp.transpose(params["conv2_w"], (2, 1, 0)).astype(f32) # [3, d, d]
    pk["b2"] = params["conv2_b"].reshape(1, d).astype(f32)
    pk["pos"] = params["pos_embed"].astype(f32)

    # per-head column masks + identity for the output transpose
    hm = np.zeros((H, 1, d), np.float32)
    for h in range(H):
        hm[h, 0, h * dh:(h + 1) * dh] = 1.0
    pk["hmask"] = jnp.asarray(hm)
    pk["eye_t"] = jnp.eye(T_enc, dtype=f32)

    def stack(name):
        return jnp.stack([lp[name] for lp in params["layers"]])

    pk["ln1_g"] = stack("ln1_g").reshape(L, 1, d).astype(f32)
    pk["ln1_b"] = stack("ln1_b").reshape(L, 1, d).astype(f32)
    pk["ln2_g"] = stack("ln2_g").reshape(L, 1, d).astype(f32)
    pk["ln2_b"] = stack("ln2_b").reshape(L, 1, d).astype(f32)
    pk["q_w"] = (stack("q_w") * scale).astype(f32)                     # scale folded in
    pk["q_b"] = (stack("q_b") * scale).reshape(L, 1, d).astype(f32)
    pk["k_w"] = stack("k_w").astype(f32)
    pk["v_w"] = stack("v_w").astype(f32)
    pk["v_b"] = stack("v_b").reshape(L, 1, d).astype(f32)
    pk["o_w"] = stack("o_w").astype(f32)
    pk["o_b"] = stack("o_b").reshape(L, 1, d).astype(f32)
    pk["fc1_w"] = stack("fc1_w").astype(f32)
    pk["fc1_b"] = stack("fc1_b").reshape(L, 1, ffn).astype(f32)
    pk["fc2_w"] = stack("fc2_w").astype(f32)
    pk["fc2_b"] = stack("fc2_b").reshape(L, 1, d).astype(f32)
    pk["lnf_g"] = params["ln_f_g"].reshape(1, d).astype(f32)
    pk["lnf_b"] = params["ln_f_b"].reshape(1, d).astype(f32)
    return pk


# ----------------------------------------------------------------------------
# Full forward pass (mirrors WhisperWrapper.forward)
# ----------------------------------------------------------------------------
def whisper_wrapper_forward(audio, packed, cfg):
    """audio: [B, T] float32 in [-1, 1] -> [B, d_model, T // hop_length]."""
    B, T = audio.shape
    n_samples, hop, n_fft = cfg["n_samples"], cfg["hop"], cfg["n_fft"]

    # torchaudio Resample(sr, sr) is the identity here (sr == sampling_rate).
    assert T <= n_samples, f"audio length should be shorter than {n_samples}"
    audio = jnp.pad(audio, ((0, 0), (0, n_samples - T)))

    # STFT framing (center=True, reflect pad); the windowed DFT runs in the kernel.
    pad = n_fft // 2
    ap = jnp.pad(audio, ((0, 0), (pad, pad)), mode="reflect")
    f_keep = n_samples // hop                          # == (1 + n_samples//hop) - 1
    idx = jnp.arange(f_keep)[:, None] * hop + jnp.arange(n_fft)[None, :]
    frames = ap[:, idx]                                # [B, F, n_fft]

    h = pallas_whisper(frames, packed, cfg)            # [B, d_model, T_enc] (pre-transposed)

    # outputs[:, :timesteps // hop_length].transpose(1, 2)  -> just a slice now
    n_keep = min(T // hop, h.shape[2])
    return h[:, :, :n_keep]                            # [B, d_model, T // hop]


# ----------------------------------------------------------------------------
if __name__ == "__main__":
    key = jax.random.PRNGKey(0)
    k_audio, k_params = jax.random.split(key)

    B, T = 2, 100  # T <= n_samples (256); T // hop = 12 output frames
    audio = jax.random.uniform(k_audio, (B, T), dtype=jnp.float32,
                               minval=-1.0, maxval=1.0)
    params = init_params(k_params, CFG)
    packed = pack_params(params, CFG)   # one-time fold/stack (hoisted out of forward)

    fwd = jax.jit(functools.partial(whisper_wrapper_forward, cfg=CFG))
    out = fwd(audio, packed)
    out = jax.block_until_ready(out)

    expected = (B, CFG["d_model"], T // CFG["hop"])
    assert out.shape == expected, (out.shape, expected)
    assert out.dtype == jnp.float32
    assert bool(jnp.all(jnp.isfinite(out)))
    print("KERNEL_OK")
</pallas_src>

<mosaic_0001>
module attributes {stable_mosaic.version = 11 : i64} {
  func.func @_whisper_kernel(%arg0: i32, %arg1: memref<1x32x32xf32, #tpu.memory_space<vmem>>, %arg2: memref<32x34xf32, #tpu.memory_space<vmem>>, %arg3: memref<34x16xf32, #tpu.memory_space<vmem>>, %arg4: memref<3x32x32xf32, #tpu.memory_space<vmem>>, %arg5: memref<3x16x32xf32, #tpu.memory_space<vmem>>, %arg6: memref<1x32xf32, #tpu.memory_space<vmem>>, %arg7: memref<3x16x32xf32, #tpu.memory_space<vmem>>, %arg8: memref<3x32x32xf32, #tpu.memory_space<vmem>>, %arg9: memref<1x32xf32, #tpu.memory_space<vmem>>, %arg10: memref<16x32xf32, #tpu.memory_space<vmem>>, %arg11: memref<4x1x32xf32, #tpu.memory_space<vmem>>, %arg12: memref<16x16xf32, #tpu.memory_space<vmem>>, %arg13: memref<2x1x32xf32, #tpu.memory_space<vmem>>, %arg14: memref<2x1x32xf32, #tpu.memory_space<vmem>>, %arg15: memref<2x32x32xf32, #tpu.memory_space<vmem>>, %arg16: memref<2x1x32xf32, #tpu.memory_space<vmem>>, %arg17: memref<2x32x32xf32, #tpu.memory_space<vmem>>, %arg18: memref<2x32x32xf32, #tpu.memory_space<vmem>>, %arg19: memref<2x1x32xf32, #tpu.memory_space<vmem>>, %arg20: memref<2x32x32xf32, #tpu.memory_space<vmem>>, %arg21: memref<2x1x32xf32, #tpu.memory_space<vmem>>, %arg22: memref<2x1x32xf32, #tpu.memory_space<vmem>>, %arg23: memref<2x1x32xf32, #tpu.memory_space<vmem>>, %arg24: memref<2x32x64xf32, #tpu.memory_space<vmem>>, %arg25: memref<2x1x64xf32, #tpu.memory_space<vmem>>, %arg26: memref<2x64x32xf32, #tpu.memory_space<vmem>>, %arg27: memref<2x1x32xf32, #tpu.memory_space<vmem>>, %arg28: memref<1x32xf32, #tpu.memory_space<vmem>>, %arg29: memref<1x32xf32, #tpu.memory_space<vmem>>, %arg30: memref<1x32x16xf32, #tpu.memory_space<vmem>>) attributes {dimension_semantics = [#tpu.dimension_semantics<parallel>], iteration_bounds = array<i64: 2>, scalar_prefetch = 0 : i64, scratch_operands = 0 : i64, tpu.core_type = #tpu.core_type<tc>, window_params = [{transform_indices = @transform_0, window_bounds = array<i64: 1, 32, 32>}, {pipeline_mode = #tpu.pipeline_mode<synchronous>, transform_indices = @transform_1, window_bounds = array<i64: 32, 34>}, {pipeline_mode = #tpu.pipeline_mode<synchronous>, transform_indices = @transform_2, window_bounds = array<i64: 34, 16>}, {pipeline_mode = #tpu.pipeline_mode<synchronous>, transform_indices = @transform_3, window_bounds = array<i64: 3, 32, 32>}, {pipeline_mode = #tpu.pipeline_mode<synchronous>, transform_indices = @transform_4, window_bounds = array<i64: 3, 16, 32>}, {pipeline_mode = #tpu.pipeline_mode<synchronous>, transform_indices = @transform_5, window_bounds = array<i64: 1, 32>}, {pipeline_mode = #tpu.pipeline_mode<synchronous>, transform_indices = @transform_6, window_bounds = array<i64: 3, 16, 32>}, {pipeline_mode = #tpu.pipeline_mode<synchronous>, transform_indices = @transform_7, window_bounds = array<i64: 3, 32, 32>}, {pipeline_mode = #tpu.pipeline_mode<synchronous>, transform_indices = @transform_8, window_bounds = array<i64: 1, 32>}, {pipeline_mode = #tpu.pipeline_mode<synchronous>, transform_indices = @transform_9, window_bounds = array<i64: 16, 32>}, {pipeline_mode = #tpu.pipeline_mode<synchronous>, transform_indices = @transform_10, window_bounds = array<i64: 4, 1, 32>}, {pipeline_mode = #tpu.pipeline_mode<synchronous>, transform_indices = @transform_11, window_bounds = array<i64: 16, 16>}, {pipeline_mode = #tpu.pipeline_mode<synchronous>, transform_indices = @transform_12, window_bounds = array<i64: 2, 1, 32>}, {pipeline_mode = #tpu.pipeline_mode<synchronous>, transform_indices = @transform_13, window_bounds = array<i64: 2, 1, 32>}, {pipeline_mode = #tpu.pipeline_mode<synchronous>, transform_indices = @transform_14, window_bounds = array<i64: 2, 32, 32>}, {pipeline_mode = #tpu.pipeline_mode<synchronous>, transform_indices = @transform_15, window_bounds = array<i64: 2, 1, 32>}, {pipeline_mode = #tpu.pipeline_mode<synchronous>, transform_indices = @transform_16, window_bounds = array<i64: 2, 32, 32>}, {pipeline_mode = #tpu.pipeline_mode<synchronous>, transform_indices = @transform_17, window_bounds = array<i64: 2, 32, 32>}, {pipeline_mode = #tpu.pipeline_mode<synchronous>, transform_indices = @transform_18, window_bounds = array<i64: 2, 1, 32>}, {pipeline_mode = #tpu.pipeline_mode<synchronous>, transform_indices = @transform_19, window_bounds = array<i64: 2, 32, 32>}, {pipeline_mode = #tpu.pipeline_mode<synchronous>, transform_indices = @transform_20, window_bounds = array<i64: 2, 1, 32>}, {pipeline_mode = #tpu.pipeline_mode<synchronous>, transform_indices = @transform_21, window_bounds = array<i64: 2, 1, 32>}, {pipeline_mode = #tpu.pipeline_mode<synchronous>, transform_indices = @transform_22, window_bounds = array<i64: 2, 1, 32>}, {pipeline_mode = #tpu.pipeline_mode<synchronous>, transform_indices = @transform_23, window_bounds = array<i64: 2, 32, 64>}, {pipeline_mode = #tpu.pipeline_mode<synchronous>, transform_indices = @transform_24, window_bounds = array<i64: 2, 1, 64>}, {pipeline_mode = #tpu.pipeline_mode<synchronous>, transform_indices = @transform_25, window_bounds = array<i64: 2, 64, 32>}, {pipeline_mode = #tpu.pipeline_mode<synchronous>, transform_indices = @transform_26, window_bounds = array<i64: 2, 1, 32>}, {pipeline_mode = #tpu.pipeline_mode<synchronous>, transform_indices = @transform_27, window_bounds = array<i64: 1, 32>}, {pipeline_mode = #tpu.pipeline_mode<synchronous>, transform_indices = @transform_28, window_bounds = array<i64: 1, 32>}, {transform_indices = @transform_29, window_bounds = array<i64: 1, 32, 16>}]} {
    %c0 = arith.constant 0 : index
    %c0_0 = arith.constant 0 : index
    %c0_1 = arith.constant 0 : index
    %0 = vector.load %arg1[%c0, %c0_0, %c0_1] : memref<1x32x32xf32, #tpu.memory_space<vmem>>, vector<1x32x32xf32>
    %1 = vector.shape_cast %0 : vector<1x32x32xf32> to vector<32x32xf32>
    %c0_2 = arith.constant 0 : index
    %c0_3 = arith.constant 0 : index
    %2 = vector.load %arg2[%c0_2, %c0_3] : memref<32x34xf32, #tpu.memory_space<vmem>>, vector<32x34xf32>
    %cst = arith.constant dense<0.000000e+00> : vector<32x34xf32>
    %3 = tpu.matmul %1, %2, %cst {dimension_numbers = #tpu.dot_dimension_numbers<[1], [0], [0], [1], [0, 0, 1, 1], [], []>} : vector<32x32xf32>, vector<32x34xf32>, vector<32x34xf32> -> vector<32x34xf32>
    %4 = arith.mulf %3, %3 : vector<32x34xf32>
    %c0_4 = arith.constant 0 : index
    %c0_5 = arith.constant 0 : index
    %5 = vector.load %arg3[%c0_4, %c0_5] : memref<34x16xf32, #tpu.memory_space<vmem>>, vector<34x16xf32>
    %cst_6 = arith.constant dense<0.000000e+00> : vector<32x16xf32>
    %6 = tpu.matmul %4, %5, %cst_6 {dimension_numbers = #tpu.dot_dimension_numbers<[1], [0], [0], [1], [0, 0, 1, 1], [], []>} : vector<32x34xf32>, vector<34x16xf32>, vector<32x16xf32> -> vector<32x16xf32>
    %cst_7 = arith.constant 1.000000e-10 : f32
    %7 = vector.broadcast %cst_7 : f32 to vector<32x16xf32>
    %8 = arith.maximumf %6, %7 : vector<32x16xf32>
    %9 = math.log %8 : vector<32x16xf32>
    %cst_8 = arith.constant 0.434294492 : f32
    %10 = vector.broadcast %cst_8 : f32 to vector<32x16xf32>
    %11 = arith.mulf %9, %10 : vector<32x16xf32>
    %cst_9 = arith.constant dense<0xFF800000> : vector<32xf32>
    %12 = vector.multi_reduction <maximumf>, %11, %cst_9 [1] : vector<32x16xf32> to vector<32xf32>
    %13 = vector.shape_cast %12 : vector<32xf32> to vector<32x1xf32>
    %cst_10 = arith.constant dense<0xFF800000> : vector<1xf32>
    %14 = vector.multi_reduction <maximumf>, %13, %cst_10 [0] : vector<32x1xf32> to vector<1xf32>
    %15 = vector.shape_cast %14 : vector<1xf32> to vector<1x1xf32>
    %cst_11 = arith.constant 8.000000e+00 : f32
    %16 = vector.broadcast %cst_11 : f32 to vector<1x1xf32>
    %17 = arith.subf %15, %16 : vector<1x1xf32>
    %18 = vector.broadcast %17 : vector<1x1xf32> to vector<32x16xf32>
    %19 = arith.maximumf %11, %18 : vector<32x16xf32>
    %cst_12 = arith.constant 4.000000e+00 : f32
    %20 = vector.broadcast %cst_12 : f32 to vector<32x16xf32>
    %21 = arith.addf %19, %20 : vector<32x16xf32>
    %cst_13 = arith.constant 4.000000e+00 : f32
    %22 = vector.broadcast %cst_13 : f32 to vector<32x16xf32>
    %23 = arith.divf %21, %22 : vector<32x16xf32>
    %cst_14 = arith.constant 0.000000e+00 : f32
    %24 = vector.broadcast %cst_14 : f32 to vector<32x32xf32>
    %c0_15 = arith.constant 0 : index
    %c0_16 = arith.constant 0 : index
    %c0_17 = arith.constant 0 : index
    %25 = vector.load %arg4[%c0_15, %c0_16, %c0_17] : memref<3x32x32xf32, #tpu.memory_space<vmem>>, vector<1x32x32xf32>
    %26 = vector.shape_cast %25 : vector<1x32x32xf32> to vector<32x32xf32>
    %cst_18 = arith.constant dense<0.000000e+00> : vector<32x16xf32>
    %27 = tpu.matmul %26, %23, %cst_18 {dimension_numbers = #tpu.dot_dimension_numbers<[1], [0], [0], [1], [0, 0, 1, 1], [], []>} : vector<32x32xf32>, vector<32x16xf32>, vector<32x16xf32> -> vector<32x16xf32>
    %c0_19 = arith.constant 0 : index
    %c0_20 = arith.constant 0 : index
    %c0_21 = arith.constant 0 : index
    %28 = vector.load %arg5[%c0_19, %c0_20, %c0_21] : memref<3x16x32xf32, #tpu.memory_space<vmem>>, vector<1x16x32xf32>
    %29 = vector.shape_cast %28 : vector<1x16x32xf32> to vector<16x32xf32>
    %cst_22 = arith.constant dense<0.000000e+00> : vector<32x32xf32>
    %30 = tpu.matmul %27, %29, %cst_22 {dimension_numbers = #tpu.dot_dimension_numbers<[1], [0], [0], [1], [0, 0, 1, 1], [], []>} : vector<32x16xf32>, vector<16x32xf32>, vector<32x32xf32> -> vector<32x32xf32>
    %31 = arith.addf %24, %30 : vector<32x32xf32>
    %c1 = arith.constant 1 : index
    %c0_23 = arith.constant 0 : index
    %c0_24 = arith.constant 0 : index
    %32 = vector.load %arg4[%c1, %c0_23, %c0_24] : memref<3x32x32xf32, #tpu.memory_space<vmem>>, vector<1x32x32xf32>
    %33 = vector.shape_cast %32 : vector<1x32x32xf32> to vector<32x32xf32>
    %cst_25 = arith.constant dense<0.000000e+00> : vector<32x16xf32>
    %34 = tpu.matmul %33, %23, %cst_25 {dimension_numbers = #tpu.dot_dimension_numbers<[1], [0], [0], [1], [0, 0, 1, 1], [], []>} : vector<32x32xf32>, vector<32x16xf32>, vector<32x16xf32> -> vector<32x16xf32>
    %c1_26 = arith.constant 1 : index
    %c0_27 = arith.constant 0 : index
    %c0_28 = arith.constant 0 : index
    %35 = vector.load %arg5[%c1_26, %c0_27, %c0_28] : memref<3x16x32xf32, #tpu.memory_space<vmem>>, vector<1x16x32xf32>
    %36 = vector.shape_cast %35 : vector<1x16x32xf32> to vector<16x32xf32>
    %cst_29 = arith.constant dense<0.000000e+00> : vector<32x32xf32>
    %37 = tpu.matmul %34, %36, %cst_29 {dimension_numbers = #tpu.dot_dimension_numbers<[1], [0], [0], [1], [0, 0, 1, 1], [], []>} : vector<32x16xf32>, vector<16x32xf32>, vector<32x32xf32> -> vector<32x32xf32>
    %38 = arith.addf %31, %37 : vector<32x32xf32>
    %c2 = arith.constant 2 : index
    %c0_30 = arith.constant 0 : index
    %c0_31 = arith.constant 0 : index
    %39 = vector.load %arg4[%c2, %c0_30, %c0_31] : memref<3x32x32xf32, #tpu.memory_space<vmem>>, vector<1x32x32xf32>
    %40 = vector.shape_cast %39 : vector<1x32x32xf32> to vector<32x32xf32>
    %cst_32 = arith.constant dense<0.000000e+00> : vector<32x16xf32>
    %41 = tpu.matmul %40, %23, %cst_32 {dimension_numbers = #tpu.dot_dimension_numbers<[1], [0], [0], [1], [0, 0, 1, 1], [], []>} : vector<32x32xf32>, vector<32x16xf32>, vector<32x16xf32> -> vector<32x16xf32>
    %c2_33 = arith.constant 2 : index
    %c0_34 = arith.constant 0 : index
    %c0_35 = arith.constant 0 : index
    %42 = vector.load %arg5[%c2_33, %c0_34, %c0_35] : memref<3x16x32xf32, #tpu.memory_space<vmem>>, vector<1x16x32xf32>
    %43 = vector.shape_cast %42 : vector<1x16x32xf32> to vector<16x32xf32>
    %cst_36 = arith.constant dense<0.000000e+00> : vector<32x32xf32>
    %44 = tpu.matmul %41, %43, %cst_36 {dimension_numbers = #tpu.dot_dimension_numbers<[1], [0], [0], [1], [0, 0, 1, 1], [], []>} : vector<32x16xf32>, vector<16x32xf32>, vector<32x32xf32> -> vector<32x32xf32>
    %45 = arith.addf %38, %44 : vector<32x32xf32>
    %c0_37 = arith.constant 0 : index
    %c0_38 = arith.constant 0 : index
    %46 = vector.load %arg6[%c0_37, %c0_38] : memref<1x32xf32, #tpu.memory_space<vmem>>, vector<1x32xf32>
    %47 = vector.broadcast %46 : vector<1x32xf32> to vector<32x32xf32>
    %48 = arith.addf %45, %47 : vector<32x32xf32>
    %cst_39 = arith.constant 5.000000e-01 : f32
    %49 = vector.broadcast %cst_39 : f32 to vector<32x32xf32>
    %50 = arith.mulf %49, %48 : vector<32x32xf32>
    %cst_40 = arith.constant 0.707106769 : f32
    %51 = vector.broadcast %cst_40 : f32 to vector<32x32xf32>
    %52 = arith.mulf %48, %51 : vector<32x32xf32>
    %53 = math.erf %52 : vector<32x32xf32>
    %cst_41 = arith.constant 1.000000e+00 : f32
    %54 = vector.broadcast %cst_41 : f32 to vector<32x32xf32>
    %55 = arith.addf %54, %53 : vector<32x32xf32>
    %56 = arith.mulf %50, %55 : vector<32x32xf32>
    %cst_42 = arith.constant 0.000000e+00 : f32
    %57 = vector.broadcast %cst_42 : f32 to vector<16x32xf32>
    %c0_43 = arith.constant 0 : index
    %c0_44 = arith.constant 0 : index
    %c0_45 = arith.constant 0 : index
    %58 = vector.load %arg7[%c0_43, %c0_44, %c0_45] : memref<3x16x32xf32, #tpu.memory_space<vmem>>, vector<1x16x32xf32>
    %59 = vector.shape_cast %58 : vector<1x16x32xf32> to vector<16x32xf32>
    %cst_46 = arith.constant dense<0.000000e+00> : vector<16x32xf32>
    %60 = tpu.matmul %59, %56, %cst_46 {dimension_numbers = #tpu.dot_dimension_numbers<[1], [0], [0], [1], [0, 0, 1, 1], [], []>} : vector<16x32xf32>, vector<32x32xf32>, vector<16x32xf32> -> vector<16x32xf32>
    %c0_47 = arith.constant 0 : index
    %c0_48 = arith.constant 0 : index
    %c0_49 = arith.constant 0 : index
    %61 = vector.load %arg8[%c0_47, %c0_48, %c0_49] : memref<3x32x32xf32, #tpu.memory_space<vmem>>, vector<1x32x32xf32>
    %62 = vector.shape_cast %61 : vector<1x32x32xf32> to vector<32x32xf32>
    %cst_50 = arith.constant dense<0.000000e+00> : vector<16x32xf32>
    %63 = tpu.matmul %60, %62, %cst_50 {dimension_numbers = #tpu.dot_dimension_numbers<[1], [0], [0], [1], [0, 0, 1, 1], [], []>} : vector<16x32xf32>, vector<32x32xf32>, vector<16x32xf32> -> vector<16x32xf32>
    %64 = arith.addf %57, %63 : vector<16x32xf32>
    %c1_51 = arith.constant 1 : index
    %c0_52 = arith.constant 0 : index
    %c0_53 = arith.constant 0 : index
    %65 = vector.load %arg7[%c1_51, %c0_52, %c0_53] : memref<3x16x32xf32, #tpu.memory_space<vmem>>, vector<1x16x32xf32>
    %66 = vector.shape_cast %65 : vector<1x16x32xf32> to vector<16x32xf32>
    %cst_54 = arith.constant dense<0.000000e+00> : vector<16x32xf32>
    %67 = tpu.matmul %66, %56, %cst_54 {dimension_numbers = #tpu.dot_dimension_numbers<[1], [0], [0], [1], [0, 0, 1, 1], [], []>} : vector<16x32xf32>, vector<32x32xf32>, vector<16x32xf32> -> vector<16x32xf32>
    %c1_55 = arith.constant 1 : index
    %c0_56 = arith.constant 0 : index
    %c0_57 = arith.constant 0 : index
    %68 = vector.load %arg8[%c1_55, %c0_56, %c0_57] : memref<3x32x32xf32, #tpu.memory_space<vmem>>, vector<1x32x32xf32>
    %69 = vector.shape_cast %68 : vector<1x32x32xf32> to vector<32x32xf32>
    %cst_58 = arith.constant dense<0.000000e+00> : vector<16x32xf32>
    %70 = tpu.matmul %67, %69, %cst_58 {dimension_numbers = #tpu.dot_dimension_numbers<[1], [0], [0], [1], [0, 0, 1, 1], [], []>} : vector<16x32xf32>, vector<32x32xf32>, vector<16x32xf32> -> vector<16x32xf32>
    %71 = arith.addf %64, %70 : vector<16x32xf32>
    %c2_59 = arith.constant 2 : index
    %c0_60 = arith.constant 0 : index
    %c0_61 = arith.constant 0 : index
    %72 = vector.load %arg7[%c2_59, %c0_60, %c0_61] : memref<3x16x32xf32, #tpu.memory_space<vmem>>, vector<1x16x32xf32>
    %73 = vector.shape_cast %72 : vector<1x16x32xf32> to vector<16x32xf32>
    %cst_62 = arith.constant dense<0.000000e+00> : vector<16x32xf32>
    %74 = tpu.matmul %73, %56, %cst_62 {dimension_numbers = #tpu.dot_dimension_numbers<[1], [0], [0], [1], [0, 0, 1, 1], [], []>} : vector<16x32xf32>, vector<32x32xf32>, vector<16x32xf32> -> vector<16x32xf32>
    %c2_63 = arith.constant 2 : index
    %c0_64 = arith.constant 0 : index
    %c0_65 = arith.constant 0 : index
    %75 = vector.load %arg8[%c2_63, %c0_64, %c0_65] : memref<3x32x32xf32, #tpu.memory_space<vmem>>, vector<1x32x32xf32>
    %76 = vector.shape_cast %75 : vector<1x32x32xf32> to vector<32x32xf32>
    %cst_66 = arith.constant dense<0.000000e+00> : vector<16x32xf32>
    %77 = tpu.matmul %74, %76, %cst_66 {dimension_numbers = #tpu.dot_dimension_numbers<[1], [0], [0], [1], [0, 0, 1, 1], [], []>} : vector<16x32xf32>, vector<32x32xf32>, vector<16x32xf32> -> vector<16x32xf32>
    %78 = arith.addf %71, %77 : vector<16x32xf32>
    %c0_67 = arith.constant 0 : index
    %c0_68 = arith.constant 0 : index
    %79 = vector.load %arg9[%c0_67, %c0_68] : memref<1x32xf32, #tpu.memory_space<vmem>>, vector<1x32xf32>
    %80 = vector.broadcast %79 : vector<1x32xf32> to vector<16x32xf32>
    %81 = arith.addf %78, %80 : vector<16x32xf32>
    %cst_69 = arith.constant 5.000000e-01 : f32
    %82 = vector.broadcast %cst_69 : f32 to vector<16x32xf32>
    %83 = arith.mulf %82, %81 : vector<16x32xf32>
    %cst_70 = arith.constant 0.707106769 : f32
    %84 = vector.broadcast %cst_70 : f32 to vector<16x32xf32>
    %85 = arith.mulf %81, %84 : vector<16x32xf32>
    %86 = math.erf %85 : vector<16x32xf32>
    %cst_71 = arith.constant 1.000000e+00 : f32
    %87 = vector.broadcast %cst_71 : f32 to vector<16x32xf32>
    %88 = arith.addf %87, %86 : vector<16x32xf32>
    %89 = arith.mulf %83, %88 : vector<16x32xf32>
    %c0_72 = arith.constant 0 : index
    %c0_73 = arith.constant 0 : index
    %90 = vector.load %arg10[%c0_72, %c0_73] : memref<16x32xf32, #tpu.memory_space<vmem>>, vector<16x32xf32>
    %91 = arith.addf %89, %90 : vector<16x32xf32>
    %c0_74 = arith.constant 0 : index
    %c0_75 = arith.constant 0 : index
    %c0_76 = arith.constant 0 : index
    %92 = vector.load %arg11[%c0_74, %c0_75, %c0_76] : memref<4x1x32xf32, #tpu.memory_space<vmem>>, vector<1x1x32xf32>
    %93 = vector.shape_cast %92 : vector<1x1x32xf32> to vector<1x32xf32>
    %c1_77 = arith.constant 1 : index
    %c0_78 = arith.constant 0 : index
    %c0_79 = arith.constant 0 : index
    %94 = vector.load %arg11[%c1_77, %c0_78, %c0_79] : memref<4x1x32xf32, #tpu.memory_space<vmem>>, vector<1x1x32xf32>
    %95 = vector.shape_cast %94 : vector<1x1x32xf32> to vector<1x32xf32>
    %c2_80 = arith.constant 2 : index
    %c0_81 = arith.constant 0 : index
    %c0_82 = arith.constant 0 : index
    %96 = vector.load %arg11[%c2_80, %c0_81, %c0_82] : memref<4x1x32xf32, #tpu.memory_space<vmem>>, vector<1x1x32xf32>
    %97 = vector.shape_cast %96 : vector<1x1x32xf32> to vector<1x32xf32>
    %c3 = arith.constant 3 : index
    %c0_83 = arith.constant 0 : index
    %c0_84 = arith.constant 0 : index
    %98 = vector.load %arg11[%c3, %c0_83, %c0_84] : memref<4x1x32xf32, #tpu.memory_space<vmem>>, vector<1x1x32xf32>
    %99 = vector.shape_cast %98 : vector<1x1x32xf32> to vector<1x32xf32>
    %c0_85 = arith.constant 0 : index
    %c0_86 = arith.constant 0 : index
    %c0_87 = arith.constant 0 : index
    %100 = vector.load %arg13[%c0_85, %c0_86, %c0_87] : memref<2x1x32xf32, #tpu.memory_space<vmem>>, vector<1x1x32xf32>
    %101 = vector.shape_cast %100 : vector<1x1x32xf32> to vector<1x32xf32>
    %c0_88 = arith.constant 0 : index
    %c0_89 = arith.constant 0 : index
    %c0_90 = arith.constant 0 : index
    %102 = vector.load %arg14[%c0_88, %c0_89, %c0_90] : memref<2x1x32xf32, #tpu.memory_space<vmem>>, vector<1x1x32xf32>
    %103 = vector.shape_cast %102 : vector<1x1x32xf32> to vector<1x32xf32>
    %cst_91 = arith.constant dense<0.000000e+00> : vector<16xf32>
    %104 = vector.multi_reduction <add>, %91, %cst_91 [1] : vector<16x32xf32> to vector<16xf32>
    %105 = vector.shape_cast %104 : vector<16xf32> to vector<16x1xf32>
    %cst_92 = arith.constant 3.200000e+01 : f32
    %106 = vector.broadcast %cst_92 : f32 to vector<16x1xf32>
    %107 = arith.divf %105, %106 : vector<16x1xf32>
    %108 = vector.broadcast %107 : vector<16x1xf32> to vector<16x32xf32>
    %109 = arith.subf %91, %108 : vector<16x32xf32>
    %110 = arith.mulf %109, %109 : vector<16x32xf32>
    %cst_93 = arith.constant dense<0.000000e+00> : vector<16xf32>
    %111 = vector.multi_reduction <add>, %110, %cst_93 [1] : vector<16x32xf32> to vector<16xf32>
    %112 = vector.shape_cast %111 : vector<16xf32> to vector<16x1xf32>
    %cst_94 = arith.constant 3.200000e+01 : f32
    %113 = vector.broadcast %cst_94 : f32 to vector<16x1xf32>
    %114 = arith.divf %112, %113 : vector<16x1xf32>
    %115 = vector.broadcast %107 : vector<16x1xf32> to vector<16x32xf32>
    %116 = arith.subf %91, %115 : vector<16x32xf32>
    %cst_95 = arith.constant 9.99999974E-6 : f32
    %117 = vector.broadcast %cst_95 : f32 to vector<16x1xf32>
    %118 = arith.addf %114, %117 : vector<16x1xf32>
    %119 = math.rsqrt %118 : vector<16x1xf32>
    %120 = vector.broadcast %119 : vector<16x1xf32> to vector<16x32xf32>
    %121 = arith.mulf %116, %120 : vector<16x32xf32>
    %122 = vector.broadcast %101 : vector<1x32xf32> to vector<16x32xf32>
    %123 = arith.mulf %121, %122 : vector<16x32xf32>
    %124 = vector.broadcast %103 : vector<1x32xf32> to vector<16x32xf32>
    %125 = arith.addf %123, %124 : vector<16x32xf32>
    %c0_96 = arith.constant 0 : index
    %c0_97 = arith.constant 0 : index
    %c0_98 = arith.constant 0 : index
    %126 = vector.load %arg15[%c0_96, %c0_97, %c0_98] : memref<2x32x32xf32, #tpu.memory_space<vmem>>, vector<1x32x32xf32>
    %127 = vector.shape_cast %126 : vector<1x32x32xf32> to vector<32x32xf32>
    %cst_99 = arith.constant dense<0.000000e+00> : vector<16x32xf32>
    %128 = tpu.matmul %125, %127, %cst_99 {dimension_numbers = #tpu.dot_dimension_numbers<[1], [0], [0], [1], [0, 0, 1, 1], [], []>} : vector<16x32xf32>, vector<32x32xf32>, vector<16x32xf32> -> vector<16x32xf32>
    %c0_100 = arith.constant 0 : index
    %c0_101 = arith.constant 0 : index
    %c0_102 = arith.constant 0 : index
    %129 = vector.load %arg16[%c0_100, %c0_101, %c0_102] : memref<2x1x32xf32, #tpu.memory_space<vmem>>, vector<1x1x32xf32>
    %130 = vector.shape_cast %129 : vector<1x1x32xf32> to vector<1x32xf32>
    %131 = vector.broadcast %130 : vector<1x32xf32> to vector<16x32xf32>
    %132 = arith.addf %128, %131 : vector<16x32xf32>
    %c0_103 = arith.constant 0 : index
    %c0_104 = arith.constant 0 : index
    %c0_105 = arith.constant 0 : index
    %133 = vector.load %arg17[%c0_103, %c0_104, %c0_105] : memref<2x32x32xf32, #tpu.memory_space<vmem>>, vector<1x32x32xf32>
    %134 = vector.shape_cast %133 : vector<1x32x32xf32> to vector<32x32xf32>
    %cst_106 = arith.constant dense<0.000000e+00> : vector<16x32xf32>
    %135 = tpu.matmul %125, %134, %cst_106 {dimension_numbers = #tpu.dot_dimension_numbers<[1], [0], [0], [1], [0, 0, 1, 1], [], []>} : vector<16x32xf32>, vector<32x32xf32>, vector<16x32xf32> -> vector<16x32xf32>
    %c0_107 = arith.constant 0 : index
    %c0_108 = arith.constant 0 : index
    %c0_109 = arith.constant 0 : index
    %136 = vector.load %arg18[%c0_107, %c0_108, %c0_109] : memref<2x32x32xf32, #tpu.memory_space<vmem>>, vector<1x32x32xf32>
    %137 = vector.shape_cast %136 : vector<1x32x32xf32> to vector<32x32xf32>
    %cst_110 = arith.constant dense<0.000000e+00> : vector<16x32xf32>
    %138 = tpu.matmul %125, %137, %cst_110 {dimension_numbers = #tpu.dot_dimension_numbers<[1], [0], [0], [1], [0, 0, 1, 1], [], []>} : vector<16x32xf32>, vector<32x32xf32>, vector<16x32xf32> -> vector<16x32xf32>
    %c0_111 = arith.constant 0 : index
    %c0_112 = arith.constant 0 : index
    %c0_113 = arith.constant 0 : index
    %139 = vector.load %arg19[%c0_111, %c0_112, %c0_113] : memref<2x1x32xf32, #tpu.memory_space<vmem>>, vector<1x1x32xf32>
    %140 = vector.shape_cast %139 : vector<1x1x32xf32> to vector<1x32xf32>
    %141 = vector.broadcast %140 : vector<1x32xf32> to vector<16x32xf32>
    %142 = arith.addf %138, %141 : vector<16x32xf32>
    %cst_114 = arith.constant 0.000000e+00 : f32
    %143 = vector.broadcast %cst_114 : f32 to vector<16x32xf32>
    %144 = vector.broadcast %93 : vector<1x32xf32> to vector<16x32xf32>
    %145 = arith.mulf %132, %144 : vector<16x32xf32>
    %cst_115 = arith.constant dense<0.000000e+00> : vector<16x16xf32>
    %146 = tpu.matmul %145, %135, %cst_115 {dimension_numbers = #tpu.dot_dimension_numbers<[1], [1], [0], [0], [0, 0, 1, 0], [], []>} : vector<16x32xf32>, vector<16x32xf32>, vector<16x16xf32> -> vector<16x16xf32>
    %cst_116 = arith.constant dense<0xFF800000> : vector<16xf32>
    %147 = vector.multi_reduction <maximumf>, %146, %cst_116 [1] : vector<16x16xf32> to vector<16xf32>
    %148 = vector.shape_cast %147 : vector<16xf32> to vector<16x1xf32>
    %149 = vector.broadcast %148 : vector<16x1xf32> to vector<16x16xf32>
    %150 = arith.subf %146, %149 : vector<16x16xf32>
    %151 = math.exp %150 : vector<16x16xf32>
    %cst_117 = arith.constant dense<0.000000e+00> : vector<16xf32>
    %152 = vector.multi_reduction <add>, %151, %cst_117 [1] : vector<16x16xf32> to vector<16xf32>
    %153 = vector.shape_cast %152 : vector<16xf32> to vector<16x1xf32>
    %154 = tpu.reciprocal %153 {approx = true} : vector<16x1xf32> -> vector<16x1xf32>
    %155 = vector.broadcast %154 : vector<16x1xf32> to vector<16x16xf32>
    %156 = arith.mulf %151, %155 : vector<16x16xf32>
    %157 = vector.broadcast %93 : vector<1x32xf32> to vector<16x32xf32>
    %158 = arith.mulf %142, %157 : vector<16x32xf32>
    %cst_118 = arith.constant dense<0.000000e+00> : vector<16x32xf32>
    %159 = tpu.matmul %156, %158, %cst_118 {dimension_numbers = #tpu.dot_dimension_numbers<[1], [0], [0], [1], [0, 0, 1, 1], [], []>} : vector<16x16xf32>, vector<16x32xf32>, vector<16x32xf32> -> vector<16x32xf32>
    %160 = arith.addf %143, %159 : vector<16x32xf32>
    %161 = vector.broadcast %95 : vector<1x32xf32> to vector<16x32xf32>
    %162 = arith.mulf %132, %161 : vector<16x32xf32>
    %cst_119 = arith.constant dense<0.000000e+00> : vector<16x16xf32>
    %163 = tpu.matmul %162, %135, %cst_119 {dimension_numbers = #tpu.dot_dimension_numbers<[1], [1], [0], [0], [0, 0, 1, 0], [], []>} : vector<16x32xf32>, vector<16x32xf32>, vector<16x16xf32> -> vector<16x16xf32>
    %cst_120 = arith.constant dense<0xFF800000> : vector<16xf32>
    %164 = vector.multi_reduction <maximumf>, %163, %cst_120 [1] : vector<16x16xf32> to vector<16xf32>
    %165 = vector.shape_cast %164 : vector<16xf32> to vector<16x1xf32>
    %166 = vector.broadcast %165 : vector<16x1xf32> to vector<16x16xf32>
    %167 = arith.subf %163, %166 : vector<16x16xf32>
    %168 = math.exp %167 : vector<16x16xf32>
    %cst_121 = arith.constant dense<0.000000e+00> : vector<16xf32>
    %169 = vector.multi_reduction <add>, %168, %cst_121 [1] : vector<16x16xf32> to vector<16xf32>
    %170 = vector.shape_cast %169 : vector<16xf32> to vector<16x1xf32>
    %171 = tpu.reciprocal %170 {approx = true} : vector<16x1xf32> -> vector<16x1xf32>
    %172 = vector.broadcast %171 : vector<16x1xf32> to vector<16x16xf32>
    %173 = arith.mulf %168, %172 : vector<16x16xf32>
    %174 = vector.broadcast %95 : vector<1x32xf32> to vector<16x32xf32>
    %175 = arith.mulf %142, %174 : vector<16x32xf32>
    %cst_122 = arith.constant dense<0.000000e+00> : vector<16x32xf32>
    %176 = tpu.matmul %173, %175, %cst_122 {dimension_numbers = #tpu.dot_dimension_numbers<[1], [0], [0], [1], [0, 0, 1, 1], [], []>} : vector<16x16xf32>, vector<16x32xf32>, vector<16x32xf32> -> vector<16x32xf32>
    %177 = arith.addf %160, %176 : vector<16x32xf32>
    %178 = vector.broadcast %97 : vector<1x32xf32> to vector<16x32xf32>
    %179 = arith.mulf %132, %178 : vector<16x32xf32>
    %cst_123 = arith.constant dense<0.000000e+00> : vector<16x16xf32>
    %180 = tpu.matmul %179, %135, %cst_123 {dimension_numbers = #tpu.dot_dimension_numbers<[1], [1], [0], [0], [0, 0, 1, 0], [], []>} : vector<16x32xf32>, vector<16x32xf32>, vector<16x16xf32> -> vector<16x16xf32>
    %cst_124 = arith.constant dense<0xFF800000> : vector<16xf32>
    %181 = vector.multi_reduction <maximumf>, %180, %cst_124 [1] : vector<16x16xf32> to vector<16xf32>
    %182 = vector.shape_cast %181 : vector<16xf32> to vector<16x1xf32>
    %183 = vector.broadcast %182 : vector<16x1xf32> to vector<16x16xf32>
    %184 = arith.subf %180, %183 : vector<16x16xf32>
    %185 = math.exp %184 : vector<16x16xf32>
    %cst_125 = arith.constant dense<0.000000e+00> : vector<16xf32>
    %186 = vector.multi_reduction <add>, %185, %cst_125 [1] : vector<16x16xf32> to vector<16xf32>
    %187 = vector.shape_cast %186 : vector<16xf32> to vector<16x1xf32>
    %188 = tpu.reciprocal %187 {approx = true} : vector<16x1xf32> -> vector<16x1xf32>
    %189 = vector.broadcast %188 : vector<16x1xf32> to vector<16x16xf32>
    %190 = arith.mulf %185, %189 : vector<16x16xf32>
    %191 = vector.broadcast %97 : vector<1x32xf32> to vector<16x32xf32>
    %192 = arith.mulf %142, %191 : vector<16x32xf32>
    %cst_126 = arith.constant dense<0.000000e+00> : vector<16x32xf32>
    %193 = tpu.matmul %190, %192, %cst_126 {dimension_numbers = #tpu.dot_dimension_numbers<[1], [0], [0], [1], [0, 0, 1, 1], [], []>} : vector<16x16xf32>, vector<16x32xf32>, vector<16x32xf32> -> vector<16x32xf32>
    %194 = arith.addf %177, %193 : vector<16x32xf32>
    %195 = vector.broadcast %99 : vector<1x32xf32> to vector<16x32xf32>
    %196 = arith.mulf %132, %195 : vector<16x32xf32>
    %cst_127 = arith.constant dense<0.000000e+00> : vector<16x16xf32>
    %197 = tpu.matmul %196, %135, %cst_127 {dimension_numbers = #tpu.dot_dimension_numbers<[1], [1], [0], [0], [0, 0, 1, 0], [], []>} : vector<16x32xf32>, vector<16x32xf32>, vector<16x16xf32> -> vector<16x16xf32>
    %cst_128 = arith.constant dense<0xFF800000> : vector<16xf32>
    %198 = vector.multi_reduction <maximumf>, %197, %cst_128 [1] : vector<16x16xf32> to vector<16xf32>
    %199 = vector.shape_cast %198 : vector<16xf32> to vector<16x1xf32>
    %200 = vector.broadcast %199 : vector<16x1xf32> to vector<16x16xf32>
    %201 = arith.subf %197, %200 : vector<16x16xf32>
    %202 = math.exp %201 : vector<16x16xf32>
    %cst_129 = arith.constant dense<0.000000e+00> : vector<16xf32>
    %203 = vector.multi_reduction <add>, %202, %cst_129 [1] : vector<16x16xf32> to vector<16xf32>
    %204 = vector.shape_cast %203 : vector<16xf32> to vector<16x1xf32>
    %205 = tpu.reciprocal %204 {approx = true} : vector<16x1xf32> -> vector<16x1xf32>
    %206 = vector.broadcast %205 : vector<16x1xf32> to vector<16x16xf32>
    %207 = arith.mulf %202, %206 : vector<16x16xf32>
    %208 = vector.broadcast %99 : vector<1x32xf32> to vector<16x32xf32>
    %209 = arith.mulf %142, %208 : vector<16x32xf32>
    %cst_130 = arith.constant dense<0.000000e+00> : vector<16x32xf32>
    %210 = tpu.matmul %207, %209, %cst_130 {dimension_numbers = #tpu.dot_dimension_numbers<[1], [0], [0], [1], [0, 0, 1, 1], [], []>} : vector<16x16xf32>, vector<16x32xf32>, vector<16x32xf32> -> vector<16x32xf32>
    %211 = arith.addf %194, %210 : vector<16x32xf32>
    %c0_131 = arith.constant 0 : index
    %c0_132 = arith.constant 0 : index
    %c0_133 = arith.constant 0 : index
    %212 = vector.load %arg20[%c0_131, %c0_132, %c0_133] : memref<2x32x32xf32, #tpu.memory_space<vmem>>, vector<1x32x32xf32>
    %213 = vector.shape_cast %212 : vector<1x32x32xf32> to vector<32x32xf32>
    %cst_134 = arith.constant dense<0.000000e+00> : vector<16x32xf32>
    %214 = tpu.matmul %211, %213, %cst_134 {dimension_numbers = #tpu.dot_dimension_numbers<[1], [0], [0], [1], [0, 0, 1, 1], [], []>} : vector<16x32xf32>, vector<32x32xf32>, vector<16x32xf32> -> vector<16x32xf32>
    %215 = arith.addf %91, %214 : vector<16x32xf32>
    %c0_135 = arith.constant 0 : index
    %c0_136 = arith.constant 0 : index
    %c0_137 = arith.constant 0 : index
    %216 = vector.load %arg21[%c0_135, %c0_136, %c0_137] : memref<2x1x32xf32, #tpu.memory_space<vmem>>, vector<1x1x32xf32>
    %217 = vector.shape_cast %216 : vector<1x1x32xf32> to vector<1x32xf32>
    %218 = vector.broadcast %217 : vector<1x32xf32> to vector<16x32xf32>
    %219 = arith.addf %215, %218 : vector<16x32xf32>
    %c0_138 = arith.constant 0 : index
    %c0_139 = arith.constant 0 : index
    %c0_140 = arith.constant 0 : index
    %220 = vector.load %arg22[%c0_138, %c0_139, %c0_140] : memref<2x1x32xf32, #tpu.memory_space<vmem>>, vector<1x1x32xf32>
    %221 = vector.shape_cast %220 : vector<1x1x32xf32> to vector<1x32xf32>
    %c0_141 = arith.constant 0 : index
    %c0_142 = arith.constant 0 : index
    %c0_143 = arith.constant 0 : index
    %222 = vector.load %arg23[%c0_141, %c0_142, %c0_143] : memref<2x1x32xf32, #tpu.memory_space<vmem>>, vector<1x1x32xf32>
    %223 = vector.shape_cast %222 : vector<1x1x32xf32> to vector<1x32xf32>
    %cst_144 = arith.constant dense<0.000000e+00> : vector<16xf32>
    %224 = vector.multi_reduction <add>, %219, %cst_144 [1] : vector<16x32xf32> to vector<16xf32>
    %225 = vector.shape_cast %224 : vector<16xf32> to vector<16x1xf32>
    %cst_145 = arith.constant 3.200000e+01 : f32
    %226 = vector.broadcast %cst_145 : f32 to vector<16x1xf32>
    %227 = arith.divf %225, %226 : vector<16x1xf32>
    %228 = vector.broadcast %227 : vector<16x1xf32> to vector<16x32xf32>
    %229 = arith.subf %219, %228 : vector<16x32xf32>
    %230 = arith.mulf %229, %229 : vector<16x32xf32>
    %cst_146 = arith.constant dense<0.000000e+00> : vector<16xf32>
    %231 = vector.multi_reduction <add>, %230, %cst_146 [1] : vector<16x32xf32> to vector<16xf32>
    %232 = vector.shape_cast %231 : vector<16xf32> to vector<16x1xf32>
    %cst_147 = arith.constant 3.200000e+01 : f32
    %233 = vector.broadcast %cst_147 : f32 to vector<16x1xf32>
    %234 = arith.divf %232, %233 : vector<16x1xf32>
    %235 = vector.broadcast %227 : vector<16x1xf32> to vector<16x32xf32>
    %236 = arith.subf %219, %235 : vector<16x32xf32>
    %cst_148 = arith.constant 9.99999974E-6 : f32
    %237 = vector.broadcast %cst_148 : f32 to vector<16x1xf32>
    %238 = arith.addf %234, %237 : vector<16x1xf32>
    %239 = math.rsqrt %238 : vector<16x1xf32>
    %240 = vector.broadcast %239 : vector<16x1xf32> to vector<16x32xf32>
    %241 = arith.mulf %236, %240 : vector<16x32xf32>
    %242 = vector.broadcast %221 : vector<1x32xf32> to vector<16x32xf32>
    %243 = arith.mulf %241, %242 : vector<16x32xf32>
    %244 = vector.broadcast %223 : vector<1x32xf32> to vector<16x32xf32>
    %245 = arith.addf %243, %244 : vector<16x32xf32>
    %c0_149 = arith.constant 0 : index
    %c0_150 = arith.constant 0 : index
    %c0_151 = arith.constant 0 : index
    %246 = vector.load %arg24[%c0_149, %c0_150, %c0_151] : memref<2x32x64xf32, #tpu.memory_space<vmem>>, vector<1x32x64xf32>
    %247 = vector.shape_cast %246 : vector<1x32x64xf32> to vector<32x64xf32>
    %cst_152 = arith.constant dense<0.000000e+00> : vector<16x64xf32>
    %248 = tpu.matmul %245, %247, %cst_152 {dimension_numbers = #tpu.dot_dimension_numbers<[1], [0], [0], [1], [0, 0, 1, 1], [], []>} : vector<16x32xf32>, vector<32x64xf32>, vector<16x64xf32> -> vector<16x64xf32>
    %c0_153 = arith.constant 0 : index
    %c0_154 = arith.constant 0 : index
    %c0_155 = arith.constant 0 : index
    %249 = vector.load %arg25[%c0_153, %c0_154, %c0_155] : memref<2x1x64xf32, #tpu.memory_space<vmem>>, vector<1x1x64xf32>
    %250 = vector.shape_cast %249 : vector<1x1x64xf32> to vector<1x64xf32>
    %251 = vector.broadcast %250 : vector<1x64xf32> to vector<16x64xf32>
    %252 = arith.addf %248, %251 : vector<16x64xf32>
    %cst_156 = arith.constant 5.000000e-01 : f32
    %253 = vector.broadcast %cst_156 : f32 to vector<16x64xf32>
    %254 = arith.mulf %253, %252 : vector<16x64xf32>
    %cst_157 = arith.constant 0.707106769 : f32
    %255 = vector.broadcast %cst_157 : f32 to vector<16x64xf32>
    %256 = arith.mulf %252, %255 : vector<16x64xf32>
    %257 = math.erf %256 : vector<16x64xf32>
    %cst_158 = arith.constant 1.000000e+00 : f32
    %258 = vector.broadcast %cst_158 : f32 to vector<16x64xf32>
    %259 = arith.addf %258, %257 : vector<16x64xf32>
    %260 = arith.mulf %254, %259 : vector<16x64xf32>
    %c0_159 = arith.constant 0 : index
    %c0_160 = arith.constant 0 : index
    %c0_161 = arith.constant 0 : index
    %261 = vector.load %arg26[%c0_159, %c0_160, %c0_161] : memref<2x64x32xf32, #tpu.memory_space<vmem>>, vector<1x64x32xf32>
    %262 = vector.shape_cast %261 : vector<1x64x32xf32> to vector<64x32xf32>
    %cst_162 = arith.constant dense<0.000000e+00> : vector<16x32xf32>
    %263 = tpu.matmul %260, %262, %cst_162 {dimension_numbers = #tpu.dot_dimension_numbers<[1], [0], [0], [1], [0, 0, 1, 1], [], []>} : vector<16x64xf32>, vector<64x32xf32>, vector<16x32xf32> -> vector<16x32xf32>
    %264 = arith.addf %219, %263 : vector<16x32xf32>
    %c0_163 = arith.constant 0 : index
    %c0_164 = arith.constant 0 : index
    %c0_165 = arith.constant 0 : index
    %265 = vector.load %arg27[%c0_163, %c0_164, %c0_165] : memref<2x1x32xf32, #tpu.memory_space<vmem>>, vector<1x1x32xf32>
    %266 = vector.shape_cast %265 : vector<1x1x32xf32> to vector<1x32xf32>
    %267 = vector.broadcast %266 : vector<1x32xf32> to vector<16x32xf32>
    %268 = arith.addf %264, %267 : vector<16x32xf32>
    %c1_166 = arith.constant 1 : index
    %c0_167 = arith.constant 0 : index
    %c0_168 = arith.constant 0 : index
    %269 = vector.load %arg13[%c1_166, %c0_167, %c0_168] : memref<2x1x32xf32, #tpu.memory_space<vmem>>, vector<1x1x32xf32>
    %270 = vector.shape_cast %269 : vector<1x1x32xf32> to vector<1x32xf32>
    %c1_169 = arith.constant 1 : index
    %c0_170 = arith.constant 0 : index
    %c0_171 = arith.constant 0 : index
    %271 = vector.load %arg14[%c1_169, %c0_170, %c0_171] : memref<2x1x32xf32, #tpu.memory_space<vmem>>, vector<1x1x32xf32>
    %272 = vector.shape_cast %271 : vector<1x1x32xf32> to vector<1x32xf32>
    %cst_172 = arith.constant dense<0.000000e+00> : vector<16xf32>
    %273 = vector.multi_reduction <add>, %268, %cst_172 [1] : vector<16x32xf32> to vector<16xf32>
    %274 = vector.shape_cast %273 : vector<16xf32> to vector<16x1xf32>
    %cst_173 = arith.constant 3.200000e+01 : f32
    %275 = vector.broadcast %cst_173 : f32 to vector<16x1xf32>
    %276 = arith.divf %274, %275 : vector<16x1xf32>
    %277 = vector.broadcast %276 : vector<16x1xf32> to vector<16x32xf32>
    %278 = arith.subf %268, %277 : vector<16x32xf32>
    %279 = arith.mulf %278, %278 : vector<16x32xf32>
    %cst_174 = arith.constant dense<0.000000e+00> : vector<16xf32>
    %280 = vector.multi_reduction <add>, %279, %cst_174 [1] : vector<16x32xf32> to vector<16xf32>
    %281 = vector.shape_cast %280 : vector<16xf32> to vector<16x1xf32>
    %cst_175 = arith.constant 3.200000e+01 : f32
    %282 = vector.broadcast %cst_175 : f32 to vector<16x1xf32>
    %283 = arith.divf %281, %282 : vector<16x1xf32>
    %284 = vector.broadcast %276 : vector<16x1xf32> to vector<16x32xf32>
    %285 = arith.subf %268, %284 : vector<16x32xf32>
    %cst_176 = arith.constant 9.99999974E-6 : f32
    %286 = vector.broadcast %cst_176 : f32 to vector<16x1xf32>
    %287 = arith.addf %283, %286 : vector<16x1xf32>
    %288 = math.rsqrt %287 : vector<16x1xf32>
    %289 = vector.broadcast %288 : vector<16x1xf32> to vector<16x32xf32>
    %290 = arith.mulf %285, %289 : vector<16x32xf32>
    %291 = vector.broadcast %270 : vector<1x32xf32> to vector<16x32xf32>
    %292 = arith.mulf %290, %291 : vector<16x32xf32>
    %293 = vector.broadcast %272 : vector<1x32xf32> to vector<16x32xf32>
    %294 = arith.addf %292, %293 : vector<16x32xf32>
    %c1_177 = arith.constant 1 : index
    %c0_178 = arith.constant 0 : index
    %c0_179 = arith.constant 0 : index
    %295 = vector.load %arg15[%c1_177, %c0_178, %c0_179] : memref<2x32x32xf32, #tpu.memory_space<vmem>>, vector<1x32x32xf32>
    %296 = vector.shape_cast %295 : vector<1x32x32xf32> to vector<32x32xf32>
    %cst_180 = arith.constant dense<0.000000e+00> : vector<16x32xf32>
    %297 = tpu.matmul %294, %296, %cst_180 {dimension_numbers = #tpu.dot_dimension_numbers<[1], [0], [0], [1], [0, 0, 1, 1], [], []>} : vector<16x32xf32>, vector<32x32xf32>, vector<16x32xf32> -> vector<16x32xf32>
    %c1_181 = arith.constant 1 : index
    %c0_182 = arith.constant 0 : index
    %c0_183 = arith.constant 0 : index
    %298 = vector.load %arg16[%c1_181, %c0_182, %c0_183] : memref<2x1x32xf32, #tpu.memory_space<vmem>>, vector<1x1x32xf32>
    %299 = vector.shape_cast %298 : vector<1x1x32xf32> to vector<1x32xf32>
    %300 = vector.broadcast %299 : vector<1x32xf32> to vector<16x32xf32>
    %301 = arith.addf %297, %300 : vector<16x32xf32>
    %c1_184 = arith.constant 1 : index
    %c0_185 = arith.constant 0 : index
    %c0_186 = arith.constant 0 : index
    %302 = vector.load %arg17[%c1_184, %c0_185, %c0_186] : memref<2x32x32xf32, #tpu.memory_space<vmem>>, vector<1x32x32xf32>
    %303 = vector.shape_cast %302 : vector<1x32x32xf32> to vector<32x32xf32>
    %cst_187 = arith.constant dense<0.000000e+00> : vector<16x32xf32>
    %304 = tpu.matmul %294, %303, %cst_187 {dimension_numbers = #tpu.dot_dimension_numbers<[1], [0], [0], [1], [0, 0, 1, 1], [], []>} : vector<16x32xf32>, vector<32x32xf32>, vector<16x32xf32> -> vector<16x32xf32>
    %c1_188 = arith.constant 1 : index
    %c0_189 = arith.constant 0 : index
    %c0_190 = arith.constant 0 : index
    %305 = vector.load %arg18[%c1_188, %c0_189, %c0_190] : memref<2x32x32xf32, #tpu.memory_space<vmem>>, vector<1x32x32xf32>
    %306 = vector.shape_cast %305 : vector<1x32x32xf32> to vector<32x32xf32>
    %cst_191 = arith.constant dense<0.000000e+00> : vector<16x32xf32>
    %307 = tpu.matmul %294, %306, %cst_191 {dimension_numbers = #tpu.dot_dimension_numbers<[1], [0], [0], [1], [0, 0, 1, 1], [], []>} : vector<16x32xf32>, vector<32x32xf32>, vector<16x32xf32> -> vector<16x32xf32>
    %c1_192 = arith.constant 1 : index
    %c0_193 = arith.constant 0 : index
    %c0_194 = arith.constant 0 : index
    %308 = vector.load %arg19[%c1_192, %c0_193, %c0_194] : memref<2x1x32xf32, #tpu.memory_space<vmem>>, vector<1x1x32xf32>
    %309 = vector.shape_cast %308 : vector<1x1x32xf32> to vector<1x32xf32>
    %310 = vector.broadcast %309 : vector<1x32xf32> to vector<16x32xf32>
    %311 = arith.addf %307, %310 : vector<16x32xf32>
    %cst_195 = arith.constant 0.000000e+00 : f32
    %312 = vector.broadcast %cst_195 : f32 to vector<16x32xf32>
    %313 = vector.broadcast %93 : vector<1x32xf32> to vector<16x32xf32>
    %314 = arith.mulf %301, %313 : vector<16x32xf32>
    %cst_196 = arith.constant dense<0.000000e+00> : vector<16x16xf32>
    %315 = tpu.matmul %314, %304, %cst_196 {dimension_numbers = #tpu.dot_dimension_numbers<[1], [1], [0], [0], [0, 0, 1, 0], [], []>} : vector<16x32xf32>, vector<16x32xf32>, vector<16x16xf32> -> vector<16x16xf32>
    %cst_197 = arith.constant dense<0xFF800000> : vector<16xf32>
    %316 = vector.multi_reduction <maximumf>, %315, %cst_197 [1] : vector<16x16xf32> to vector<16xf32>
    %317 = vector.shape_cast %316 : vector<16xf32> to vector<16x1xf32>
    %318 = vector.broadcast %317 : vector<16x1xf32> to vector<16x16xf32>
    %319 = arith.subf %315, %318 : vector<16x16xf32>
    %320 = math.exp %319 : vector<16x16xf32>
    %cst_198 = arith.constant dense<0.000000e+00> : vector<16xf32>
    %321 = vector.multi_reduction <add>, %320, %cst_198 [1] : vector<16x16xf32> to vector<16xf32>
    %322 = vector.shape_cast %321 : vector<16xf32> to vector<16x1xf32>
    %323 = tpu.reciprocal %322 {approx = true} : vector<16x1xf32> -> vector<16x1xf32>
    %324 = vector.broadcast %323 : vector<16x1xf32> to vector<16x16xf32>
    %325 = arith.mulf %320, %324 : vector<16x16xf32>
    %326 = vector.broadcast %93 : vector<1x32xf32> to vector<16x32xf32>
    %327 = arith.mulf %311, %326 : vector<16x32xf32>
    %cst_199 = arith.constant dense<0.000000e+00> : vector<16x32xf32>
    %328 = tpu.matmul %325, %327, %cst_199 {dimension_numbers = #tpu.dot_dimension_numbers<[1], [0], [0], [1], [0, 0, 1, 1], [], []>} : vector<16x16xf32>, vector<16x32xf32>, vector<16x32xf32> -> vector<16x32xf32>
    %329 = arith.addf %312, %328 : vector<16x32xf32>
    %330 = vector.broadcast %95 : vector<1x32xf32> to vector<16x32xf32>
    %331 = arith.mulf %301, %330 : vector<16x32xf32>
    %cst_200 = arith.constant dense<0.000000e+00> : vector<16x16xf32>
    %332 = tpu.matmul %331, %304, %cst_200 {dimension_numbers = #tpu.dot_dimension_numbers<[1], [1], [0], [0], [0, 0, 1, 0], [], []>} : vector<16x32xf32>, vector<16x32xf32>, vector<16x16xf32> -> vector<16x16xf32>
    %cst_201 = arith.constant dense<0xFF800000> : vector<16xf32>
    %333 = vector.multi_reduction <maximumf>, %332, %cst_201 [1] : vector<16x16xf32> to vector<16xf32>
    %334 = vector.shape_cast %333 : vector<16xf32> to vector<16x1xf32>
    %335 = vector.broadcast %334 : vector<16x1xf32> to vector<16x16xf32>
    %336 = arith.subf %332, %335 : vector<16x16xf32>
    %337 = math.exp %336 : vector<16x16xf32>
    %cst_202 = arith.constant dense<0.000000e+00> : vector<16xf32>
    %338 = vector.multi_reduction <add>, %337, %cst_202 [1] : vector<16x16xf32> to vector<16xf32>
    %339 = vector.shape_cast %338 : vector<16xf32> to vector<16x1xf32>
    %340 = tpu.reciprocal %339 {approx = true} : vector<16x1xf32> -> vector<16x1xf32>
    %341 = vector.broadcast %340 : vector<16x1xf32> to vector<16x16xf32>
    %342 = arith.mulf %337, %341 : vector<16x16xf32>
    %343 = vector.broadcast %95 : vector<1x32xf32> to vector<16x32xf32>
    %344 = arith.mulf %311, %343 : vector<16x32xf32>
    %cst_203 = arith.constant dense<0.000000e+00> : vector<16x32xf32>
    %345 = tpu.matmul %342, %344, %cst_203 {dimension_numbers = #tpu.dot_dimension_numbers<[1], [0], [0], [1], [0, 0, 1, 1], [], []>} : vector<16x16xf32>, vector<16x32xf32>, vector<16x32xf32> -> vector<16x32xf32>
    %346 = arith.addf %329, %345 : vector<16x32xf32>
    %347 = vector.broadcast %97 : vector<1x32xf32> to vector<16x32xf32>
    %348 = arith.mulf %301, %347 : vector<16x32xf32>
    %cst_204 = arith.constant dense<0.000000e+00> : vector<16x16xf32>
    %349 = tpu.matmul %348, %304, %cst_204 {dimension_numbers = #tpu.dot_dimension_numbers<[1], [1], [0], [0], [0, 0, 1, 0], [], []>} : vector<16x32xf32>, vector<16x32xf32>, vector<16x16xf32> -> vector<16x16xf32>
    %cst_205 = arith.constant dense<0xFF800000> : vector<16xf32>
    %350 = vector.multi_reduction <maximumf>, %349, %cst_205 [1] : vector<16x16xf32> to vector<16xf32>
    %351 = vector.shape_cast %350 : vector<16xf32> to vector<16x1xf32>
    %352 = vector.broadcast %351 : vector<16x1xf32> to vector<16x16xf32>
    %353 = arith.subf %349, %352 : vector<16x16xf32>
    %354 = math.exp %353 : vector<16x16xf32>
    %cst_206 = arith.constant dense<0.000000e+00> : vector<16xf32>
    %355 = vector.multi_reduction <add>, %354, %cst_206 [1] : vector<16x16xf32> to vector<16xf32>
    %356 = vector.shape_cast %355 : vector<16xf32> to vector<16x1xf32>
    %357 = tpu.reciprocal %356 {approx = true} : vector<16x1xf32> -> vector<16x1xf32>
    %358 = vector.broadcast %357 : vector<16x1xf32> to vector<16x16xf32>
    %359 = arith.mulf %354, %358 : vector<16x16xf32>
    %360 = vector.broadcast %97 : vector<1x32xf32> to vector<16x32xf32>
    %361 = arith.mulf %311, %360 : vector<16x32xf32>
    %cst_207 = arith.constant dense<0.000000e+00> : vector<16x32xf32>
    %362 = tpu.matmul %359, %361, %cst_207 {dimension_numbers = #tpu.dot_dimension_numbers<[1], [0], [0], [1], [0, 0, 1, 1], [], []>} : vector<16x16xf32>, vector<16x32xf32>, vector<16x32xf32> -> vector<16x32xf32>
    %363 = arith.addf %346, %362 : vector<16x32xf32>
    %364 = vector.broadcast %99 : vector<1x32xf32> to vector<16x32xf32>
    %365 = arith.mulf %301, %364 : vector<16x32xf32>
    %cst_208 = arith.constant dense<0.000000e+00> : vector<16x16xf32>
    %366 = tpu.matmul %365, %304, %cst_208 {dimension_numbers = #tpu.dot_dimension_numbers<[1], [1], [0], [0], [0, 0, 1, 0], [], []>} : vector<16x32xf32>, vector<16x32xf32>, vector<16x16xf32> -> vector<16x16xf32>
    %cst_209 = arith.constant dense<0xFF800000> : vector<16xf32>
    %367 = vector.multi_reduction <maximumf>, %366, %cst_209 [1] : vector<16x16xf32> to vector<16xf32>
    %368 = vector.shape_cast %367 : vector<16xf32> to vector<16x1xf32>
    %369 = vector.broadcast %368 : vector<16x1xf32> to vector<16x16xf32>
    %370 = arith.subf %366, %369 : vector<16x16xf32>
    %371 = math.exp %370 : vector<16x16xf32>
    %cst_210 = arith.constant dense<0.000000e+00> : vector<16xf32>
    %372 = vector.multi_reduction <add>, %371, %cst_210 [1] : vector<16x16xf32> to vector<16xf32>
    %373 = vector.shape_cast %372 : vector<16xf32> to vector<16x1xf32>
    %374 = tpu.reciprocal %373 {approx = true} : vector<16x1xf32> -> vector<16x1xf32>
    %375 = vector.broadcast %374 : vector<16x1xf32> to vector<16x16xf32>
    %376 = arith.mulf %371, %375 : vector<16x16xf32>
    %377 = vector.broadcast %99 : vector<1x32xf32> to vector<16x32xf32>
    %378 = arith.mulf %311, %377 : vector<16x32xf32>
    %cst_211 = arith.constant dense<0.000000e+00> : vector<16x32xf32>
    %379 = tpu.matmul %376, %378, %cst_211 {dimension_numbers = #tpu.dot_dimension_numbers<[1], [0], [0], [1], [0, 0, 1, 1], [], []>} : vector<16x16xf32>, vector<16x32xf32>, vector<16x32xf32> -> vector<16x32xf32>
    %380 = arith.addf %363, %379 : vector<16x32xf32>
    %c1_212 = arith.constant 1 : index
    %c0_213 = arith.constant 0 : index
    %c0_214 = arith.constant 0 : index
    %381 = vector.load %arg20[%c1_212, %c0_213, %c0_214] : memref<2x32x32xf32, #tpu.memory_space<vmem>>, vector<1x32x32xf32>
    %382 = vector.shape_cast %381 : vector<1x32x32xf32> to vector<32x32xf32>
    %cst_215 = arith.constant dense<0.000000e+00> : vector<16x32xf32>
    %383 = tpu.matmul %380, %382, %cst_215 {dimension_numbers = #tpu.dot_dimension_numbers<[1], [0], [0], [1], [0, 0, 1, 1], [], []>} : vector<16x32xf32>, vector<32x32xf32>, vector<16x32xf32> -> vector<16x32xf32>
    %384 = arith.addf %268, %383 : vector<16x32xf32>
    %c1_216 = arith.constant 1 : index
    %c0_217 = arith.constant 0 : index
    %c0_218 = arith.constant 0 : index
    %385 = vector.load %arg21[%c1_216, %c0_217, %c0_218] : memref<2x1x32xf32, #tpu.memory_space<vmem>>, vector<1x1x32xf32>
    %386 = vector.shape_cast %385 : vector<1x1x32xf32> to vector<1x32xf32>
    %387 = vector.broadcast %386 : vector<1x32xf32> to vector<16x32xf32>
    %388 = arith.addf %384, %387 : vector<16x32xf32>
    %c1_219 = arith.constant 1 : index
    %c0_220 = arith.constant 0 : index
    %c0_221 = arith.constant 0 : index
    %389 = vector.load %arg22[%c1_219, %c0_220, %c0_221] : memref<2x1x32xf32, #tpu.memory_space<vmem>>, vector<1x1x32xf32>
    %390 = vector.shape_cast %389 : vector<1x1x32xf32> to vector<1x32xf32>
    %c1_222 = arith.constant 1 : index
    %c0_223 = arith.constant 0 : index
    %c0_224 = arith.constant 0 : index
    %391 = vector.load %arg23[%c1_222, %c0_223, %c0_224] : memref<2x1x32xf32, #tpu.memory_space<vmem>>, vector<1x1x32xf32>
    %392 = vector.shape_cast %391 : vector<1x1x32xf32> to vector<1x32xf32>
    %cst_225 = arith.constant dense<0.000000e+00> : vector<16xf32>
    %393 = vector.multi_reduction <add>, %388, %cst_225 [1] : vector<16x32xf32> to vector<16xf32>
    %394 = vector.shape_cast %393 : vector<16xf32> to vector<16x1xf32>
    %cst_226 = arith.constant 3.200000e+01 : f32
    %395 = vector.broadcast %cst_226 : f32 to vector<16x1xf32>
    %396 = arith.divf %394, %395 : vector<16x1xf32>
    %397 = vector.broadcast %396 : vector<16x1xf32> to vector<16x32xf32>
    %398 = arith.subf %388, %397 : vector<16x32xf32>
    %399 = arith.mulf %398, %398 : vector<16x32xf32>
    %cst_227 = arith.constant dense<0.000000e+00> : vector<16xf32>
    %400 = vector.multi_reduction <add>, %399, %cst_227 [1] : vector<16x32xf32> to vector<16xf32>
    %401 = vector.shape_cast %400 : vector<16xf32> to vector<16x1xf32>
    %cst_228 = arith.constant 3.200000e+01 : f32
    %402 = vector.broadcast %cst_228 : f32 to vector<16x1xf32>
    %403 = arith.divf %401, %402 : vector<16x1xf32>
    %404 = vector.broadcast %396 : vector<16x1xf32> to vector<16x32xf32>
    %405 = arith.subf %388, %404 : vector<16x32xf32>
    %cst_229 = arith.constant 9.99999974E-6 : f32
    %406 = vector.broadcast %cst_229 : f32 to vector<16x1xf32>
    %407 = arith.addf %403, %406 : vector<16x1xf32>
    %408 = math.rsqrt %407 : vector<16x1xf32>
    %409 = vector.broadcast %408 : vector<16x1xf32> to vector<16x32xf32>
    %410 = arith.mulf %405, %409 : vector<16x32xf32>
    %411 = vector.broadcast %390 : vector<1x32xf32> to vector<16x32xf32>
    %412 = arith.mulf %410, %411 : vector<16x32xf32>
    %413 = vector.broadcast %392 : vector<1x32xf32> to vector<16x32xf32>
    %414 = arith.addf %412, %413 : vector<16x32xf32>
    %c1_230 = arith.constant 1 : index
    %c0_231 = arith.constant 0 : index
    %c0_232 = arith.constant 0 : index
    %415 = vector.load %arg24[%c1_230, %c0_231, %c0_232] : memref<2x32x64xf32, #tpu.memory_space<vmem>>, vector<1x32x64xf32>
    %416 = vector.shape_cast %415 : vector<1x32x64xf32> to vector<32x64xf32>
    %cst_233 = arith.constant dense<0.000000e+00> : vector<16x64xf32>
    %417 = tpu.matmul %414, %416, %cst_233 {dimension_numbers = #tpu.dot_dimension_numbers<[1], [0], [0], [1], [0, 0, 1, 1], [], []>} : vector<16x32xf32>, vector<32x64xf32>, vector<16x64xf32> -> vector<16x64xf32>
    %c1_234 = arith.constant 1 : index
    %c0_235 = arith.constant 0 : index
    %c0_236 = arith.constant 0 : index
    %418 = vector.load %arg25[%c1_234, %c0_235, %c0_236] : memref<2x1x64xf32, #tpu.memory_space<vmem>>, vector<1x1x64xf32>
    %419 = vector.shape_cast %418 : vector<1x1x64xf32> to vector<1x64xf32>
    %420 = vector.broadcast %419 : vector<1x64xf32> to vector<16x64xf32>
    %421 = arith.addf %417, %420 : vector<16x64xf32>
    %cst_237 = arith.constant 5.000000e-01 : f32
    %422 = vector.broadcast %cst_237 : f32 to vector<16x64xf32>
    %423 = arith.mulf %422, %421 : vector<16x64xf32>
    %cst_238 = arith.constant 0.707106769 : f32
    %424 = vector.broadcast %cst_238 : f32 to vector<16x64xf32>
    %425 = arith.mulf %421, %424 : vector<16x64xf32>
    %426 = math.erf %425 : vector<16x64xf32>
    %cst_239 = arith.constant 1.000000e+00 : f32
    %427 = vector.broadcast %cst_239 : f32 to vector<16x64xf32>
    %428 = arith.addf %427, %426 : vector<16x64xf32>
    %429 = arith.mulf %423, %428 : vector<16x64xf32>
    %c1_240 = arith.constant 1 : index
    %c0_241 = arith.constant 0 : index
    %c0_242 = arith.constant 0 : index
    %430 = vector.load %arg26[%c1_240, %c0_241, %c0_242] : memref<2x64x32xf32, #tpu.memory_space<vmem>>, vector<1x64x32xf32>
    %431 = vector.shape_cast %430 : vector<1x64x32xf32> to vector<64x32xf32>
    %cst_243 = arith.constant dense<0.000000e+00> : vector<16x32xf32>
    %432 = tpu.matmul %429, %431, %cst_243 {dimension_numbers = #tpu.dot_dimension_numbers<[1], [0], [0], [1], [0, 0, 1, 1], [], []>} : vector<16x64xf32>, vector<64x32xf32>, vector<16x32xf32> -> vector<16x32xf32>
    %433 = arith.addf %388, %432 : vector<16x32xf32>
    %c1_244 = arith.constant 1 : index
    %c0_245 = arith.constant 0 : index
    %c0_246 = arith.constant 0 : index
    %434 = vector.load %arg27[%c1_244, %c0_245, %c0_246] : memref<2x1x32xf32, #tpu.memory_space<vmem>>, vector<1x1x32xf32>
    %435 = vector.shape_cast %434 : vector<1x1x32xf32> to vector<1x32xf32>
    %436 = vector.broadcast %435 : vector<1x32xf32> to vector<16x32xf32>
    %437 = arith.addf %433, %436 : vector<16x32xf32>
    %c0_247 = arith.constant 0 : index
    %c0_248 = arith.constant 0 : index
    %438 = vector.load %arg28[%c0_247, %c0_248] : memref<1x32xf32, #tpu.memory_space<vmem>>, vector<1x32xf32>
    %c0_249 = arith.constant 0 : index
    %c0_250 = arith.constant 0 : index
    %439 = vector.load %arg29[%c0_249, %c0_250] : memref<1x32xf32, #tpu.memory_space<vmem>>, vector<1x32xf32>
    %cst_251 = arith.constant dense<0.000000e+00> : vector<16xf32>
    %440 = vector.multi_reduction <add>, %437, %cst_251 [1] : vector<16x32xf32> to vector<16xf32>
    %441 = vector.shape_cast %440 : vector<16xf32> to vector<16x1xf32>
    %cst_252 = arith.constant 3.200000e+01 : f32
    %442 = vector.broadcast %cst_252 : f32 to vector<16x1xf32>
    %443 = arith.divf %441, %442 : vector<16x1xf32>
    %444 = vector.broadcast %443 : vector<16x1xf32> to vector<16x32xf32>
    %445 = arith.subf %437, %444 : vector<16x32xf32>
    %446 = arith.mulf %445, %445 : vector<16x32xf32>
    %cst_253 = arith.constant dense<0.000000e+00> : vector<16xf32>
    %447 = vector.multi_reduction <add>, %446, %cst_253 [1] : vector<16x32xf32> to vector<16xf32>
    %448 = vector.shape_cast %447 : vector<16xf32> to vector<16x1xf32>
    %cst_254 = arith.constant 3.200000e+01 : f32
    %449 = vector.broadcast %cst_254 : f32 to vector<16x1xf32>
    %450 = arith.divf %448, %449 : vector<16x1xf32>
    %451 = vector.broadcast %443 : vector<16x1xf32> to vector<16x32xf32>
    %452 = arith.subf %437, %451 : vector<16x32xf32>
    %cst_255 = arith.constant 9.99999974E-6 : f32
    %453 = vector.broadcast %cst_255 : f32 to vector<16x1xf32>
    %454 = arith.addf %450, %453 : vector<16x1xf32>
    %455 = math.rsqrt %454 : vector<16x1xf32>
    %456 = vector.broadcast %455 : vector<16x1xf32> to vector<16x32xf32>
    %457 = arith.mulf %452, %456 : vector<16x32xf32>
    %458 = vector.broadcast %438 : vector<1x32xf32> to vector<16x32xf32>
    %459 = arith.mulf %457, %458 : vector<16x32xf32>
    %460 = vector.broadcast %439 : vector<1x32xf32> to vector<16x32xf32>
    %461 = arith.addf %459, %460 : vector<16x32xf32>
    %c0_256 = arith.constant 0 : index
    %c0_257 = arith.constant 0 : index
    %462 = vector.load %arg12[%c0_256, %c0_257] : memref<16x16xf32, #tpu.memory_space<vmem>>, vector<16x16xf32>
    %cst_258 = arith.constant dense<0.000000e+00> : vector<32x16xf32>
    %463 = tpu.matmul %461, %462, %cst_258 {dimension_numbers = #tpu.dot_dimension_numbers<[0], [0], [1], [1], [0, 1, 1, 1], [], []>} : vector<16x32xf32>, vector<16x16xf32>, vector<32x16xf32> -> vector<32x16xf32>
    %c0_259 = arith.constant 0 : index
    %c0_260 = arith.constant 0 : index
    %c0_261 = arith.constant 0 : index
    %464 = vector.load %arg30[%c0_259, %c0_260, %c0_261] : memref<1x32x16xf32, #tpu.memory_space<vmem>>, vector<1x32x16xf32>
    %465 = vector.shape_cast %464 : vector<1x32x16xf32> to vector<32x16xf32>
    %466 = vector.shape_cast %463 : vector<32x16xf32> to vector<1x32x16xf32>
    tpu.vector_store %arg30[%c0_259, %c0_260, %c0_261], %466 {strides = array<i32>} : memref<1x32x16xf32, #tpu.memory_space<vmem>>, vector<1x32x16xf32>,
    return
  }
  func.func @transform_0(%arg0: i32) -> (i32, i32, i32) {
    %c0_i32 = arith.constant 0 : i32
    %c0_i32_0 = arith.constant 0 : i32
    %c0_i32_1 = arith.constant 0 : i32
    return %arg0, %c0_i32, %c0_i32_0 : i32, i32, i32
  }
  func.func @transform_1(%arg0: i32) -> (i32, i32) {
    %c0_i32 = arith.constant 0 : i32
    %c0_i32_0 = arith.constant 0 : i32
    %c0_i32_1 = arith.constant 0 : i32
    return %c0_i32, %c0_i32_0 : i32, i32
  }
  func.func @transform_2(%arg0: i32) -> (i32, i32) {
    %c0_i32 = arith.constant 0 : i32
    %c0_i32_0 = arith.constant 0 : i32
    %c0_i32_1 = arith.constant 0 : i32
    return %c0_i32, %c0_i32_0 : i32, i32
  }
  func.func @transform_3(%arg0: i32) -> (i32, i32, i32) {
    %c0_i32 = arith.constant 0 : i32
    %c0_i32_0 = arith.constant 0 : i32
    %c0_i32_1 = arith.constant 0 : i32
    %c0_i32_2 = arith.constant 0 : i32
    return %c0_i32, %c0_i32_0, %c0_i32_1 : i32, i32, i32
  }
  func.func @transform_4(%arg0: i32) -> (i32, i32, i32) {
    %c0_i32 = arith.constant 0 : i32
    %c0_i32_0 = arith.constant 0 : i32
    %c0_i32_1 = arith.constant 0 : i32
    %c0_i32_2 = arith.constant 0 : i32
    return %c0_i32, %c0_i32_0, %c0_i32_1 : i32, i32, i32
  }
  func.func @transform_5(%arg0: i32) -> (i32, i32) {
    %c0_i32 = arith.constant 0 : i32
    %c0_i32_0 = arith.constant 0 : i32
    %c0_i32_1 = arith.constant 0 : i32
    return %c0_i32, %c0_i32_0 : i32, i32
  }
  func.func @transform_6(%arg0: i32) -> (i32, i32, i32) {
    %c0_i32 = arith.constant 0 : i32
    %c0_i32_0 = arith.constant 0 : i32
    %c0_i32_1 = arith.constant 0 : i32
    %c0_i32_2 = arith.constant 0 : i32
    return %c0_i32, %c0_i32_0, %c0_i32_1 : i32, i32, i32
  }
  func.func @transform_7(%arg0: i32) -> (i32, i32, i32) {
    %c0_i32 = arith.constant 0 : i32
    %c0_i32_0 = arith.constant 0 : i32
    %c0_i32_1 = arith.constant 0 : i32
    %c0_i32_2 = arith.constant 0 : i32
    return %c0_i32, %c0_i32_0, %c0_i32_1 : i32, i32, i32
  }
  func.func @transform_8(%arg0: i32) -> (i32, i32) {
    %c0_i32 = arith.constant 0 : i32
    %c0_i32_0 = arith.constant 0 : i32
    %c0_i32_1 = arith.constant 0 : i32
    return %c0_i32, %c0_i32_0 : i32, i32
  }
  func.func @transform_9(%arg0: i32) -> (i32, i32) {
    %c0_i32 = arith.constant 0 : i32
    %c0_i32_0 = arith.constant 0 : i32
    %c0_i32_1 = arith.constant 0 : i32
    return %c0_i32, %c0_i32_0 : i32, i32
  }
  func.func @transform_10(%arg0: i32) -> (i32, i32, i32) {
    %c0_i32 = arith.constant 0 : i32
    %c0_i32_0 = arith.constant 0 : i32
    %c0_i32_1 = arith.constant 0 : i32
    %c0_i32_2 = arith.constant 0 : i32
    return %c0_i32, %c0_i32_0, %c0_i32_1 : i32, i32, i32
  }
  func.func @transform_11(%arg0: i32) -> (i32, i32) {
    %c0_i32 = arith.constant 0 : i32
    %c0_i32_0 = arith.constant 0 : i32
    %c0_i32_1 = arith.constant 0 : i32
    return %c0_i32, %c0_i32_0 : i32, i32
  }
  func.func @transform_12(%arg0: i32) -> (i32, i32, i32) {
    %c0_i32 = arith.constant 0 : i32
    %c0_i32_0 = arith.constant 0 : i32
    %c0_i32_1 = arith.constant 0 : i32
    %c0_i32_2 = arith.constant 0 : i32
    return %c0_i32, %c0_i32_0, %c0_i32_1 : i32, i32, i32
  }
  func.func @transform_13(%arg0: i32) -> (i32, i32, i32) {
    %c0_i32 = arith.constant 0 : i32
    %c0_i32_0 = arith.constant 0 : i32
    %c0_i32_1 = arith.constant 0 : i32
    %c0_i32_2 = arith.constant 0 : i32
    return %c0_i32, %c0_i32_0, %c0_i32_1 : i32, i32, i32
  }
  func.func @transform_14(%arg0: i32) -> (i32, i32, i32) {
    %c0_i32 = arith.constant 0 : i32
    %c0_i32_0 = arith.constant 0 : i32
    %c0_i32_1 = arith.constant 0 : i32
    %c0_i32_2 = arith.constant 0 : i32
    return %c0_i32, %c0_i32_0, %c0_i32_1 : i32, i32, i32
  }
  func.func @transform_15(%arg0: i32) -> (i32, i32, i32) {
    %c0_i32 = arith.constant 0 : i32
    %c0_i32_0 = arith.constant 0 : i32
    %c0_i32_1 = arith.constant 0 : i32
    %c0_i32_2 = arith.constant 0 : i32
    return %c0_i32, %c0_i32_0, %c0_i32_1 : i32, i32, i32
  }
  func.func @transform_16(%arg0: i32) -> (i32, i32, i32) {
    %c0_i32 = arith.constant 0 : i32
    %c0_i32_0 = arith.constant 0 : i32
    %c0_i32_1 = arith.constant 0 : i32
    %c0_i32_2 = arith.constant 0 : i32
    return %c0_i32, %c0_i32_0, %c0_i32_1 : i32, i32, i32
  }
  func.func @transform_17(%arg0: i32) -> (i32, i32, i32) {
    %c0_i32 = arith.constant 0 : i32
    %c0_i32_0 = arith.constant 0 : i32
    %c0_i32_1 = arith.constant 0 : i32
    %c0_i32_2 = arith.constant 0 : i32
    return %c0_i32, %c0_i32_0, %c0_i32_1 : i32, i32, i32
  }
  func.func @transform_18(%arg0: i32) -> (i32, i32, i32) {
    %c0_i32 = arith.constant 0 : i32
    %c0_i32_0 = arith.constant 0 : i32
    %c0_i32_1 = arith.constant 0 : i32
    %c0_i32_2 = arith.constant 0 : i32
    return %c0_i32, %c0_i32_0, %c0_i32_1 : i32, i32, i32
  }
  func.func @transform_19(%arg0: i32) -> (i32, i32, i32) {
    %c0_i32 = arith.constant 0 : i32
    %c0_i32_0 = arith.constant 0 : i32
    %c0_i32_1 = arith.constant 0 : i32
    %c0_i32_2 = arith.constant 0 : i32
    return %c0_i32, %c0_i32_0, %c0_i32_1 : i32, i32, i32
  }
  func.func @transform_20(%arg0: i32) -> (i32, i32, i32) {
    %c0_i32 = arith.constant 0 : i32
    %c0_i32_0 = arith.constant 0 : i32
    %c0_i32_1 = arith.constant 0 : i32
    %c0_i32_2 = arith.constant 0 : i32
    return %c0_i32, %c0_i32_0, %c0_i32_1 : i32, i32, i32
  }
  func.func @transform_21(%arg0: i32) -> (i32, i32, i32) {
    %c0_i32 = arith.constant 0 : i32
    %c0_i32_0 = arith.constant 0 : i32
    %c0_i32_1 = arith.constant 0 : i32
    %c0_i32_2 = arith.constant 0 : i32
    return %c0_i32, %c0_i32_0, %c0_i32_1 : i32, i32, i32
  }
  func.func @transform_22(%arg0: i32) -> (i32, i32, i32) {
    %c0_i32 = arith.constant 0 : i32
    %c0_i32_0 = arith.constant 0 : i32
    %c0_i32_1 = arith.constant 0 : i32
    %c0_i32_2 = arith.constant 0 : i32
    return %c0_i32, %c0_i32_0, %c0_i32_1 : i32, i32, i32
  }
  func.func @transform_23(%arg0: i32) -> (i32, i32, i32) {
    %c0_i32 = arith.constant 0 : i32
    %c0_i32_0 = arith.constant 0 : i32
    %c0_i32_1 = arith.constant 0 : i32
    %c0_i32_2 = arith.constant 0 : i32
    return %c0_i32, %c0_i32_0, %c0_i32_1 : i32, i32, i32
  }
  func.func @transform_24(%arg0: i32) -> (i32, i32, i32) {
    %c0_i32 = arith.constant 0 : i32
    %c0_i32_0 = arith.constant 0 : i32
    %c0_i32_1 = arith.constant 0 : i32
    %c0_i32_2 = arith.constant 0 : i32
    return %c0_i32, %c0_i32_0, %c0_i32_1 : i32, i32, i32
  }
  func.func @transform_25(%arg0: i32) -> (i32, i32, i32) {
    %c0_i32 = arith.constant 0 : i32
    %c0_i32_0 = arith.constant 0 : i32
    %c0_i32_1 = arith.constant 0 : i32
    %c0_i32_2 = arith.constant 0 : i32
    return %c0_i32, %c0_i32_0, %c0_i32_1 : i32, i32, i32
  }
  func.func @transform_26(%arg0: i32) -> (i32, i32, i32) {
    %c0_i32 = arith.constant 0 : i32
    %c0_i32_0 = arith.constant 0 : i32
    %c0_i32_1 = arith.constant 0 : i32
    %c0_i32_2 = arith.constant 0 : i32
    return %c0_i32, %c0_i32_0, %c0_i32_1 : i32, i32, i32
  }
  func.func @transform_27(%arg0: i32) -> (i32, i32) {
    %c0_i32 = arith.constant 0 : i32
    %c0_i32_0 = arith.constant 0 : i32
    %c0_i32_1 = arith.constant 0 : i32
    return %c0_i32, %c0_i32_0 : i32, i32
  }
  func.func @transform_28(%arg0: i32) -> (i32, i32) {
    %c0_i32 = arith.constant 0 : i32
    %c0_i32_0 = arith.constant 0 : i32
    %c0_i32_1 = arith.constant 0 : i32
    return %c0_i32, %c0_i32_0 : i32, i32
  }
  func.func @transform_29(%arg0: i32) -> (i32, i32, i32) {
    %c0_i32 = arith.constant 0 : i32
    %c0_i32_0 = arith.constant 0 : i32
    %c0_i32_1 = arith.constant 0 : i32
    return %arg0, %c0_i32, %c0_i32_0 : i32, i32, i32
  }
}

</mosaic_0001>

<bundles_post_ra>
// kernel: whisper_wrapper_forward.1
= control target key start
LH: loop header
LB: loop body
LE: loop exit
PB: predicated region body
PF: predicated region fallthrough
CT: control target
= control target key end

     0   :  { %s4011_s6 = smov 1   ;;  %s4012_s10 = smov 2   ;;  %s4878_s0 = inlined_call_operand.smem [shape: u32[30], index: -1, kind: input, shape index: {}] }
   0x1   :  { %s4050_s5 = sld [smem:[%s4878_s0]]   ;;  %s4013_s14 = smov 3  }
   0x2   :  { %s4055_s9 = sld [smem:[%s4878_s0 + %s4011_s6]]   ;;  %s4014_s18 = smov 4  }
   0x3   :  { %s4060_s13 = sld [smem:[%s4878_s0 + %s4012_s10]]   ;;  %s4015_s22 = smov 5  }
   0x4   :  { %s4065_s17 = sld [smem:[%s4878_s0 + %s4013_s14]]   ;;  %s4016_s26 = smov 6  }
   0x5   :  { %s4070_s21 = sld [smem:[%s4878_s0 + %s4014_s18]]   ;;  %s4017_s30 = smov 7  }
   0x6   :  { %s4075_s25 = sld [smem:[%s4878_s0 + %s4015_s22]]   ;;  %s4018_s4 = smov 8  }
   0x7   :  { %s4080_s29 = sld [smem:[%s4878_s0 + %s4016_s26]]   ;;  %s4019_s10 = smov 9  }
   0x8   :  { %s4085_s3 = sld [smem:[%s4878_s0 + %s4017_s30]]   ;;  %s4020_s15 = smov 10  }
   0x9   :  { %s4090_s8 = sld [smem:[%s4878_s0 + %s4018_s4]]   ;;  %s4021_s20 = smov 11  }
   0xa   :  { %s4095_s14 = sld [smem:[%s4878_s0 + %s4019_s10]]   ;;  %s4022_s26 = smov 12  }
   0xb   :  { %s4100_s19 = sld [smem:[%s4878_s0 + %s4020_s15]]   ;;  %s4023_s1 = smov 13  }
   0xc   :  { %s4105_s24 = sld [smem:[%s4878_s0 + %s4021_s20]]   ;;  %s4024_s7 = smov 14  }
   0xd   :  { %s4110_s30 = sld [smem:[%s4878_s0 + %s4022_s26]]   ;;  %s4025_s15 = smov 15  }
   0xe   :  { %s4115_s6 = sld [smem:[%s4878_s0 + %s4023_s1]]   ;;  %s4026_s22 = smov 16  }
   0xf   :  { %s4120_s12 = sld [smem:[%s4878_s0 + %s4024_s7]]   ;;  %s4027_s28 = smov 17  }
  0x10   :  { %s4125_s20 = sld [smem:[%s4878_s0 + %s4025_s15]]   ;;  %s4028_s7 = smov 18  }
  0x11   :  { %4895 = sst [smem:[#allocation2_spill]] %s4100_s19  ;;  %s4029_s15 = smov 19  }
  0x12   :  { %4896 = sst [smem:[#allocation3_spill]] %s4105_s24 }
  0x13   :  { %s4130_s27 = sld [smem:[%s4878_s0 + %s4026_s22]]   ;;  %s4030_s22 = smov 20  }
  0x14   :  { %4897 = sst [smem:[#allocation4_spill]] %s4115_s6 }
  0x15   :  { %s4135_s4 = sld [smem:[%s4878_s0 + %s4027_s28]]   ;;  %s4031_s28 = smov 21  }
  0x16   :  { %4898 = sst [smem:[#allocation5_spill]] %s4125_s20 }
  0x17   :  { %s4140_s24 = sld [smem:[%s4878_s0 + %s4028_s7]]   ;;  %s4032_s7 = smov 22  }
  0x18   :  { %s4145_s19 = sld [smem:[%s4878_s0 + %s4029_s15]]   ;;  %s4033_s15 = smov 23  }
  0x19   :  { %s4150_s20 = sld [smem:[%s4878_s0 + %s4030_s22]]   ;;  %s4034_s22 = smov 24  }
  0x1a   :  { %s4155_s6 = sld [smem:[%s4878_s0 + %s4031_s28]]   ;;  %s4035_s28 = smov 25  }
  0x1d   :  { %4899 = sst [smem:[#allocation6_spill]] %s4140_s24 }
  0x1e   :  { %4900 = sst [smem:[#allocation7_spill]] %s4145_s19 }
  0x1f   :  { %4901 = sst [smem:[#allocation8_spill]] %s4150_s20 }
  0x20   :  { %4902 = sst [smem:[#allocation9_spill]] %s4155_s6 }
  0x21   :  { %s4160_s24 = sld [smem:[%s4878_s0 + %s4032_s7]]   ;;  %s4036_s7 = smov 26  }
  0x22   :  { %s4165_s19 = sld [smem:[%s4878_s0 + %s4033_s15]]   ;;  %s4037_s15 = smov 27  }
  0x23   :  { %s4170_s20 = sld [smem:[%s4878_s0 + %s4034_s22]]   ;;  %s4038_s22 = smov 28  }
  0x24   :  { %s4175_s6 = sld [smem:[%s4878_s0 + %s4035_s28]]   ;;  %s4039_s28 = smov 29  }
  0x27   :  { %4903 = sst [smem:[#allocation10_spill]] %s4160_s24 }
  0x28   :  { %4904 = sst [smem:[#allocation11_spill]] %s4165_s19 }
  0x29   :  { %4905 = sst [smem:[#allocation12_spill]] %s4170_s20 }
  0x2a   :  { %4906 = sst [smem:[#allocation13_spill]] %s4175_s6 }
  0x2b   :  { %s4180_s24 = sld [smem:[%s4878_s0 + %s4036_s7]]   ;;  %s4197_s7 = smov 0  }
  0x2c   :  { %s4185_s19 = sld [smem:[%s4878_s0 + %s4037_s15]]  }
  0x2d   :  { %s4190_s20 = sld [smem:[%s4878_s0 + %s4038_s22]]  }
  0x2e   :  { %s4195_s6 = sld [smem:[%s4878_s0 + %s4039_s28]]  }
  0x2f LB: > { %s3607_s10 = sadd.s32 4294967295, %s4009_s7   ;;  %p3611_p0 = scmp.ge.s32.totalorder %s4009_s7, 1  ;;  %s4009_s7 = sphi %s4197_s7, %s69_s7  }
  0x30   : > { %p817_p1 = scmp.lt.s32.totalorder %s4009_s7, 3 }
  0x32   : > { %p818_p2 = pnand %p3611_p0, %p817_p1 }
  0x33   : > { %p893_p3 = scmp.lt.s32.totalorder (!%p818_p2), %s3607_s10, 1  ;;  %s4911_s15 = sld [smem:[#allocation4_spill]] (!%p818_p2) }
  0x34   : > { %821 = sbr.rel (%p818_p2) target bundleno = 5862 (0x16e6), region = 136  ;;  %s4912_s16 = sld [smem:[#allocation6_spill]] (!%p818_p2) }
  0x35   : > { %s4913_s18 = sld [smem:[#allocation5_spill]] (!%p818_p2) }
  0x36   : > { %s4914_s22 = sld [smem:[#allocation2_spill]] (!%p818_p2) }
  0x37   : > { %s4915_s23 = sld [smem:[#allocation7_spill]] (!%p818_p2) }
  0x38   : > { %s4916_s26 = sld [smem:[#allocation8_spill]] (!%p818_p2) }
  0x39   : > { %v910_v0 = vld [vmem:[%s4055_s9 + $0x18] sm:$0xff]  ;;  %v909_v1 = vld [vmem:[%s4055_s9 + $0x10] sm:$0xff]  ;;  %vm975_vm0 = vcmask 1041408   ;;  %v908_v2 = vld [vmem:[%s4055_s9 + $0x8] sm:$0xff]  ;;  %vm911_vm1 = vcmask 261120   ;;  %s4925_s10 = smov (!%p893_p3, %s3607_s10), 1 }
  0x3a   : > { %936 = vmatpush.msra.mxu0 %v910_v0  ;;  %v961_v3 = vld [vmem:[%s4060_s13 + $0x20] sm:$0x3]  ;;  %v960_v4 = vld [vmem:[%s4060_s13 + $0x18] sm:$0xff]  ;;  %v959_v5 = vld [vmem:[%s4060_s13 + $0x10] sm:$0xff]  ;;  %s4891_s0 = sshll.u32 %s4925_s10, 5  ;;  %vm962_vm2 = vcmask 277504  }
  0x3b   : > { %3620 = vmatpush.msk.msra.mxu1 %vm975_vm0, %v961_v3  ;;  %v907_v6 = vld [vmem:[%s4055_s9] sm:$0xff]  ;;  %s897_s11 = scalar_lea.vmem %s4050_s5, %s4891_s0  ;;  %v958_v11 = vld [vmem:[%s4060_s13 + $0x8] sm:$0xff]  ;;  %vm1024_vm3 = vcmask 130048   ;;  %v4040_v47 = vmov 4.0   ;;  %s4917_s28 = sld [smem:[#allocation11_spill]] }
  0x3c   : > { %937 = vmatpush.msra.mxu0 %v909_v1  ;;  %v903_v7 = vld [vmem:[%s897_s11] sm:$0xff]  ;;  %v904_v8 = vld [vmem:[%s897_s11 + $0x8] sm:$0xff]  ;;  %v905_v9 = vld [vmem:[%s897_s11 + $0x10] sm:$0xff]  ;;  %s4918_s1 = sld [smem:[#allocation9_spill]] }
  0x3d   : > { %991 = vmatpush.msra.mxu1 %v960_v4  ;;  %v906_v10 = vld [vmem:[%s897_s11 + $0x18] sm:$0xff]  ;;  %v957_v12 = vld [vmem:[%s4060_s13] sm:$0xff]  ;;  %s4919_s2 = sld [smem:[#allocation10_spill]] }
  0x3e   : > { %938 = vmatpush.msra.mxu0 %v908_v2  ;;  %s4920_s11 = sld [smem:[#allocation12_spill]] }
  0x3f   : > { %992 = vmatpush.msra.mxu1 %v959_v5  ;;  %s4921_s0 = sld [smem:[#allocation13_spill]] }
  0x40   : > { %939 = vmatpush.msra.mxu0 %v907_v6 }
  0x41   : > { %3616 = vmatmul.msk.f32.vlgmr.msra.gmra.mxu0 %vm911_vm1, %v903_v7  ;;  %993 = vmatpush.msra.mxu1 %v958_v11 }
  0x43   : > { %994 = vmatpush.msra.mxu1 %v957_v12 }
  0x49   : > { %3617 = vmatmul.msk.f32.gmra.mxu0 %vm911_vm1, %v904_v8 }
  0x51   : > { %3618 = vmatmul.msk.f32.gmra.mxu0 %vm911_vm1, %v905_v9 }
  0x59   : > { %3619 = vmatmul.msk.f32.gmra.mxu0 %vm911_vm1, %v906_v10 }
  0xbe   : > { %v941_v13 = vpop.f32.mrf.mxu0 }
  0xbf   : > { %v953_v14 = vmul.f32 %v941_v13, %v941_v13 }
  0xc1   : > { %3621 = vmatmul.msk.f32.vlgmr.msra.gmra.mxu1 %vm962_vm2, %v953_v14  ;;  %v1066_v14 = vld [vmem:[%s4065_s17] sm:$0xff] }
  0xc6   : > { %v944_v15 = vpop.f32.mrf.mxu0 }
  0xc7   : > { %v954_v16 = vmul.f32 %v944_v15, %v944_v15  ;;  %v3630_v15 = vld [vmem:[%s4065_s17 + $0x20] sm:$0xff] }
  0xc9   : > { %3622 = vmatmul.msk.f32.gmra.mxu1 %vm962_vm2, %v954_v16  ;;  %v3632_v16 = vld [vmem:[%s4065_s17 + $0x30] sm:$0xff] }
  0xce   : > { %v947_v17 = vpop.f32.mrf.mxu0 }
  0xcf   : > { %v955_v18 = vmul.f32 %v947_v17, %v947_v17  ;;  %v1067_v17 = vld [vmem:[%s4065_s17 + $0x8] sm:$0xff] }
  0xd1   : > { %3623 = vmatmul.msk.f32.gmra.mxu1 %vm962_vm2, %v955_v18  ;;  %v3631_v18 = vld [vmem:[%s4065_s17 + $0x28] sm:$0xff] }
  0xd6   : > { %v950_v19 = vpop.f32.mrf.mxu0 }
  0xd7   : > { %v956_v20 = vmul.f32 %v950_v19, %v950_v19  ;;  %v3633_v19 = vld [vmem:[%s4065_s17 + $0x38] sm:$0xff] }
  0xd9   : > { %3624 = vmatmul.msk.f32.gmra.mxu1 %vm962_vm2, %v956_v20  ;;  %v3639_v20 = vld [vmem:[%s4070_s21 + $0x18] sm:$0xff] }
  0xda   : > { %1188 = vmatpush.msrb.mxu0 %v3639_v20 }
 0x13e   : > { %v996_v21 = vpop.f32.mrf.mxu1 }
 0x13f   : > { %v1008_v22 = vmax.f32 %v996_v21, 1e-10  ;;  %v1068_v21 = vld [vmem:[%s4065_s17 + $0x10] sm:$0xff] }
 0x141   : > { %3886 = vlog2.f32 %v1008_v22  ;;  %v3648_v22 = vld [vmem:[%s4065_s17 + $0x40] sm:$0xff] }
 0x146   : > { %v999_v23 = vpop.f32.mrf.mxu1 }
 0x147   : > { %v3887_v24 = vpop.eup %3886  ;;  %v1009_v25 = vmax.f32 %v999_v23, 1e-10  ;;  %v1069_v23 = vld [vmem:[%s4065_s17 + $0x18] sm:$0xff] }
 0x148   : > { %v1013_v26 = vmul.f32 0.6931472, %v3887_v24  ;;  %v3649_v24 = vld [vmem:[%s4065_s17 + $0x48] sm:$0xff] }
 0x149   : > { %3888 = vlog2.f32 %v1009_v25  ;;  %v3650_v25 = vld [vmem:[%s4065_s17 + $0x50] sm:$0xff] }
 0x14a   : > { %v1020_v27 = vmul.f32 0.4342945, %v1013_v26  ;;  %v3651_v26 = vld [vmem:[%s4065_s17 + $0x58] sm:$0xff] }
 0x14c   : > { %v1025_v28 = vsel %vm1024_vm3, %v1020_v27, -inf }
 0x14d   : > { %1026 = vmax.xlane.f32.xlu0 %v1025_v28  ;;  %v1112_v28 = vld [vmem:[%s4070_s21 + $0x8] sm:$0xff] }
 0x14e   : > { %v1002_v29 = vpop.f32.mrf.mxu1 }
 0x14f   : > { %v3889_v30 = vpop.eup %3888  ;;  %v1010_v31 = vmax.f32 %v1002_v29, 1e-10  ;;  %v1111_v29 = vld [vmem:[%s4070_s21] sm:$0xff] }
 0x150   : > { %v1015_v32 = vmul.f32 0.6931472, %v3889_v30  ;;  %v3657_v30 = vld [vmem:[%s4070_s21 + $0x28] sm:$0xff] }
 0x151   : > { %3890 = vlog2.f32 %v1010_v31  ;;  %v3656_v31 = vld [vmem:[%s4070_s21 + $0x20] sm:$0xff] }
 0x152   : > { %v1021_v33 = vmul.f32 0.4342945, %v1015_v32 }
 0x154   : > { %v1028_v34 = vsel %vm1024_vm3, %v1021_v33, -inf }
 0x155   : > { %1029 = vmax.xlane.f32.xlu0 %v1028_v34 }
 0x156   : > { %v1005_v35 = vpop.f32.mrf.mxu1 }
 0x157   : > { %v3891_v36 = vpop.eup %3890  ;;  %v1011_v37 = vmax.f32 %v1005_v35, 1e-10 }
 0x158   : > { %v1017_v38 = vmul.f32 0.6931472, %v3891_v36 }
 0x159   : > { %3892 = vlog2.f32 %v1011_v37 }
 0x15a   : > { %v1022_v39 = vmul.f32 0.4342945, %v1017_v38  ;;  %3894 = vrcp.f32 %v4040_v47  ;;  %v3860_v47 = vld [vmem:[%s4075_s25] ss:$0 sm:$0xff] }
 0x15c   : > { %v1031_v40 = vsel %vm1024_vm3, %v1022_v39, -inf }
 0x15d   : > { %1032 = vmax.xlane.f32.xlu1 %v1031_v40 }
 0x15f   : > { %v3893_v41 = vpop.eup %3892 }
 0x160   : > { %v1019_v42 = vmul.f32 0.6931472, %v3893_v41  ;;  %v3895_v50 = vpop.eup %3894 }
 0x161   : > { %v1056_v54 = vmul.f32 4.0, %v3895_v50  ;;  %vm1060_vm4 = vweird.f32 %v3895_v50 }
 0x162   : > { %v1023_v43 = vmul.f32 0.4342945, %v1019_v42 }
 0x163   : > { %v1057_v57 = vsub.f32 1.0, %v1056_v54 }
 0x164   : > { %v1034_v44 = vsel %vm1024_vm3, %v1023_v43, -inf }
 0x165   : > { %1035 = vmax.xlane.f32.xlu1 %v1034_v44  ;;  %v1058_v60 = vmul.f32 %v3895_v50, %v1057_v57 }
 0x167   : > { %v1059_v63 = vadd.f32 %v3895_v50, %v1058_v60 }
 0x169   : > { %v1061_v4 = vsel %vm1060_vm4, %v3895_v50, %v1059_v63 }
 0x1c0   : > { %v1027_v45 = vpop.xlane.xlu0 %1026 }
 0x1c8   : > { %v1030_v48 = vpop.xlane.xlu0 %1029 }
 0x1c9   : > { %v1037_v51 = vmax.f32 %v1027_v45, %v1030_v48 }
 0x1d0   : > { %v1033_v46 = vpop.xlane.xlu1 %1032 }
 0x1d8   : > { %v1036_v49 = vpop.xlane.xlu1 %1035 }
 0x1d9   : > { %v1038_v52 = vmax.f32 %v1033_v46, %v1036_v49 }
 0x1db   : > { %v1039_v53 = vmax.f32 %v1037_v51, %v1038_v52 }
 0x1dd   : > { %v1040_v55 = vrot.slane %v1039_v53, 4 }
 0x1df   : > { %v1041_v56 = vmax.f32 %v1039_v53, %v1040_v55 }
 0x1e1   : > { %v1042_v58 = vrot.slane %v1041_v56, 2 }
 0x1e3   : > { %v1043_v59 = vmax.f32 %v1041_v56, %v1042_v58 }
 0x1e5   : > { %v1044_v61 = vrot.slane %v1043_v59, 1 }
 0x1e7   : > { %v1045_v62 = vmax.f32 %v1043_v59, %v1044_v61 }
 0x1e9   : > { %v3625_v0 = vadd.f32 -8.0, %v1045_v62 }
 0x1eb   : > { %v1050_v1 = vmax.f32 %v1023_v43, %v3625_v0  ;;  %v1049_v2 = vmax.f32 %v1022_v39, %v3625_v0  ;;  %v1048_v3 = vmax.f32 %v1021_v33, %v3625_v0  ;;  %v1047_v7 = vmax.f32 %v1020_v27, %v3625_v0  ;;  %v3638_v27 = vld [vmem:[%s4070_s21 + $0x10] sm:$0xff] }
 0x1ec   : > { %1189 = vmatpush.msrb.mxu0 %v3638_v27 }
 0x1ed   : > { %v1054_v5 = vadd.f32 4.0, %v1050_v1  ;;  %v1053_v6 = vadd.f32 4.0, %v1049_v2  ;;  %v1052_v9 = vadd.f32 4.0, %v1048_v3  ;;  %v1051_v11 = vadd.f32 4.0, %v1047_v7 }
 0x1ef   : > { %v1065_v8 = vmul.f32 %v1061_v4, %v1054_v5  ;;  %v1064_v10 = vmul.f32 %v1061_v4, %v1053_v6  ;;  %v1063_v12 = vmul.f32 %v1061_v4, %v1052_v9  ;;  %v1062_v13 = vmul.f32 %v1061_v4, %v1051_v11 }
 0x1f1   : > { %1094 = vmatpush.msra.mxu2 %v1065_v8  ;;  %1142 = vmatpush.msrb.mxu1 %v1065_v8 }
 0x1f2   : > { %3816 = vmatpush.msra.mxu3 %v1065_v8 }
 0x1f3   : > { %1095 = vmatpush.msra.mxu2 %v1064_v10  ;;  %1143 = vmatpush.msrb.mxu1 %v1064_v10 }
 0x1f4   : > { %3817 = vmatpush.msra.mxu3 %v1064_v10 }
 0x1f5   : > { %1096 = vmatpush.msra.mxu2 %v1063_v12  ;;  %1144 = vmatpush.msrb.mxu1 %v1063_v12 }
 0x1f6   : > { %3818 = vmatpush.msra.mxu3 %v1063_v12 }
 0x1f7   : > { %1097 = vmatpush.msra.mxu2 %v1062_v13  ;;  %1145 = vmatpush.msrb.mxu1 %v1062_v13 }
 0x1f8   : > { %3819 = vmatpush.msra.mxu3 %v1062_v13  ;;  %3626 = vmatmul.msk.f32.vlgmr.msra.gmra.mxu2 %vm911_vm1, %v1066_v14 }
 0x1f9   : > { %3634 = vmatmul.msk.f32.vlgmr.msrb.gmra.mxu1 %vm911_vm1, %v3630_v15  ;;  %3636 = vmatmul.msk.f32.vlgmr.msra.gmra.mxu3 %vm911_vm1, %v3632_v16 }
 0x1fa   : > { %1273 = vmatpush.msrb.mxu3 %v1065_v8  ;;  %1229 = vmatpush.msrb.mxu2 %v1112_v28 }
 0x1fb   : > { %1319 = vmatpush.msra.mxu1 %v3657_v30 }
 0x1fc   : > { %1274 = vmatpush.msrb.mxu3 %v1064_v10  ;;  %1230 = vmatpush.msrb.mxu2 %v1111_v29 }
 0x1fd   : > { %1320 = vmatpush.msra.mxu1 %v3656_v31 }
 0x1fe   : > { %1275 = vmatpush.msrb.mxu3 %v1063_v12 }
 0x200   : > { %1276 = vmatpush.msrb.mxu3 %v1062_v13  ;;  %3627 = vmatmul.msk.f32.gmra.mxu2 %vm911_vm1, %v1067_v17 }
 0x201   : > { %3635 = vmatmul.msk.f32.gmra.mxu1 %vm911_vm1, %v3631_v18  ;;  %3637 = vmatmul.msk.f32.gmra.mxu3 %vm911_vm1, %v3633_v19 }
 0x208   : > { %3628 = vmatmul.msk.f32.gmra.mxu2 %vm911_vm1, %v1068_v21 }
 0x209   : > { %3652 = vmatmul.msk.f32.vlgmr.msrb.gmra.mxu3 %vm911_vm1, %v3648_v22 }
 0x210   : > { %3629 = vmatmul.msk.f32.gmra.mxu2 %vm911_vm1, %v1069_v23 }
 0x211   : > { %3653 = vmatmul.msk.f32.gmra.mxu3 %vm911_vm1, %v3649_v24 }
 0x219   : > { %3654 = vmatmul.msk.f32.gmra.mxu3 %vm911_vm1, %v3650_v25 }
 0x221   : > { %3655 = vmatmul.msk.f32.gmra.mxu3 %vm911_vm1, %v3651_v26 }
 0x276   : > { %v1147_v32 = vpop.f32.mrf.mxu1 }
 0x277   : > { %3640 = vmatmul.msk.f32.vlgmr.msrb.gmra.mxu0 %vm1024_vm3, %v1147_v32 }
 0x27b   : > { %v1099_v33 = vpop.f32.mrf.mxu2 }
 0x27c   : > { %v1153_v34 = vpop.f32.mrf.mxu3  ;;  %3644 = vmatmul.msk.f32.vlgmr.msrb.gmra.mxu2 %vm1024_vm3, %v1099_v33 }
 0x27e   : > { %v1150_v35 = vpop.f32.mrf.mxu1 }
 0x27f   : > { %3641 = vmatmul.msk.f32.gmra.mxu0 %vm1024_vm3, %v1150_v35 }
 0x283   : > { %v1102_v36 = vpop.f32.mrf.mxu2 }
 0x284   : > { %v1156_v37 = vpop.f32.mrf.mxu3  ;;  %3645 = vmatmul.msk.f32.gmra.mxu2 %vm1024_vm3, %v1102_v36 }
 0x287   : > { %3642 = vmatmul.msk.f32.gmra.mxu0 %vm1024_vm3, %v1153_v34 }
 0x28b   : > { %v1105_v38 = vpop.f32.mrf.mxu2 }
 0x28c   : > { %v1278_v39 = vpop.f32.mrf.mxu3  ;;  %3646 = vmatmul.msk.f32.gmra.mxu2 %vm1024_vm3, %v1105_v38 }
 0x28d   : > { %3658 = vmatmul.msk.f32.vlgmr.msra.gmra.mxu1 %vm1024_vm3, %v1278_v39 }
 0x28f   : > { %3643 = vmatmul.msk.f32.gmra.mxu0 %vm1024_vm3, %v1156_v37 }
 0x293   : > { %v1108_v40 = vpop.f32.mrf.mxu2 }
 0x294   : > { %v1281_v41 = vpop.f32.mrf.mxu3  ;;  %3647 = vmatmul.msk.f32.gmra.mxu2 %vm1024_vm3, %v1108_v40 }
 0x295   : > { %3659 = vmatmul.msk.f32.gmra.mxu1 %vm1024_vm3, %v1281_v41 }
 0x29c   : > { %v1284_v42 = vpop.f32.mrf.mxu3 }
 0x29d   : > { %3660 = vmatmul.msk.f32.gmra.mxu1 %vm1024_vm3, %v1284_v42 }
 0x2a4   : > { %v1287_v43 = vpop.f32.mrf.mxu3 }
 0x2a5   : > { %3661 = vmatmul.msk.f32.gmra.mxu1 %vm1024_vm3, %v1287_v43 }
 0x2f4   : > { %v1191_v45 = vpop.f32.mrf.mxu0 }
 0x2fc   : > { %v1194_v51 = vpop.f32.mrf.mxu0 }
 0x2ff   : > { %v1232_v44 = vpop.f32.mrf.mxu2 }
 0x300   : > { %v1233_v46 = vadd.f32 %v1232_v44, %v1191_v45 }
 0x304   : > { %v1197_v62 = vpop.f32.mrf.mxu0 }
 0x307   : > { %v1235_v48 = vpop.f32.mrf.mxu2 }
 0x308   : > { %v1236_v53 = vadd.f32 %v1235_v48, %v1194_v51 }
 0x30a   : > { %v1322_v49 = vpop.f32.mrf.mxu1 }
 0x30b   : > { %v1334_v50 = vadd.f32 %v1322_v49, %v1233_v46 }
 0x30c   : > { %v1200_v13 = vpop.f32.mrf.mxu0 }
 0x30d   : > { %v4271_v52 = vadd.f32 %v3860_v47, %v1334_v50 }
 0x30f   : > { %v4274_v54 = vmul.f32 0.70710677, %v4271_v52  ;;  %v1238_v59 = vpop.f32.mrf.mxu2 }
 0x310   : > { %v1239_v1 = vadd.f32 %v1238_v59, %v1197_v62 }
 0x311   : > { %v1354_v55 = vmul.f32 %v4274_v54, %v4274_v54 }
 0x312   : > { %v1325_v56 = vpop.f32.mrf.mxu1 }
 0x313   : > { %v4278_v57 = vmin.f32 %v1354_v55, 16.0  ;;  %v1335_v58 = vadd.f32 %v1325_v56, %v1236_v53 }
 0x315   : > { %v4280_v60 = vadd.f32 %v3860_v47, %v1335_v58  ;;  %v1367_v61 = vmul.f32 3.8918573e-05, %v4278_v57  ;;  %v1356_v12 = vmul.f32 2.1237322e-06, %v4278_v57 }
 0x317   : > { %v4284_v63 = vmul.f32 0.70710677, %v4280_v60  ;;  %v1368_v0 = vadd.f32 0.001143296, %v1367_v61  ;;  %v1241_v10 = vpop.f32.mrf.mxu2  ;;  %v1357_v22 = vadd.f32 0.00028619796, %v1356_v12 }
 0x318   : > { %v1242_v17 = vadd.f32 %v1241_v10, %v1200_v13 }
 0x319   : > { %v1394_v2 = vmul.f32 %v4284_v63, %v4284_v63  ;;  %v1369_v4 = vmul.f32 %v1368_v0, %v4278_v57  ;;  %v1358_v32 = vmul.f32 %v1357_v22, %v4278_v57 }
 0x31a   : > { %v1328_v3 = vpop.f32.mrf.mxu1 }
 0x31b   : > { %v4289_v5 = vmin.f32 %v1394_v2, 16.0  ;;  %v1336_v6 = vadd.f32 %v1328_v3, %v1239_v1  ;;  %v1370_v7 = vadd.f32 0.014752088, %v1369_v4  ;;  %v1359_v41 = vadd.f32 0.0036580483, %v1358_v32 }
 0x31d   : > { %v4291_v8 = vadd.f32 %v3860_v47, %v1336_v6  ;;  %v1407_v9 = vmul.f32 3.8918573e-05, %v4289_v5  ;;  %v1371_v11 = vmul.f32 %v1370_v7, %v4278_v57  ;;  %v1396_v26 = vmul.f32 2.1237322e-06, %v4289_v5 }
 0x31e   : > { %v1360_v53 = vmul.f32 %v1359_v41, %v4278_v57 }
 0x31f   : > { %v4297_v14 = vmul.f32 0.70710677, %v4291_v8  ;;  %v1408_v15 = vadd.f32 0.001143296, %v1407_v9  ;;  %v1372_v16 = vadd.f32 0.112945676, %v1371_v11 }
 0x320   : > { %v1397_v36 = vadd.f32 0.00028619796, %v1396_v26  ;;  %v1361_v3 = vadd.f32 0.05243302, %v1360_v53 }
 0x321   : > { %v1434_v18 = vmul.f32 %v4297_v14, %v4297_v14  ;;  %v1409_v20 = vmul.f32 %v1408_v15, %v4289_v5  ;;  %v1373_v21 = vmul.f32 %v1372_v16, %v4278_v57 }
 0x322   : > { %v1331_v19 = vpop.f32.mrf.mxu1  ;;  %v1398_v46 = vmul.f32 %v1397_v36, %v4289_v5  ;;  %v1362_v13 = vmul.f32 %v1361_v3, %v4278_v57 }
 0x323   : > { %v1337_v23 = vadd.f32 %v1331_v19, %v1242_v17  ;;  %v4303_v24 = vmin.f32 %v1434_v18, 16.0  ;;  %v1410_v25 = vadd.f32 0.014752088, %v1409_v20  ;;  %v1374_v31 = vadd.f32 0.4994258, %v1373_v21 }
 0x324   : > { %v1399_v61 = vadd.f32 0.0036580483, %v1398_v46 }
 0x325   : > { %v4306_v27 = vadd.f32 %v3860_v47, %v1337_v23  ;;  %v1436_v28 = vmul.f32 2.1237322e-06, %v4303_v24  ;;  %v1447_v29 = vmul.f32 3.8918573e-05, %v4303_v24  ;;  %v1411_v30 = vmul.f32 %v1410_v25, %v4289_v5 }
 0x326   : > { %v1375_v40 = vmul.f32 %v1374_v31, %v4278_v57  ;;  %v1400_v9 = vmul.f32 %v1399_v61, %v4289_v5  ;;  %v1363_v25 = vadd.f32 0.18741608, %v1362_v13 }
 0x327   : > { %v1437_v33 = vadd.f32 0.00028619796, %v1436_v28  ;;  %v4313_v34 = vmul.f32 0.70710677, %v4306_v27  ;;  %v1448_v35 = vadd.f32 0.001143296, %v1447_v29 }
 0x328   : > { %v1412_v37 = vadd.f32 0.112945676, %v1411_v30  ;;  %v4327_v51 = vadd.f32 1.0, %v1375_v40  ;;  %v1401_v20 = vadd.f32 0.05243302, %v1400_v9 }
 0x329   : > { %v1474_v38 = vmul.f32 %v4313_v34, %v4313_v34  ;;  %v1449_v39 = vmul.f32 %v1448_v35, %v4303_v24  ;;  %v1438_v43 = vmul.f32 %v1437_v33, %v4303_v24  ;;  %v1364_v35 = vmul.f32 %v1363_v25, %v4278_v57 }
 0x32a   : > { %v1413_v42 = vmul.f32 %v1412_v37, %v4289_v5  ;;  %3896 = vrcp.f32 %v4327_v51  ;;  %v1402_v31 = vmul.f32 %v1401_v20, %v4289_v5  ;;  %vm1382_vm5 = vweird.f32 %v4327_v51 }
 0x32b   : > { %v4321_v44 = vmin.f32 %v1474_v38, 16.0  ;;  %v1450_v45 = vadd.f32 0.014752088, %v1449_v39  ;;  %v1439_v56 = vadd.f32 0.0036580483, %v1438_v43  ;;  %v1388_v57 = vand.u32 2147483648, %v4327_v51 }
 0x32c   : > { %v1414_v47 = vadd.f32 0.4994258, %v1413_v42  ;;  %v1403_v41 = vadd.f32 0.18741608, %v1402_v31  ;;  %v1365_v43 = vadd.f32 1.1283791, %v1364_v35 }
 0x32d   : > { %v1476_v48 = vmul.f32 2.1237322e-06, %v4321_v44  ;;  %v1487_v49 = vmul.f32 3.8918573e-05, %v4321_v44  ;;  %v1451_v50 = vmul.f32 %v1450_v45, %v4303_v24  ;;  %v1440_v6 = vmul.f32 %v1439_v56, %v4303_v24 }
 0x32e   : > { %v1415_v55 = vmul.f32 %v1414_v47, %v4289_v5 }
 0x32f   : > { %v1477_v58 = vadd.f32 0.00028619796, %v1476_v48  ;;  %v1488_v59 = vadd.f32 0.001143296, %v1487_v49  ;;  %v1452_v62 = vadd.f32 0.112945676, %v1451_v50  ;;  %v1404_v49 = vmul.f32 %v1403_v41, %v4289_v5 }
 0x330   : > { %v4331_v0 = vadd.f32 1.0, %v1415_v55  ;;  %v4343_v16 = vpop.eup %3896  ;;  %v1441_v17 = vadd.f32 0.05243302, %v1440_v6  ;;  %v1386_v55 = vand.u32 2147483647, %v4327_v51 }
 0x331   : > { %v1478_v1 = vmul.f32 %v1477_v58, %v4321_v44  ;;  %v1489_v2 = vmul.f32 %v1488_v59, %v4321_v44  ;;  %v1453_v4 = vmul.f32 %v1452_v62, %v4303_v24  ;;  %v1378_v30 = vmul.f32 %v4343_v16, %v4327_v51 }
 0x332   : > { %3898 = vrcp.f32 %v4331_v0  ;;  %v1442_v28 = vmul.f32 %v1441_v17, %v4303_v24  ;;  %v1426_v58 = vand.u32 2147483647, %v4331_v0  ;;  %v1428_v59 = vand.u32 2147483648, %v4331_v0 }
 0x333   : > { %v1490_v7 = vadd.f32 0.014752088, %v1489_v2  ;;  %v1479_v10 = vadd.f32 0.0036580483, %v1478_v1  ;;  %v1454_v11 = vadd.f32 0.4994258, %v1453_v4  ;;  %vm1422_vm8 = vweird.f32 %v4331_v0 }
 0x334   : > { %v1443_v37 = vadd.f32 0.18741608, %v1442_v28  ;;  %v1379_v39 = vsub.f32 1.0, %v1378_v30  ;;  %vm1383_vm9 = vweird.f32 %v4343_v16  ;;  %v1405_v9 = vadd.f32 1.1283791, %v1404_v49  ;;  %v3668_v49 = vld [vmem:[%s4080_s29 + $0x10] sm:$0xff] }
 0x335   : > { %v1491_v12 = vmul.f32 %v1490_v7, %v4321_v44  ;;  %v1455_v15 = vmul.f32 %v1454_v11, %v4303_v24  ;;  %v1480_v21 = vmul.f32 %v1479_v10, %v4321_v44  ;;  %vm1427_vm13 = vcmp.eq.f32.partialorder %v1426_v58, 8.507059e+37  ;;  %vm4390_vm15 = vmor %vm1382_vm5, %vm1383_vm9  ;;  %v3674_v58 = vld [vmem:[%s4085_s3 + $0x30] sm:$0xff] }
 0x336   : > { %v1444_v47 = vmul.f32 %v1443_v37, %v4303_v24  ;;  %v1380_v48 = vmul.f32 %v4343_v16, %v1379_v39  ;;  %vm1387_vm2 = vcmp.eq.f32.partialorder %v1386_v55, 8.507059e+37  ;;  %v1389_v51 = vor.u32 1.1754944e-38, %v1388_v57  ;;  %v1522_v57 = vld [vmem:[%s4080_s29] sm:$0xff]  ;;  %v1556_v55 = vld [vmem:[%s4085_s3 + $0x18] sm:$0xff] }
 0x337   : > { %v1492_v18 = vadd.f32 0.112945676, %v1491_v12  ;;  %v1456_v22 = vadd.f32 1.0, %v1455_v15  ;;  %v1481_v32 = vadd.f32 0.05243302, %v1480_v21  ;;  %v1406_v25 = vmul.f32 %v1405_v9, %v4284_v63  ;;  %1641 = vmatpush.msrb.mxu1 %v1556_v55 }
 0x338   : > { %v4345_v19 = vpop.eup %3898  ;;  %v1445_v2 = vadd.f32 1.1283791, %v1444_v47  ;;  %v1381_v5 = vadd.f32 %v4343_v16, %v1380_v48  ;;  %v1366_v28 = vmul.f32 %v1365_v43, %v4274_v54  ;;  %v1348_v54 = vmul.f32 0.5, %v4291_v8 }
 0x339   : > { %v1493_v23 = vmul.f32 %v1492_v18, %v4321_v44  ;;  %3900 = vrcp.f32 %v1456_v22  ;;  %v1418_v26 = vmul.f32 %v4345_v19, %v4331_v0  ;;  %v1482_v42 = vmul.f32 %v1481_v32, %v4321_v44 }
 0x33a   : > { %v1468_v56 = vand.u32 2147483648, %v1456_v22  ;;  %vm1423_vm6 = vweird.f32 %v4345_v19  ;;  %v1466_v61 = vand.u32 2147483647, %v1456_v22  ;;  %vm1462_vm10 = vweird.f32 %v1456_v22 }
 0x33b   : > { %v1494_v29 = vadd.f32 0.4994258, %v1493_v23  ;;  %v1419_v36 = vsub.f32 1.0, %v1418_v26  ;;  %v1483_v50 = vadd.f32 0.18741608, %v1482_v42  ;;  %vm4379_vm11 = vmor %vm1422_vm8, %vm1423_vm6  ;;  %v1429_v0 = vor.u32 1.1754944e-38, %v1428_v59 }
 0x33c   : > { %v1469_v10 = vor.u32 1.1754944e-38, %v1468_v56  ;;  %vm1467_vm14 = vcmp.eq.f32.partialorder %v1466_v61, 8.507059e+37  ;;  %v1446_v15 = vmul.f32 %v1445_v2, %v4297_v14  ;;  %v1385_v20 = vsel %vm4390_vm15, %v4343_v16, %v1381_v5  ;;  %v3675_v56 = vld [vmem:[%s4085_s3 + $0x38] sm:$0xff]  ;;  %v1555_v59 = vld [vmem:[%s4085_s3 + $0x10] sm:$0xff]  ;;  %v1553_v61 = vld [vmem:[%s4085_s3] sm:$0xff] }
 0x33d   : > { %v1495_v33 = vmul.f32 %v1494_v29, %v4321_v44  ;;  %v1420_v46 = vmul.f32 %v4345_v19, %v1419_v36  ;;  %v1484_v3 = vmul.f32 %v1483_v50, %v4321_v44  ;;  %v1390_v30 = vsel %vm1387_vm2, %v1389_v51, %v1385_v20  ;;  %v3680_v50 = vld [vmem:[%s4080_s29 + $0x20] sm:$0xff]  ;;  %1612 = vmatpush.msra.mxu3 %v3675_v56  ;;  %v3687_v2 = vld [vmem:[%s4085_s3 + $0x58] sm:$0xff]  ;;  %v3686_v5 = vld [vmem:[%s4085_s3 + $0x50] sm:$0xff] }
 0x33e   : > { %v1391_v37 = vmul.f32 %v1390_v30, %v1366_v28  ;;  %v1346_v48 = vmul.f32 0.5, %v4271_v52  ;;  %v1523_v52 = vld [vmem:[%s4080_s29 + $0x8] sm:$0xff]  ;;  %1642 = vmatpush.msrb.mxu1 %v1555_v59 }
 0x33f   : > { %v4357_v38 = vadd.f32 1.0, %v1495_v33  ;;  %v3901_v40 = vpop.eup %3900  ;;  %v1421_v62 = vadd.f32 %v4345_v19, %v1420_v46  ;;  %v1485_v21 = vadd.f32 1.1283791, %v1484_v3  ;;  %1613 = vmatpush.msra.mxu3 %v3674_v58  ;;  %v3685_v3 = vld [vmem:[%s4085_s3 + $0x48] sm:$0xff] }
 0x340   : > { %v1458_v45 = vmul.f32 %v3901_v40, %v1456_v22  ;;  %vm1463_vm7 = vweird.f32 %v3901_v40  ;;  %v3662_v42 = vclamps-f32 %v1391_v37, 1.0 }
 0x341   : > { %3902 = vrcp.f32 %v4357_v38  ;;  %vm1464_vm12 = vmor %vm1462_vm10, %vm1463_vm7  ;;  %v1425_v44 = vsel %vm4379_vm11, %v4345_v19, %v1421_v62  ;;  %v1508_v17 = vand.u32 2147483648, %v4357_v38  ;;  %v1506_v19 = vand.u32 2147483647, %v4357_v38  ;;  %v3673_v62 = vld [vmem:[%s4085_s3 + $0x28] sm:$0xff] }
 0x342   : > { %v1459_v53 = vsub.f32 1.0, %v1458_v45  ;;  %v1430_v23 = vsel %vm1427_vm13, %v1429_v0, %v1425_v44  ;;  %vm1502_vm4 = vweird.f32 %v4357_v38  ;;  %v1486_v16 = vmul.f32 %v1485_v21, %v4313_v34  ;;  %1614 = vmatpush.msra.mxu3 %v3673_v62 }
 0x343   : > { %v1509_v29 = vor.u32 1.1754944e-38, %v1508_v17  ;;  %vm1507_vm6 = vcmp.eq.f32.partialorder %v1506_v19, 8.507059e+37  ;;  %v1431_v32 = vmul.f32 %v1430_v23, %v1406_v25  ;;  %v1347_v45 = vmul.f32 0.5, %v4280_v60  ;;  %v3669_v60 = vld [vmem:[%s4080_s29 + $0x18] sm:$0xff] }
 0x344   : > { %v1460_v24 = vmul.f32 %v3901_v40, %v1459_v53  ;;  %v1514_v47 = vadd.f32 1.0, %v3662_v42  ;;  %v3681_v53 = vld [vmem:[%s4080_s29 + $0x28] sm:$0xff] }
 0x345   : > { %v3663_v63 = vclamps-f32 %v1431_v32, 1.0 }
 0x346   : > { %v1461_v6 = vadd.f32 %v3901_v40, %v1460_v24  ;;  %v1518_v8 = vmul.f32 %v1514_v47, %v1346_v48  ;;  %v1554_v24 = vld [vmem:[%s4085_s3 + $0x8] sm:$0xff] }
 0x347   : > { %v3903_v1 = vpop.eup %3902  ;;  %v1515_v34 = vadd.f32 1.0, %v3663_v63  ;;  %1643 = vmatpush.msrb.mxu1 %v1554_v24 }
 0x348   : > { %v1498_v4 = vmul.f32 %v3903_v1, %v4357_v38  ;;  %v1465_v12 = vsel %vm1464_vm12, %v3901_v40, %v1461_v6  ;;  %vm1503_vm0 = vweird.f32 %v3903_v1  ;;  %v1349_v40 = vmul.f32 0.5, %v4306_v27 }
 0x349   : > { %v1470_v18 = vsel %vm1467_vm14, %v1469_v10, %v1465_v12  ;;  %vm1504_vm5 = vmor %vm1502_vm4, %vm1503_vm0  ;;  %v1519_v27 = vmul.f32 %v1515_v34, %v1347_v45  ;;  %1644 = vmatpush.msrb.mxu1 %v1553_v61 }
 0x34a   : > { %v1499_v11 = vsub.f32 1.0, %v1498_v4  ;;  %v1471_v14 = vmul.f32 %v1470_v18, %v1446_v15  ;;  %v3684_v4 = vld [vmem:[%s4085_s3 + $0x40] sm:$0xff] }
 0x34b   : > { %v3861_v15 = vld [vmem:[%s4090_s8] ss:$0 sm:$0xff] }
 0x34c   : > { %v1500_v22 = vmul.f32 %v3903_v1, %v1499_v11  ;;  %v3664_v36 = vclamps-f32 %v1471_v14, 1.0 }
 0x34e   : > { %v1501_v26 = vadd.f32 %v3903_v1, %v1500_v22  ;;  %v1516_v41 = vadd.f32 1.0, %v3664_v36 }
 0x350   : > { %v1505_v31 = vsel %vm1504_vm5, %v3903_v1, %v1501_v26  ;;  %v1520_v46 = vmul.f32 %v1516_v41, %v1348_v54  ;;  %v3672_v1 = vld [vmem:[%s4085_s3 + $0x20] sm:$0xff] }
 0x351   : > { %v1510_v33 = vsel %vm1507_vm6, %v1509_v29, %v1505_v31  ;;  %1615 = vmatpush.msra.mxu3 %v3672_v1 }
 0x352   : > { %v1511_v35 = vmul.f32 %v1510_v33, %v1486_v16 }
 0x354   : > { %v3665_v39 = vclamps-f32 %v1511_v35, 1.0 }
 0x356   : > { %v1517_v38 = vadd.f32 1.0, %v3665_v39 }
 0x358   : > { %v1521_v43 = vmul.f32 %v1517_v38, %v1349_v40 }
 0x35a   : > { %1542 = vmatpush.msra.mxu0 %v1521_v43  ;;  %1578 = vmatpush.msra.mxu2 %v1521_v43 }
 0x35c   : > { %1543 = vmatpush.msra.mxu0 %v1520_v46  ;;  %1579 = vmatpush.msra.mxu2 %v1520_v46 }
 0x35e   : > { %1544 = vmatpush.msra.mxu0 %v1519_v27  ;;  %1580 = vmatpush.msra.mxu2 %v1519_v27 }
 0x360   : > { %1545 = vmatpush.msra.mxu0 %v1518_v8  ;;  %1581 = vmatpush.msra.mxu2 %v1518_v8 }
 0x361   : > { %3666 = vmatmul.msk.f32.vlgmr.msra.gmra.mxu0 %vm911_vm1, %v1522_v57  ;;  %3670 = vmatmul.msk.f32.vlgmr.msra.gmra.mxu2 %vm911_vm1, %v3668_v49 }
 0x362   : > { %1673 = vmatpush.msrb.mxu0 %v1521_v43  ;;  %1707 = vmatpush.msrb.mxu2 %v3687_v2 }
 0x364   : > { %1674 = vmatpush.msrb.mxu0 %v1520_v46  ;;  %1708 = vmatpush.msrb.mxu2 %v3686_v5 }
 0x366   : > { %1675 = vmatpush.msrb.mxu0 %v1519_v27  ;;  %1709 = vmatpush.msrb.mxu2 %v3685_v3 }
 0x368   : > { %1676 = vmatpush.msrb.mxu0 %v1518_v8  ;;  %1710 = vmatpush.msrb.mxu2 %v3684_v4 }
 0x369   : > { %3667 = vmatmul.msk.f32.gmra.mxu0 %vm911_vm1, %v1523_v52  ;;  %3671 = vmatmul.msk.f32.gmra.mxu2 %vm911_vm1, %v3669_v60 }
 0x371   : > { %3682 = vmatmul.msk.f32.vlgmr.msrb.gmra.mxu0 %vm911_vm1, %v3680_v50 }
 0x379   : > { %3683 = vmatmul.msk.f32.gmra.mxu0 %vm911_vm1, %v3681_v53 }
 0x3de   : > { %v1547_v6 = vpop.f32.mrf.mxu0 }
 0x3df   : > { %3678 = vmatmul.msk.f32.vlgmr.msrb.gmra.mxu1 %vm911_vm1, %v1547_v6 }
 0x3e4   : > { %v1583_v7 = vpop.f32.mrf.mxu2 }
 0x3e5   : > { %3676 = vmatmul.msk.f32.vlgmr.msra.gmra.mxu3 %vm911_vm1, %v1583_v7 }
 0x3e6   : > { %v1550_v9 = vpop.f32.mrf.mxu0 }
 0x3e7   : > { %3679 = vmatmul.msk.f32.gmra.mxu1 %vm911_vm1, %v1550_v9 }
 0x3ec   : > { %v1586_v10 = vpop.f32.mrf.mxu2 }
 0x3ed   : > { %3677 = vmatmul.msk.f32.gmra.mxu3 %vm911_vm1, %v1586_v10 }
 0x3ee   : > { %v1678_v0 = vpop.f32.mrf.mxu0 }
 0x3ef   : > { %3688 = vmatmul.msk.f32.vlgmr.msrb.gmra.mxu2 %vm911_vm1, %v1678_v0 }
 0x3f6   : > { %v1681_v11 = vpop.f32.mrf.mxu0 }
 0x3f7   : > { %3689 = vmatmul.msk.f32.gmra.mxu2 %vm911_vm1, %v1681_v11 }
 0x45c   : > { %v1646_v44 = vpop.f32.mrf.mxu1 }
 0x464   : > { %v1649_v19 = vpop.f32.mrf.mxu1 }
 0x468   : > { %v1617_v12 = vpop.f32.mrf.mxu3 }
 0x469   : > { %v1647_v13 = vadd.f32 %v1646_v44, %v1617_v12 }
 0x470   : > { %v1620_v21 = vpop.f32.mrf.mxu3 }
 0x471   : > { %v1650_v51 = vadd.f32 %v1649_v19, %v1620_v21 }
 0x472   : > { %v1712_v17 = vpop.f32.mrf.mxu2 }
 0x473   : > { %v1718_v18 = vadd.f32 %v1712_v17, %v1647_v13 }
 0x475   : > { %v4439_v20 = vadd.f32 %v3861_v15, %v1718_v18 }
 0x477   : > { %v4442_v22 = vmul.f32 0.70710677, %v4439_v20 }
 0x479   : > { %v1730_v23 = vmul.f32 %v4442_v22, %v4442_v22 }
 0x47a   : > { %v1715_v25 = vpop.f32.mrf.mxu2 }
 0x47b   : > { %v1731_v26 = vmin.f32 %v1730_v23, 16.0  ;;  %v1719_v14 = vadd.f32 %v1715_v25, %v1650_v51 }
 0x47d   : > { %v1732_v28 = vmul.f32 2.1237322e-06, %v1731_v26  ;;  %v1743_v29 = vmul.f32 3.8918573e-05, %v1731_v26  ;;  %v4446_v30 = vadd.f32 %v3861_v15, %v1719_v14 }
 0x47f   : > { %v1733_v16 = vadd.f32 0.00028619796, %v1732_v28  ;;  %v1744_v31 = vadd.f32 0.001143296, %v1743_v29  ;;  %v4449_v32 = vmul.f32 0.70710677, %v4446_v30 }
 0x480   : > { %v1726_v29 = vmul.f32 0.5, %v4439_v20 }
 0x481   : > { %v1734_v33 = vmul.f32 %v1733_v16, %v1731_v26  ;;  %v1745_v35 = vmul.f32 %v1744_v31, %v1731_v26  ;;  %v1770_v36 = vmul.f32 %v4449_v32, %v4449_v32 }
 0x483   : > { %v1746_v37 = vadd.f32 0.014752088, %v1745_v35  ;;  %v1735_v39 = vadd.f32 0.0036580483, %v1734_v33  ;;  %v1771_v63 = vmin.f32 %v1770_v36, 16.0 }
 0x485   : > { %v1747_v40 = vmul.f32 %v1746_v37, %v1731_v26  ;;  %v1772_v38 = vmul.f32 2.1237322e-06, %v1771_v63  ;;  %v1783_v41 = vmul.f32 3.8918573e-05, %v1771_v63  ;;  %v1736_v54 = vmul.f32 %v1735_v39, %v1731_v26 }
 0x487   : > { %v1748_v42 = vadd.f32 0.112945676, %v1747_v40  ;;  %v1773_v43 = vadd.f32 0.00028619796, %v1772_v38  ;;  %v1784_v34 = vadd.f32 0.001143296, %v1783_v41 }
 0x488   : > { %v1737_v27 = vadd.f32 0.05243302, %v1736_v54  ;;  %v1727_v41 = vmul.f32 0.5, %v4446_v30  ;;  %v1815_v54 = vld [vmem:[%s4095_s14 + $0x8] sm:$0xff] }
 0x489   : > { %v1749_v45 = vmul.f32 %v1748_v42, %v1731_v26  ;;  %v1774_v46 = vmul.f32 %v1773_v43, %v1771_v63  ;;  %v1785_v47 = vmul.f32 %v1784_v34, %v1771_v63 }
 0x48a   : > { %v1738_v50 = vmul.f32 %v1737_v27, %v1731_v26 }
 0x48b   : > { %v1750_v48 = vadd.f32 0.4994258, %v1749_v45  ;;  %v1786_v8 = vadd.f32 0.014752088, %v1785_v47  ;;  %v1775_v49 = vadd.f32 0.0036580483, %v1774_v46 }
 0x48c   : > { %v1739_v58 = vadd.f32 0.18741608, %v1738_v50  ;;  %v4041_v45 = vmov 32.0  }
 0x48d   : > { %v1751_v57 = vmul.f32 %v1750_v48, %v1731_v26  ;;  %v1787_v52 = vmul.f32 %v1786_v8, %v1771_v63  ;;  %v1776_v55 = vmul.f32 %v1775_v49, %v1771_v63 }
 0x48e   : > { %v1740_v1 = vmul.f32 %v1739_v58, %v1731_v26 }
 0x48f   : > { %v1752_v60 = vadd.f32 1.0, %v1751_v57  ;;  %v1788_v53 = vadd.f32 0.112945676, %v1787_v52  ;;  %v1777_v24 = vadd.f32 0.05243302, %v1776_v55 }
 0x490   : > { %v1741_v7 = vadd.f32 1.1283791, %v1740_v1  ;;  %v1890_v1 = vld [vmem:[%s4120_s12 + $0x10] sm:$0xff] }
 0x491   : > { %3904 = vrcp.f32 %v1752_v60  ;;  %v1789_v56 = vmul.f32 %v1788_v53, %v1771_v63  ;;  %v1778_v3 = vmul.f32 %v1777_v24, %v1771_v63  ;;  %v1764_v6 = vand.u32 2147483648, %v1752_v60  ;;  %v1891_v24 = vld [vmem:[%s4120_s12 + $0x18] sm:$0xff] }
 0x492   : > { %v1762_v10 = vand.u32 2147483647, %v1752_v60  ;;  %vm1758_vm8 = vweird.f32 %v1752_v60  ;;  %v1742_v13 = vmul.f32 %v1741_v7, %v4442_v22  ;;  %v1814_v22 = vld [vmem:[%s4095_s14] sm:$0xff]  ;;  %1914 = vmatpush.msrb.mxu3 %v1891_v24 }
 0x493   : > { %v1790_v59 = vadd.f32 0.4994258, %v1789_v56  ;;  %v1779_v0 = vadd.f32 0.18741608, %v1778_v3  ;;  %v1765_v12 = vor.u32 1.1754944e-38, %v1764_v6  ;;  %v1889_v3 = vld [vmem:[%s4120_s12 + $0x8] sm:$0xff] }
 0x494   : > { %vm1763_vm10 = vcmp.eq.f32.partialorder %v1762_v10, 8.507059e+37  ;;  %1915 = vmatpush.msrb.mxu3 %v1890_v1  ;;  %v1953_v6 = vld [vmem:[%s4135_s4 + $0x8] sm:$0xff]  ;;  %v1888_v7 = vld [vmem:[%s4120_s12] sm:$0xff] }
 0x495   : > { %v1791_v61 = vmul.f32 %v1790_v59, %v1771_v63  ;;  %v1780_v18 = vmul.f32 %v1779_v0, %v1771_v63  ;;  %v1952_v10 = vld [vmem:[%s4135_s4] sm:$0xff] }
 0x496   : > { %1916 = vmatpush.msrb.mxu3 %v1889_v3 }
 0x497   : > { %v3905_v62 = vpop.eup %3904  ;;  %v1792_v5 = vadd.f32 1.0, %v1791_v61  ;;  %v1781_v26 = vadd.f32 1.1283791, %v1780_v18  ;;  %v1928_v61 = vld [vmem:[%s4130_s27 + $0x18] sm:$0xff] }
 0x498   : > { %v1754_v2 = vmul.f32 %v3905_v62, %v1752_v60  ;;  %vm1759_vm7 = vweird.f32 %v3905_v62  ;;  %1941 = vmatpush.msra.mxu1 %v1928_v61  ;;  %1917 = vmatpush.msrb.mxu3 %v1888_v7 }
 0x499   : > { %3906 = vrcp.f32 %v1792_v5  ;;  %vm1760_vm9 = vmor %vm1758_vm8, %vm1759_vm7  ;;  %v1804_v51 = vand.u32 2147483648, %v1792_v5  ;;  %v1802_v28 = vand.u32 2147483647, %v1792_v5  ;;  %vm1798_vm12 = vweird.f32 %v1792_v5 }
 0x49a   : > { %v1755_v4 = vsub.f32 1.0, %v1754_v2  ;;  %v1782_v36 = vmul.f32 %v1781_v26, %v4449_v32  ;;  %3908 = vrcp.f32 %v4041_v45  ;;  %v1927_v2 = vld [vmem:[%s4130_s27 + $0x10] sm:$0xff]  ;;  %v3862_v26 = vld [vmem:[%s4110_s30] ss:$0 sm:$0xff] }
 0x49b   : > { %v1805_v33 = vor.u32 1.1754944e-38, %v1804_v51  ;;  %vm1803_vm14 = vcmp.eq.f32.partialorder %v1802_v28, 8.507059e+37  ;;  %1942 = vmatpush.msra.mxu1 %v1927_v2 }
 0x49c   : > { %v1756_v9 = vmul.f32 %v3905_v62, %v1755_v4  ;;  %v1926_v4 = vld [vmem:[%s4130_s27 + $0x8] sm:$0xff] }
 0x49d   : > { %1943 = vmatpush.msra.mxu1 %v1926_v4 }
 0x49e   : > { %v1757_v11 = vadd.f32 %v3905_v62, %v1756_v9  ;;  %v1925_v9 = vld [vmem:[%s4130_s27] sm:$0xff] }
 0x49f   : > { %v3907_v44 = vpop.eup %3906  ;;  %1944 = vmatpush.msra.mxu1 %v1925_v9 }
 0x4a0   : > { %v1761_v15 = vsel %vm1760_vm9, %v3905_v62, %v1757_v11  ;;  %v1794_v21 = vmul.f32 %v3907_v44, %v1792_v5  ;;  %vm1799_vm11 = vweird.f32 %v3907_v44  ;;  %v3909_v46 = vpop.eup %3908  ;;  %v1955_v62 = vld [vmem:[%s4135_s4 + $0x18] sm:$0xff]  ;;  %v1954_v5 = vld [vmem:[%s4135_s4 + $0x10] sm:$0xff] }
 0x4a1   : > { %v1766_v17 = vsel %vm1763_vm10, %v1765_v12, %v1761_v15  ;;  %vm1800_vm13 = vmor %vm1798_vm12, %vm1799_vm11  ;;  %v1834_v47 = vmul.f32 32.0, %v3909_v46  ;;  %vm1838_vm15 = vweird.f32 %v3909_v46  ;;  %1972 = vmatpush.msra.mxu0 %v1955_v62 }
 0x4a2   : > { %v1767_v19 = vmul.f32 %v1766_v17, %v1742_v13  ;;  %v1795_v23 = vsub.f32 1.0, %v1794_v21 }
 0x4a3   : > { %v1835_v48 = vsub.f32 1.0, %v1834_v47  ;;  %1973 = vmatpush.msra.mxu0 %v1954_v5 }
 0x4a4   : > { %v3690_v25 = vclamps-f32 %v1767_v19, 1.0  ;;  %v1796_v14 = vmul.f32 %v3907_v44, %v1795_v23 }
 0x4a5   : > { %v1836_v27 = vmul.f32 %v3909_v46, %v1835_v48  ;;  %1974 = vmatpush.msra.mxu0 %v1953_v6  ;;  %v4507_v48 = vld [vmem:[%s4914_s22] ss:$0 sm:$0xff] }
 0x4a6   : > { %v1810_v16 = vadd.f32 1.0, %v3690_v25  ;;  %v1797_v31 = vadd.f32 %v3907_v44, %v1796_v14 }
 0x4a7   : > { %v1837_v8 = vadd.f32 %v3909_v46, %v1836_v27  ;;  %1975 = vmatpush.msra.mxu0 %v1952_v10  ;;  %v4510_v27 = vld [vmem:[%s4914_s22 + $0x1] ss:$0 sm:$0xff] }
 0x4a8   : > { %v1812_v35 = vmul.f32 %v1810_v16, %v1726_v29  ;;  %v1801_v37 = vsel %vm1800_vm13, %v3907_v44, %v1797_v31  ;;  %v3863_v31 = vld [vmem:[%s4911_s15] ss:$0 sm:$0xff] }
 0x4a9   : > { %v1806_v39 = vsel %vm1803_vm14, %v1805_v33, %v1801_v37  ;;  %v4467_v30 = vsel %vm1838_vm15, %v3909_v46, %v1837_v8  ;;  %v4513_v8 = vld [vmem:[%s4914_s22 + $0x2] ss:$0 sm:$0xff] }
 0x4aa   : > { %v4457_v63 = vadd.f32 %v1814_v22, %v1812_v35  ;;  %v1807_v40 = vmul.f32 %v1806_v39, %v1782_v36 }
 0x4ac   : > { %v1827_v38 = vsel %vm911_vm1, %v4457_v63, 0.0  ;;  %v3691_v20 = vclamps-f32 %v1807_v40, 1.0 }
 0x4ad   : > { %1828 = vadd.xlane.f32.xlu2 %v1827_v38 }
 0x4ae   : > { %v1811_v42 = vadd.f32 1.0, %v3691_v20 }
 0x4b0   : > { %v1813_v43 = vmul.f32 %v1811_v42, %v1727_v41 }
 0x4b2   : > { %v4463_v34 = vadd.f32 %v1815_v54, %v1813_v43  ;;  %v3864_v54 = vld [vmem:[%s4912_s16] ss:$0 sm:$0xff] }
 0x4b4   : > { %v1830_v32 = vsel %vm911_vm1, %v4463_v34, 0.0 }
 0x4b5   : > { %1831 = vadd.xlane.f32.xlu2 %v1830_v32  ;;  %v3865_v32 = vld [vmem:[%s4913_s18] ss:$0 sm:$0xff] }
 0x520   : > { %v1829_v57 = vpop.xlane.xlu2 %1828 }
 0x521   : > { %v1840_v49 = vmul.f32 %v4467_v30, %v1829_v57 }
 0x523   : > { %v1842_v52 = vsub.f32 %v4457_v63, %v1840_v49 }
 0x525   : > { %v1844_v60 = vmul.f32 %v1842_v52, %v1842_v52 }
 0x527   : > { %v1846_v50 = vsel %vm911_vm1, %v1844_v60, 0.0 }
 0x528   : > { %1847 = vadd.xlane.f32.xlu0 %v1846_v50  ;;  %v1832_v53 = vpop.xlane.xlu2 %1831 }
 0x529   : > { %v1841_v55 = vmul.f32 %v4467_v30, %v1832_v53 }
 0x52b   : > { %v4474_v56 = vsub.f32 %v4463_v34, %v1841_v55 }
 0x52d   : > { %v1845_v58 = vmul.f32 %v4474_v56, %v4474_v56 }
 0x52f   : > { %v1849_v59 = vsel %vm911_vm1, %v1845_v58, 0.0 }
 0x530   : > { %1850 = vadd.xlane.f32.xlu1 %v1849_v59  ;;  %v4529_v59 = vld [vmem:[%s4914_s22 + $0x3] ss:$0 sm:$0xff] }
 0x59b   : > { %v1848_v0 = vpop.xlane.xlu0 %1847 }
 0x59c   : > { %v1852_v11 = vmul.f32 %v1848_v0, %v4467_v30 }
 0x59e   : > { %v1854_v12 = vadd.f32 1e-05, %v1852_v11 }
 0x5a0   : > { %3910 = vrsqrt.f32 %v1854_v12  ;;  %vm1862_vm2 = vweird.f32 %v1854_v12 }
 0x5a3   : > { %v1851_v44 = vpop.xlane.xlu1 %1850 }
 0x5a4   : > { %v1853_v13 = vmul.f32 %v1851_v44, %v4467_v30 }
 0x5a6   : > { %v3911_v15 = vpop.eup %3910  ;;  %v1855_v18 = vadd.f32 1e-05, %v1853_v13 }
 0x5a7   : > { %v1857_v17 = vmul.f32 %v3911_v15, %v1854_v12  ;;  %vm1863_vm0 = vweird.f32 %v3911_v15 }
 0x5a8   : > { %3912 = vrsqrt.f32 %v1855_v18  ;;  %vm1864_vm4 = vmor %vm1862_vm2, %vm1863_vm0  ;;  %vm1872_vm6 = vweird.f32 %v1855_v18 }
 0x5a9   : > { %v1858_v21 = vmul.f32 %v3911_v15, %v1857_v17 }
 0x5ab   : > { %v1859_v19 = vmul.f32 0.5, %v1858_v21 }
 0x5ad   : > { %v1860_v23 = vsub.f32 1.5, %v1859_v19 }
 0x5ae   : > { %v3913_v51 = vpop.eup %3912 }
 0x5af   : > { %v1861_v25 = vmul.f32 %v3911_v15, %v1860_v23  ;;  %v1867_v14 = vmul.f32 %v3913_v51, %v1855_v18  ;;  %vm1873_vm5 = vweird.f32 %v3913_v51 }
 0x5b0   : > { %vm1874_vm7 = vmor %vm1872_vm6, %vm1873_vm5  ;;  %vm2571_vm6 = vcmask 523264  }
 0x5b1   : > { %v1865_v28 = vsel %vm1864_vm4, %v3911_v15, %v1861_v25  ;;  %v1868_v16 = vmul.f32 %v3913_v51, %v1867_v14 }
 0x5b2   : > { %v1876_v29 = vmul.f32 %v1865_v28, %v1842_v52 }
 0x5b3   : > { %v1869_v33 = vmul.f32 0.5, %v1868_v16 }
 0x5b4   : > { %v1881_v22 = vmul.f32 %v3862_v26, %v1876_v29 }
 0x5b5   : > { %v1870_v35 = vsub.f32 1.5, %v1869_v33 }
 0x5b6   : > { %v1886_v36 = vadd.f32 %v3863_v31, %v1881_v22 }
 0x5b7   : > { %v1871_v37 = vmul.f32 %v3913_v51, %v1870_v35 }
 0x5b8   : > { %3695 = vmatmul.msk.f32.vlgmr.msrb.gmra.mxu3 %vm911_vm1, %v1886_v36  ;;  %3697 = vmatmul.msk.f32.vlgmr.msra.gmra.mxu1 %vm911_vm1, %v1886_v36 }
 0x5b9   : > { %3699 = vmatmul.msk.f32.vlgmr.msra.gmra.mxu0 %vm911_vm1, %v1886_v36  ;;  %v1875_v39 = vsel %vm1874_vm7, %v3913_v51, %v1871_v37 }
 0x5ba   : > { %v1877_v40 = vmul.f32 %v1875_v39, %v4474_v56 }
 0x5bc   : > { %v1882_v38 = vmul.f32 %v3862_v26, %v1877_v40 }
 0x5be   : > { %v1887_v20 = vadd.f32 %v3863_v31, %v1882_v38 }
 0x5c0   : > { %3696 = vmatmul.msk.f32.gmra.mxu3 %vm911_vm1, %v1887_v20  ;;  %3698 = vmatmul.msk.f32.gmra.mxu1 %vm911_vm1, %v1887_v20 }
 0x5c1   : > { %3700 = vmatmul.msk.f32.gmra.mxu0 %vm911_vm1, %v1887_v20 }
 0x635   : > { %v1946_v41 = vpop.f32.mrf.mxu1 }
 0x636   : > { %v1977_v42 = vpop.f32.mrf.mxu0 }
 0x637   : > { %v1978_v47 = vadd.f32 %v3864_v54, %v1977_v42 }
 0x639   : > { %v2103_v53 = vmul.f32 %v4510_v27, %v1978_v47  ;;  %v2045_v55 = vmul.f32 %v4507_v48, %v1978_v47  ;;  %v2219_v61 = vmul.f32 %v4513_v8, %v1978_v47  ;;  %v2308_v2 = vmul.f32 %v4529_v59, %v1978_v47 }
 0x63b   : > { %v1919_v43 = vpop.f32.mrf.mxu3 }
 0x63c   : > { %v4515_v49 = vadd.f32 %v3865_v32, %v1919_v43 }
 0x63d   : > { %v1949_v45 = vpop.f32.mrf.mxu1 }
 0x63e   : > { %v1980_v46 = vpop.f32.mrf.mxu0  ;;  %3701 = vmatpush.xpose.msk.msra.mxu2 %vm911_vm1, %v1949_v45  ;;  %3705 = vmatpush.xpose.msk.msra.mxu3 %vm911_vm1, %v1949_v45  ;;  %v1986_v56 = vmul.f32 %v4507_v48, %v4515_v49  ;;  %v2050_v58 = vmul.f32 %v4510_v27, %v4515_v49  ;;  %v2166_v4 = vmul.f32 %v4513_v8, %v4515_v49 }
 0x63f   : > { %v1981_v57 = vadd.f32 %v3864_v54, %v1980_v46 }
 0x641   : > { %v2104_v52 = vmul.f32 %v4510_v27, %v1981_v57  ;;  %v2046_v60 = vmul.f32 %v4507_v48, %v1981_v57  ;;  %v2220_v50 = vmul.f32 %v4513_v8, %v1981_v57  ;;  %v2309_v62 = vmul.f32 %v4529_v59, %v1981_v57 }
 0x642   : > { %3702 = vmatpush.xpose.msk.msra.mxu2 %vm911_vm1, %v1946_v41  ;;  %3706 = vmatpush.xpose.msk.msra.mxu3 %vm911_vm1, %v1946_v41 }
 0x643   : > { %2125 = vmatpush.msrb.mxu1 %v2104_v52  ;;  %2154 = vmatpush.msrb.mxu0 %v2046_v60  ;;  %v1922_v24 = vpop.f32.mrf.mxu3  ;;  %v2255_v52 = vmul.f32 %v4529_v59, %v4515_v49 }
 0x644   : > { %v4537_v1 = vadd.f32 %v3865_v32, %v1922_v24 }
 0x645   : > { %2126 = vmatpush.msrb.mxu1 %v2103_v53  ;;  %2155 = vmatpush.msrb.mxu0 %v2045_v55 }
 0x646   : > { %3713 = vmatpush.xpose.msk.msrb.mxu2 %vm911_vm1, %v1949_v45  ;;  %2241 = vmatpush.msrb.mxu3 %v2220_v50  ;;  %v1987_v5 = vmul.f32 %v4507_v48, %v4537_v1  ;;  %v2051_v3 = vmul.f32 %v4510_v27, %v4537_v1  ;;  %v2167_v6 = vmul.f32 %v4513_v8, %v4537_v1 }
 0x647   : > { %3703 = vmatmul.msk.f32.vlgmr.msra.gmra.mxu2 %vm911_vm1, %v1986_v56  ;;  %3707 = vmatmul.msk.f32.vlgmr.msra.gmra.mxu3 %vm911_vm1, %v2050_v58  ;;  %v2256_v50 = vmul.f32 %v4529_v59, %v4537_v1 }
 0x648   : > { %2242 = vmatpush.msrb.mxu3 %v2219_v61  ;;  %3719 = vmatpush.xpose.msk.msra.mxu1 %vm911_vm1, %v1949_v45 }
 0x649   : > { %2330 = vmatpush.msra.mxu0 %v2309_v62 }
 0x64a   : > { %3714 = vmatpush.xpose.msk.msrb.mxu2 %vm911_vm1, %v1946_v41 }
 0x64b   : > { %2331 = vmatpush.msra.mxu0 %v2308_v2 }
 0x64c   : > { %3720 = vmatpush.xpose.msk.msra.mxu1 %vm911_vm1, %v1946_v41 }
 0x64f   : > { %3704 = vmatmul.msk.f32.gmra.mxu2 %vm911_vm1, %v1987_v5  ;;  %3708 = vmatmul.msk.f32.gmra.mxu3 %vm911_vm1, %v2051_v3 }
 0x657   : > { %3715 = vmatmul.msk.f32.vlgmr.msrb.gmra.mxu2 %vm911_vm1, %v2166_v4 }
 0x65f   : > { %3716 = vmatmul.msk.f32.gmra.mxu2 %vm911_vm1, %v2167_v6 }
 0x6ca   : > { %v2017_v7 = vpop.f32.mrf.mxu2  ;;  %v2075_v9 = vpop.f32.mrf.mxu3 }
 0x6cb   : > { %v2081_v10 = vsel %vm1024_vm3, %v2075_v9, -inf  ;;  %v2023_v13 = vsel %vm1024_vm3, %v2017_v7, -inf }
 0x6cc   : > { %2082 = vmax.xlane.f32.xlu2 %v2081_v10 }
 0x6d2   : > { %v4555_v0 = vpop.f32.mrf.mxu2  ;;  %v2078_v11 = vpop.f32.mrf.mxu3 }
 0x6d3   : > { %v2084_v12 = vsel %vm1024_vm3, %v2078_v11, -inf  ;;  %v2026_v33 = vsel %vm1024_vm3, %v4555_v0, -inf }
 0x6d4   : > { %2085 = vmax.xlane.f32.xlu0 %v2084_v12 }
 0x6da   : > { %v4558_v44 = vpop.f32.mrf.mxu2 }
 0x6db   : > { %v2197_v40 = vsel %vm1024_vm3, %v4558_v44, -inf }
 0x6dc   : > { %2024 = vmax.xlane.f32.xlu0 %v2023_v13 }
 0x6e2   : > { %v2194_v15 = vpop.f32.mrf.mxu2 }
 0x6e3   : > { %v2200_v17 = vsel %vm1024_vm3, %v2194_v15, -inf }
 0x6e4   : > { %2201 = vmax.xlane.f32.xlu0 %v2200_v17 }
 0x73f   : > { %v2083_v18 = vpop.xlane.xlu2 %2082 }
 0x740   : > { %v2087_v21 = vsub.f32 %v2075_v9, %v2083_v18 }
 0x742   : > { %v2089_v19 = vmul.f32 1.442695, %v2087_v21 }
 0x744   : > { %3914 = vpow2.f32 %v2089_v19 }
 0x747   : > { %v2086_v23 = vpop.xlane.xlu0 %2085 }
 0x748   : > { %v2088_v51 = vsub.f32 %v2078_v11, %v2086_v23 }
 0x74a   : > { %v3915_v25 = vpop.eup %3914  ;;  %v2091_v26 = vmul.f32 1.442695, %v2088_v51 }
 0x74b   : > { %v2093_v14 = vsel %vm1024_vm3, %v3915_v25, 0.0 }
 0x74c   : > { %3916 = vpow2.f32 %v2091_v26  ;;  %2094 = vadd.xlane.f32.xlu1 %v2093_v14 }
 0x74f   : > { %v2025_v28 = vpop.xlane.xlu0 %2024 }
 0x750   : > { %v2029_v29 = vsub.f32 %v2017_v7, %v2025_v28 }
 0x752   : > { %v3917_v16 = vpop.eup %3916  ;;  %v2031_v31 = vmul.f32 1.442695, %v2029_v29 }
 0x753   : > { %v2096_v22 = vsel %vm1024_vm3, %v3917_v16, 0.0 }
 0x754   : > { %3918 = vpow2.f32 %v2031_v31  ;;  %2097 = vadd.xlane.f32.xlu2 %v2096_v22  ;;  %2027 = vmax.xlane.f32.xlu1 %v2026_v33  ;;  %v2344_v22 = vld [vmem:[%s4915_s23 + $0x18] sm:$0xff]  ;;  %v2343_v33 = vld [vmem:[%s4915_s23 + $0x10] sm:$0xff] }
 0x755   : > { %2363 = vmatpush.msra.mxu2 %v2344_v22 }
 0x757   : > { %v2202_v35 = vpop.xlane.xlu0 %2201  ;;  %2364 = vmatpush.msra.mxu2 %v2343_v33 }
 0x758   : > { %v2204_v36 = vsub.f32 %v2194_v15, %v2202_v35 }
 0x75a   : > { %v3919_v37 = vpop.eup %3918  ;;  %v2207_v39 = vmul.f32 1.442695, %v2204_v36 }
 0x75b   : > { %v2035_v38 = vsel %vm1024_vm3, %v3919_v37, 0.0 }
 0x75c   : > { %3920 = vpow2.f32 %v2207_v39  ;;  %2198 = vmax.xlane.f32.xlu2 %v2197_v40  ;;  %2036 = vadd.xlane.f32.xlu0 %v2035_v38  ;;  %v2342_v38 = vld [vmem:[%s4915_s23 + $0x8] sm:$0xff] }
 0x75d   : > { %2365 = vmatpush.msra.mxu2 %v2342_v38 }
 0x762   : > { %v4569_v20 = vpop.eup %3920 }
 0x763   : > { %v2212_v41 = vsel %vm1024_vm3, %v4569_v20, 0.0 }
 0x764   : > { %2213 = vadd.xlane.f32.xlu0 %v2212_v41 }
 0x7bf   : > { %v2095_v42 = vpop.xlane.xlu1 %2094 }
 0x7c0   : > { %3922 = vrcp.f32 %v2095_v42 }
 0x7c6   : > { %v3923_v54 = vpop.eup %3922 }
 0x7c7   : > { %v2101_v43 = vmul.f32 %v3923_v54, %v3915_v25  ;;  %v2098_v32 = vpop.xlane.xlu2 %2097  ;;  %v2028_v55 = vpop.xlane.xlu1 %2027 }
 0x7c8   : > { %3924 = vrcp.f32 %v2098_v32  ;;  %v2030_v56 = vsub.f32 %v4555_v0, %v2028_v55  ;;  %v3870_v55 = vld [vmem:[%s4916_s26] ss:$0 sm:$0xff] }
 0x7c9   : > { %3709 = vmatmul.msk.f32.vlgmr.msrb.gmra.mxu1 %vm1024_vm3, %v2101_v43 }
 0x7ca   : > { %v2033_v24 = vmul.f32 1.442695, %v2030_v56 }
 0x7ce   : > { %v3925_v45 = vpop.eup %3924 }
 0x7cf   : > { %v2037_v46 = vpop.xlane.xlu0 %2036  ;;  %v2102_v47 = vmul.f32 %v3925_v45, %v3917_v16  ;;  %v2199_v61 = vpop.xlane.xlu2 %2198 }
 0x7d0   : > { %3926 = vrcp.f32 %v2037_v46  ;;  %v2203_v49 = vsub.f32 %v4558_v44, %v2199_v61 }
 0x7d1   : > { %3710 = vmatmul.msk.f32.gmra.mxu1 %vm1024_vm3, %v2102_v47  ;;  %3928 = vpow2.f32 %v2033_v24 }
 0x7d2   : > { %v2205_v5 = vmul.f32 1.442695, %v2203_v49 }
 0x7d4   : > { %3930 = vpow2.f32 %v2205_v5 }
 0x7d6   : > { %v3927_v57 = vpop.eup %3926 }
 0x7d7   : > { %v2043_v60 = vmul.f32 %v3927_v57, %v3919_v37  ;;  %v3929_v1 = vpop.eup %3928  ;;  %v2214_v25 = vpop.xlane.xlu0 %2213 }
 0x7d8   : > { %v2038_v6 = vsel %vm1024_vm3, %v3929_v1, 0.0 }
 0x7d9   : > { %3711 = vmatmul.msk.f32.vlgmr.msrb.gmra.mxu0 %vm1024_vm3, %v2043_v60  ;;  %3721 = vmatmul.msk.f32.vlgmr.msra.gmra.mxu1 %vm911_vm1, %v2255_v52 }
 0x7da   : > { %v3931_v7 = vpop.eup %3930 }
 0x7db   : > { %v2209_v9 = vsel %vm1024_vm3, %v3931_v7, 0.0 }
 0x7e1   : > { %3722 = vmatmul.msk.f32.gmra.mxu1 %vm911_vm1, %v2256_v50 }
 0x846   : > { %v4582_v53 = vpop.f32.mrf.mxu1 }
 0x84e   : > { %v4585_v58 = vpop.f32.mrf.mxu1 }
 0x856   : > { %v2280_v62 = vpop.f32.mrf.mxu1  ;;  %v2157_v41 = vpop.f32.mrf.mxu0 }
 0x857   : > { %v2286_v2 = vsel %vm1024_vm3, %v2280_v62, -inf  ;;  %v2158_v43 = vadd.f32 %v2157_v41, %v4582_v53 }
 0x858   : > { %2287 = vmax.xlane.f32.xlu1 %v2286_v2 }
 0x85e   : > { %v2283_v3 = vpop.f32.mrf.mxu1 }
 0x85f   : > { %v2289_v4 = vsel %vm1024_vm3, %v2283_v3, -inf }
 0x860   : > { %2290 = vmax.xlane.f32.xlu2 %v2289_v4  ;;  %2039 = vadd.xlane.f32.xlu1 %v2038_v6 }
 0x868   : > { %2210 = vadd.xlane.f32.xlu2 %v2209_v9 }
 0x8cb   : > { %v2288_v10 = vpop.xlane.xlu1 %2287 }
 0x8cc   : > { %v2292_v0 = vsub.f32 %v2280_v62, %v2288_v10 }
 0x8ce   : > { %v2294_v11 = vmul.f32 1.442695, %v2292_v0  ;;  %v2441_v0 = vld [vmem:[%s4917_s28 + $0x18] sm:$0xff] }
 0x8cf   : > { %2464 = vmatpush.msra.mxu3 %v2441_v0 }
 0x8d0   : > { %3932 = vpow2.f32 %v2294_v11  ;;  %v2440_v11 = vld [vmem:[%s4917_s28 + $0x10] sm:$0xff] }
 0x8d1   : > { %2465 = vmatpush.msra.mxu3 %v2440_v11 }
 0x8d3   : > { %v2291_v12 = vpop.xlane.xlu2 %2290  ;;  %v2040_v44 = vpop.xlane.xlu1 %2039 }
 0x8d4   : > { %v2293_v13 = vsub.f32 %v2283_v3, %v2291_v12  ;;  %3934 = vrcp.f32 %v2040_v44  ;;  %v2439_v12 = vld [vmem:[%s4917_s28 + $0x8] sm:$0xff]  ;;  %v2438_v44 = vld [vmem:[%s4917_s28] sm:$0xff] }
 0x8d5   : > { %2466 = vmatpush.msra.mxu3 %v2439_v12 }
 0x8d6   : > { %v3933_v15 = vpop.eup %3932  ;;  %v2296_v17 = vmul.f32 1.442695, %v2293_v13 }
 0x8d7   : > { %v2298_v18 = vsel %vm1024_vm3, %v3933_v15, 0.0  ;;  %2467 = vmatpush.msra.mxu3 %v2438_v44  ;;  %v2565_v44 = vld [vmem:[%s4921_s0 + $0x10] sm:$0xff] }
 0x8d8   : > { %3936 = vpow2.f32 %v2296_v17  ;;  %2299 = vadd.xlane.f32.xlu1 %v2298_v18 }
 0x8da   : > { %v3935_v21 = vpop.eup %3934 }
 0x8db   : > { %v2211_v19 = vpop.xlane.xlu2 %2210  ;;  %v2044_v23 = vmul.f32 %v3935_v21, %v3929_v1 }
 0x8dc   : > { %3938 = vrcp.f32 %v2211_v19 }
 0x8dd   : > { %3712 = vmatmul.msk.f32.gmra.mxu0 %vm1024_vm3, %v2044_v23  ;;  %3940 = vrcp.f32 %v2214_v25 }
 0x8de   : > { %v3937_v51 = vpop.eup %3936 }
 0x8df   : > { %v2301_v26 = vsel %vm1024_vm3, %v3937_v51, 0.0 }
 0x8e0   : > { %2302 = vadd.xlane.f32.xlu2 %v2301_v26 }
 0x8e2   : > { %v3939_v14 = vpop.eup %3938 }
 0x8e3   : > { %v2217_v28 = vmul.f32 %v3939_v14, %v3931_v7  ;;  %v3941_v29 = vpop.eup %3940 }
 0x8e4   : > { %v2218_v16 = vmul.f32 %v3941_v29, %v4569_v20  ;;  %v2341_v20 = vld [vmem:[%s4915_s23] sm:$0xff] }
 0x8e5   : > { %3717 = vmatmul.msk.f32.vlgmr.msrb.gmra.mxu3 %vm1024_vm3, %v2217_v28  ;;  %2366 = vmatpush.msra.mxu2 %v2341_v20 }
 0x8ed   : > { %3718 = vmatmul.msk.f32.gmra.mxu3 %vm1024_vm3, %v2218_v16 }
 0x94b   : > { %v2300_v31 = vpop.xlane.xlu1 %2299 }
 0x94c   : > { %3942 = vrcp.f32 %v2300_v31  ;;  %v3871_v31 = vld [vmem:[%s4918_s1] ss:$0 sm:$0xff] }
 0x952   : > { %v3943_v35 = vpop.eup %3942 }
 0x953   : > { %v2306_v36 = vmul.f32 %v3943_v35, %v3933_v15  ;;  %v2303_v37 = vpop.xlane.xlu2 %2302 }
 0x954   : > { %3944 = vrcp.f32 %v2303_v37 }
 0x955   : > { %3723 = vmatmul.msk.f32.vlgmr.msra.gmra.mxu0 %vm1024_vm3, %v2306_v36  ;;  %v3872_v36 = vld [vmem:[%s4919_s2] ss:$0 sm:$0xff] }
 0x95a   : > { %v3945_v39 = vpop.eup %3944  ;;  %v2160_v42 = vpop.f32.mrf.mxu0 }
 0x95b   : > { %v2307_v40 = vmul.f32 %v3945_v39, %v3937_v51  ;;  %v2161_v57 = vadd.f32 %v2160_v42, %v4585_v58 }
 0x95d   : > { %3724 = vmatmul.msk.f32.gmra.mxu0 %vm1024_vm3, %v2307_v40 }
 0x968   : > { %v2244_v54 = vpop.f32.mrf.mxu3 }
 0x969   : > { %v2250_v32 = vadd.f32 %v2244_v54, %v2158_v43 }
 0x970   : > { %v2247_v47 = vpop.f32.mrf.mxu3 }
 0x971   : > { %v2251_v52 = vadd.f32 %v2247_v47, %v2161_v57 }
 0x9d2   : > { %v2333_v45 = vpop.f32.mrf.mxu0 }
 0x9d3   : > { %v2339_v46 = vadd.f32 %v2333_v45, %v2250_v32  ;;  %v3873_v32 = vld [vmem:[%s4920_s11] ss:$0 sm:$0xff] }
 0x9d5   : > { %3725 = vmatmul.msk.f32.vlgmr.msra.gmra.mxu2 %vm911_vm1, %v2339_v46 }
 0x9da   : > { %v2336_v60 = vpop.f32.mrf.mxu0 }
 0x9db   : > { %v2340_v50 = vadd.f32 %v2336_v60, %v2251_v52 }
 0x9dd   : > { %3726 = vmatmul.msk.f32.gmra.mxu2 %vm911_vm1, %v2340_v50 }
 0xa58   : > { %v2368_v56 = vpop.f32.mrf.mxu2 }
 0xa59   : > { %v2374_v24 = vadd.f32 %v2368_v56, %v4457_v63 }
 0xa5b   : > { %v4610_v61 = vadd.f32 %v3870_v55, %v2374_v24  ;;  %v2570_v24 = vld [vmem:[%s4921_s0 + $0x38] sm:$0xff] }
 0xa5c   : > { %2586 = vmatpush.msrb.mxu1 %v2570_v24 }
 0xa5d   : > { %v2384_v53 = vsel %vm911_vm1, %v4610_v61, 0.0 }
 0xa5e   : > { %2385 = vadd.xlane.f32.xlu0 %v2384_v53 }
 0xa60   : > { %v2371_v49 = vpop.f32.mrf.mxu2 }
 0xa61   : > { %v2375_v62 = vadd.f32 %v2371_v49, %v4463_v34 }
 0xa63   : > { %v4615_v58 = vadd.f32 %v3870_v55, %v2375_v62  ;;  %v2569_v62 = vld [vmem:[%s4921_s0 + $0x30] sm:$0xff] }
 0xa64   : > { %2587 = vmatpush.msrb.mxu1 %v2569_v62 }
 0xa65   : > { %v2387_v2 = vsel %vm911_vm1, %v4615_v58, 0.0 }
 0xa66   : > { %2388 = vadd.xlane.f32.xlu1 %v2387_v2 }
 0xad1   : > { %v2386_v5 = vpop.xlane.xlu0 %2385 }
 0xad2   : > { %v2390_v63 = vmul.f32 %v2386_v5, %v4467_v30 }
 0xad4   : > { %v2392_v1 = vsub.f32 %v4610_v61, %v2390_v63 }
 0xad6   : > { %v2394_v3 = vmul.f32 %v2392_v1, %v2392_v1 }
 0xad8   : > { %v2396_v4 = vsel %vm911_vm1, %v2394_v3, 0.0 }
 0xad9   : > { %2397 = vadd.xlane.f32.xlu2 %v2396_v4  ;;  %v2389_v34 = vpop.xlane.xlu1 %2388 }
 0xada   : > { %v2391_v6 = vmul.f32 %v2389_v34, %v4467_v30  ;;  %v2567_v34 = vld [vmem:[%s4921_s0 + $0x20] sm:$0xff] }
 0xadc   : > { %v2393_v7 = vsub.f32 %v4615_v58, %v2391_v6 }
 0xade   : > { %v2395_v9 = vmul.f32 %v2393_v7, %v2393_v7 }
 0xae0   : > { %v2399_v10 = vsel %vm911_vm1, %v2395_v9, 0.0 }
 0xae1   : > { %2400 = vadd.xlane.f32.xlu0 %v2399_v10  ;;  %v2566_v10 = vld [vmem:[%s4921_s0 + $0x18] sm:$0xff] }
 0xb4c   : > { %v2398_v13 = vpop.xlane.xlu2 %2397 }
 0xb4d   : > { %v2402_v15 = vmul.f32 %v2398_v13, %v4467_v30 }
 0xb4f   : > { %v2404_v17 = vadd.f32 1e-05, %v2402_v15 }
 0xb51   : > { %3946 = vrsqrt.f32 %v2404_v17  ;;  %vm2412_vm9 = vweird.f32 %v2404_v17 }
 0xb54   : > { %v2401_v18 = vpop.xlane.xlu0 %2400 }
 0xb55   : > { %v2403_v21 = vmul.f32 %v2401_v18, %v4467_v30 }
 0xb57   : > { %v3947_v19 = vpop.eup %3946  ;;  %v2405_v23 = vadd.f32 1e-05, %v2403_v21  ;;  %v2564_v21 = vld [vmem:[%s4921_s0 + $0x8] sm:$0xff] }
 0xb58   : > { %v2407_v51 = vmul.f32 %v3947_v19, %v2404_v17  ;;  %vm2413_vm8 = vweird.f32 %v3947_v19 }
 0xb59   : > { %3948 = vrsqrt.f32 %v2405_v23  ;;  %vm2414_vm10 = vmor %vm2412_vm9, %vm2413_vm8  ;;  %vm2422_vm12 = vweird.f32 %v2405_v23 }
 0xb5a   : > { %v2408_v25 = vmul.f32 %v3947_v19, %v2407_v51 }
 0xb5c   : > { %v2409_v26 = vmul.f32 0.5, %v2408_v25  ;;  %v2563_v25 = vld [vmem:[%s4921_s0] sm:$0xff] }
 0xb5e   : > { %v2410_v14 = vsub.f32 1.5, %v2409_v26 }
 0xb5f   : > { %v3949_v28 = vpop.eup %3948 }
 0xb60   : > { %v2411_v29 = vmul.f32 %v3947_v19, %v2410_v14  ;;  %v2417_v16 = vmul.f32 %v3949_v28, %v2405_v23  ;;  %vm2423_vm11 = vweird.f32 %v3949_v28 }
 0xb61   : > { %vm2424_vm13 = vmor %vm2422_vm12, %vm2423_vm11 }
 0xb62   : > { %v2415_v22 = vsel %vm2414_vm10, %v3947_v19, %v2411_v29  ;;  %v2418_v33 = vmul.f32 %v3949_v28, %v2417_v16 }
 0xb63   : > { %v2426_v35 = vmul.f32 %v2415_v22, %v2392_v1  ;;  %v2568_v1 = vld [vmem:[%s4921_s0 + $0x28] sm:$0xff] }
 0xb64   : > { %v2419_v37 = vmul.f32 0.5, %v2418_v33  ;;  %2588 = vmatpush.msrb.mxu1 %v2568_v1 }
 0xb65   : > { %v2431_v39 = vmul.f32 %v3871_v31, %v2426_v35 }
 0xb66   : > { %v2420_v40 = vsub.f32 1.5, %v2419_v37  ;;  %2589 = vmatpush.msrb.mxu1 %v2567_v34 }
 0xb67   : > { %v2436_v38 = vadd.f32 %v3872_v36, %v2431_v39 }
 0xb68   : > { %v2421_v20 = vmul.f32 %v3949_v28, %v2420_v40  ;;  %2590 = vmatpush.msrb.mxu1 %v2566_v10 }
 0xb69   : > { %3727 = vmatmul.msk.f32.vlgmr.msra.gmra.mxu3 %vm911_vm1, %v2436_v38 }
 0xb6a   : > { %v2425_v41 = vsel %vm2424_vm13, %v3949_v28, %v2421_v20  ;;  %2591 = vmatpush.msrb.mxu1 %v2565_v44 }
 0xb6b   : > { %v2427_v42 = vmul.f32 %v2425_v41, %v2393_v7 }
 0xb6c   : > { %2592 = vmatpush.msrb.mxu1 %v2564_v21 }
 0xb6d   : > { %v2432_v54 = vmul.f32 %v3871_v31, %v2427_v42 }
 0xb6e   : > { %2593 = vmatpush.msrb.mxu1 %v2563_v25 }
 0xb6f   : > { %v2437_v43 = vadd.f32 %v3872_v36, %v2432_v54 }
 0xb71   : > { %3728 = vmatmul.msk.f32.gmra.mxu3 %vm911_vm1, %v2437_v43 }
 0xbec   : > { %v2469_v45 = vpop.f32.mrf.mxu3 }
 0xbed   : > { %v4636_v46 = vadd.f32 %v3873_v32, %v2469_v45 }
 0xbef   : > { %v4639_v47 = vmul.f32 0.70710677, %v4636_v46 }
 0xbf1   : > { %v2479_v57 = vmul.f32 %v4639_v47, %v4639_v47 }
 0xbf3   : > { %v2480_v52 = vmin.f32 %v2479_v57, 16.0 }
 0xbf4   : > { %v2472_v60 = vpop.f32.mrf.mxu3 }
 0xbf5   : > { %v2481_v50 = vmul.f32 2.1237322e-06, %v2480_v52  ;;  %v2492_v55 = vmul.f32 3.8918573e-05, %v2480_v52  ;;  %v4643_v56 = vadd.f32 %v3873_v32, %v2472_v60 }
 0xbf7   : > { %v2482_v53 = vadd.f32 0.00028619796, %v2481_v50  ;;  %v2493_v49 = vadd.f32 0.001143296, %v2492_v55  ;;  %v4648_v2 = vmul.f32 0.70710677, %v4643_v56 }
 0xbf9   : > { %v2483_v5 = vmul.f32 %v2482_v53, %v2480_v52  ;;  %v2494_v63 = vmul.f32 %v2493_v49, %v2480_v52  ;;  %v2519_v3 = vmul.f32 %v4648_v2, %v4648_v2 }
 0xbfb   : > { %v2495_v4 = vadd.f32 0.014752088, %v2494_v63  ;;  %v2484_v6 = vadd.f32 0.0036580483, %v2483_v5  ;;  %v2520_v7 = vmin.f32 %v2519_v3, 16.0 }
 0xbfd   : > { %v2496_v9 = vmul.f32 %v2495_v4, %v2480_v52  ;;  %v2521_v0 = vmul.f32 2.1237322e-06, %v2520_v7  ;;  %v2532_v11 = vmul.f32 3.8918573e-05, %v2520_v7  ;;  %v2485_v13 = vmul.f32 %v2484_v6, %v2480_v52 }
 0xbff   : > { %v2497_v12 = vadd.f32 0.112945676, %v2496_v9  ;;  %v2522_v15 = vadd.f32 0.00028619796, %v2521_v0  ;;  %v2533_v17 = vadd.f32 0.001143296, %v2532_v11 }
 0xc00   : > { %v2486_v26 = vadd.f32 0.05243302, %v2485_v13  ;;  %v2475_v11 = vmul.f32 0.5, %v4636_v46 }
 0xc01   : > { %v2498_v18 = vmul.f32 %v2497_v12, %v2480_v52  ;;  %v2523_v19 = vmul.f32 %v2522_v15, %v2520_v7  ;;  %v2534_v23 = vmul.f32 %v2533_v17, %v2520_v7 }
 0xc02   : > { %v2487_v22 = vmul.f32 %v2486_v26, %v2480_v52 }
 0xc03   : > { %v2499_v51 = vadd.f32 0.4994258, %v2498_v18  ;;  %v2535_v14 = vadd.f32 0.014752088, %v2534_v23  ;;  %v2524_v29 = vadd.f32 0.0036580483, %v2523_v19 }
 0xc04   : > { %v2488_v37 = vadd.f32 0.18741608, %v2487_v22  ;;  %v2476_v19 = vmul.f32 0.5, %v4643_v56 }
 0xc05   : > { %v2500_v28 = vmul.f32 %v2499_v51, %v2480_v52  ;;  %v2536_v16 = vmul.f32 %v2535_v14, %v2520_v7  ;;  %v2525_v35 = vmul.f32 %v2524_v29, %v2520_v7  ;;  %v3874_v51 = vld [vmem:[%s4180_s24] ss:$0 sm:$0xff] }
 0xc06   : > { %v2489_v41 = vmul.f32 %v2488_v37, %v2480_v52 }
 0xc07   : > { %v2501_v31 = vadd.f32 1.0, %v2500_v28  ;;  %v2537_v33 = vadd.f32 0.112945676, %v2536_v16  ;;  %v2526_v40 = vadd.f32 0.05243302, %v2525_v35 }
 0xc08   : > { %v2490_v57 = vadd.f32 1.1283791, %v2489_v41  ;;  %v3751_v41 = vld [vmem:[%s4135_s4 + $0x38] sm:$0xff] }
 0xc09   : > { %3950 = vrcp.f32 %v2501_v31  ;;  %v2538_v36 = vmul.f32 %v2537_v33, %v2520_v7  ;;  %v2527_v43 = vmul.f32 %v2526_v40, %v2520_v7  ;;  %v2513_v45 = vand.u32 2147483648, %v2501_v31  ;;  %2756 = vmatpush.msrb.mxu3 %v3751_v41 }
 0xc0a   : > { %v2511_v50 = vand.u32 2147483647, %v2501_v31  ;;  %vm2507_vm15 = vweird.f32 %v2501_v31  ;;  %v2491_v62 = vmul.f32 %v2490_v57, %v4639_v47  ;;  %v3749_v57 = vld [vmem:[%s4135_s4 + $0x28] sm:$0xff] }
 0xc0b   : > { %v2539_v39 = vadd.f32 0.4994258, %v2538_v36  ;;  %v2528_v55 = vadd.f32 0.18741608, %v2527_v43  ;;  %v2514_v53 = vor.u32 1.1754944e-38, %v2513_v45  ;;  %v3750_v43 = vld [vmem:[%s4135_s4 + $0x30] sm:$0xff] }
 0xc0c   : > { %vm2512_vm2 = vcmp.eq.f32.partialorder %v2511_v50, 8.507059e+37  ;;  %2757 = vmatpush.msrb.mxu3 %v3750_v43  ;;  %v3743_v45 = vld [vmem:[%s4130_s27 + $0x28] sm:$0xff]  ;;  %v3742_v50 = vld [vmem:[%s4130_s27 + $0x20] sm:$0xff] }
 0xc0d   : > { %v2540_v38 = vmul.f32 %v2539_v39, %v2520_v7  ;;  %v2529_v63 = vmul.f32 %v2528_v55, %v2520_v7  ;;  %v3748_v55 = vld [vmem:[%s4135_s4 + $0x20] sm:$0xff] }
 0xc0e   : > { %2758 = vmatpush.msrb.mxu3 %v3749_v57 }
 0xc0f   : > { %v3951_v20 = vpop.eup %3950  ;;  %v2541_v54 = vadd.f32 1.0, %v2540_v38  ;;  %v2530_v9 = vadd.f32 1.1283791, %v2529_v63  ;;  %v3738_v38 = vld [vmem:[%s4120_s12 + $0x38] sm:$0xff] }
 0xc10   : > { %v2503_v42 = vmul.f32 %v3951_v20, %v2501_v31  ;;  %vm2508_vm14 = vweird.f32 %v3951_v20  ;;  %2695 = vmatpush.msrb.mxu0 %v3738_v38  ;;  %2759 = vmatpush.msrb.mxu3 %v3748_v55 }
 0xc11   : > { %3952 = vrcp.f32 %v2541_v54  ;;  %vm2509_vm0 = vmor %vm2507_vm15, %vm2508_vm14  ;;  %v2553_v6 = vand.u32 2147483648, %v2541_v54  ;;  %v2551_v0 = vand.u32 2147483647, %v2541_v54  ;;  %vm2547_vm5 = vweird.f32 %v2541_v54 }
 0xc12   : > { %v2504_v32 = vsub.f32 1.0, %v2503_v42  ;;  %v2531_v7 = vmul.f32 %v2530_v9, %v4648_v2  ;;  %v3737_v42 = vld [vmem:[%s4120_s12 + $0x30] sm:$0xff] }
 0xc13   : > { %v2554_v13 = vor.u32 1.1754944e-38, %v2553_v6  ;;  %vm2552_vm8 = vcmp.eq.f32.partialorder %v2551_v0, 8.507059e+37  ;;  %2696 = vmatpush.msrb.mxu0 %v3737_v42 }
 0xc14   : > { %v2505_v60 = vmul.f32 %v3951_v20, %v2504_v32  ;;  %v3736_v32 = vld [vmem:[%s4120_s12 + $0x28] sm:$0xff] }
 0xc15   : > { %2697 = vmatpush.msrb.mxu0 %v3736_v32 }
 0xc16   : > { %v2506_v24 = vadd.f32 %v3951_v20, %v2505_v60  ;;  %v3735_v60 = vld [vmem:[%s4120_s12 + $0x20] sm:$0xff] }
 0xc17   : > { %v3953_v49 = vpop.eup %3952  ;;  %2698 = vmatpush.msrb.mxu0 %v3735_v60 }
 0xc18   : > { %v2510_v5 = vsel %vm2509_vm0, %v3951_v20, %v2506_v24  ;;  %v2543_v1 = vmul.f32 %v3953_v49, %v2541_v54  ;;  %vm2548_vm4 = vweird.f32 %v3953_v49  ;;  %v3745_v20 = vld [vmem:[%s4130_s27 + $0x38] sm:$0xff]  ;;  %v3744_v54 = vld [vmem:[%s4130_s27 + $0x30] sm:$0xff] }
 0xc19   : > { %v2515_v52 = vsel %vm2512_vm2, %v2514_v53, %v2510_v5  ;;  %vm2549_vm7 = vmor %vm2547_vm5, %vm2548_vm4  ;;  %2723 = vmatpush.msrb.mxu2 %v3745_v20 }
 0xc1a   : > { %v2516_v3 = vmul.f32 %v2515_v52, %v2491_v62  ;;  %v2544_v4 = vsub.f32 1.0, %v2543_v1 }
 0xc1b   : > { %2724 = vmatpush.msrb.mxu2 %v3744_v54 }
 0xc1c   : > { %v3729_v34 = vclamps-f32 %v2516_v3, 1.0  ;;  %v2545_v10 = vmul.f32 %v3953_v49, %v2544_v4 }
 0xc1d   : > { %2725 = vmatpush.msrb.mxu2 %v3743_v45 }
 0xc1e   : > { %v2559_v12 = vadd.f32 1.0, %v3729_v34  ;;  %v2546_v44 = vadd.f32 %v3953_v49, %v2545_v10  ;;  %v3875_v10 = vld [vmem:[%s4110_s30 + $0x1] ss:$0 sm:$0xff] }
 0xc1f   : > { %2726 = vmatpush.msrb.mxu2 %v3742_v50 }
 0xc20   : > { %v2561_v47 = vmul.f32 %v2559_v12, %v2475_v11  ;;  %v2550_v15 = vsel %vm2549_vm7, %v3953_v49, %v2546_v44 }
 0xc21   : > { %v2555_v17 = vsel %vm2552_vm8, %v2554_v13, %v2550_v15 }
 0xc22   : > { %3731 = vmatmul.msk.f32.vlgmr.msrb.gmra.mxu1 %vm2571_vm6, %v2561_v47  ;;  %v2556_v18 = vmul.f32 %v2555_v17, %v2531_v7  ;;  %v3876_v47 = vld [vmem:[%s4911_s15 + $0x1] ss:$0 sm:$0xff] }
 0xc24   : > { %v3730_v21 = vclamps-f32 %v2556_v18, 1.0 }
 0xc26   : > { %v2560_v46 = vadd.f32 1.0, %v3730_v21 }
 0xc28   : > { %v2562_v23 = vmul.f32 %v2560_v46, %v2476_v19 }
 0xc2a   : > { %3732 = vmatmul.msk.f32.gmra.mxu1 %vm2571_vm6, %v2562_v23 }
 0xc9f   : > { %v2595_v25 = vpop.f32.mrf.mxu1 }
 0xca0   : > { %v2601_v26 = vadd.f32 %v2595_v25, %v4610_v61 }
 0xca2   : > { %v4666_v14 = vadd.f32 %v3874_v51, %v2601_v26 }
 0xca4   : > { %v2613_v2 = vsel %vm911_vm1, %v4666_v14, 0.0 }
 0xca5   : > { %2614 = vadd.xlane.f32.xlu1 %v2613_v2  ;;  %v3878_v2 = vld [vmem:[%s4912_s16 + $0x1] ss:$0 sm:$0xff] }
 0xca7   : > { %v2598_v28 = vpop.f32.mrf.mxu1 }
 0xca8   : > { %v2602_v29 = vadd.f32 %v2598_v28, %v4615_v58  ;;  %v3877_v28 = vld [vmem:[%s4913_s18 + $0x1] ss:$0 sm:$0xff] }
 0xcaa   : > { %v4671_v16 = vadd.f32 %v3874_v51, %v2602_v29 }
 0xcac   : > { %v2616_v56 = vsel %vm911_vm1, %v4671_v16, 0.0 }
 0xcad   : > { %2617 = vadd.xlane.f32.xlu2 %v2616_v56 }
 0xd18   : > { %v2615_v31 = vpop.xlane.xlu1 %2614 }
 0xd19   : > { %v2619_v61 = vmul.f32 %v2615_v31, %v4467_v30 }
 0xd1b   : > { %v2621_v22 = vsub.f32 %v4666_v14, %v2619_v61 }
 0xd1d   : > { %v2623_v33 = vmul.f32 %v2621_v22, %v2621_v22 }
 0xd1f   : > { %v2625_v35 = vsel %vm911_vm1, %v2623_v33, 0.0 }
 0xd20   : > { %2626 = vadd.xlane.f32.xlu0 %v2625_v35  ;;  %v2618_v58 = vpop.xlane.xlu2 %2617 }
 0xd21   : > { %v2620_v36 = vmul.f32 %v2618_v58, %v4467_v30 }
 0xd23   : > { %v4680_v37 = vsub.f32 %v4671_v16, %v2620_v36 }
 0xd25   : > { %v2624_v39 = vmul.f32 %v4680_v37, %v4680_v37 }
 0xd27   : > { %v2628_v40 = vsel %vm911_vm1, %v2624_v39, 0.0 }
 0xd28   : > { %2629 = vadd.xlane.f32.xlu1 %v2628_v40 }
 0xd93   : > { %v2627_v24 = vpop.xlane.xlu0 %2626 }
 0xd94   : > { %v2631_v53 = vmul.f32 %v2627_v24, %v4467_v30 }
 0xd96   : > { %v2633_v49 = vadd.f32 1e-05, %v2631_v53 }
 0xd98   : > { %3954 = vrsqrt.f32 %v2633_v49  ;;  %vm2641_vm10 = vweird.f32 %v2633_v49 }
 0xd9b   : > { %v2630_v62 = vpop.xlane.xlu1 %2629 }
 0xd9c   : > { %v2632_v5 = vmul.f32 %v2630_v62, %v4467_v30 }
 0xd9e   : > { %v3955_v52 = vpop.eup %3954  ;;  %v2634_v1 = vadd.f32 1e-05, %v2632_v5 }
 0xd9f   : > { %v2636_v63 = vmul.f32 %v3955_v52, %v2633_v49  ;;  %vm2642_vm9 = vweird.f32 %v3955_v52 }
 0xda0   : > { %3956 = vrsqrt.f32 %v2634_v1  ;;  %vm2643_vm11 = vmor %vm2641_vm10, %vm2642_vm9  ;;  %vm2651_vm13 = vweird.f32 %v2634_v1 }
 0xda1   : > { %v2637_v3 = vmul.f32 %v3955_v52, %v2636_v63 }
 0xda3   : > { %v2638_v4 = vmul.f32 0.5, %v2637_v3 }
 0xda5   : > { %v2639_v34 = vsub.f32 1.5, %v2638_v4 }
 0xda6   : > { %v3957_v6 = vpop.eup %3956 }
 0xda7   : > { %v2640_v9 = vmul.f32 %v3955_v52, %v2639_v34  ;;  %v2646_v0 = vmul.f32 %v3957_v6, %v2634_v1  ;;  %vm2652_vm12 = vweird.f32 %v3957_v6 }
 0xda8   : > { %vm2653_vm14 = vmor %vm2651_vm13, %vm2652_vm12 }
 0xda9   : > { %v2644_v11 = vsel %vm2643_vm11, %v3955_v52, %v2640_v9  ;;  %v2647_v44 = vmul.f32 %v3957_v6, %v2646_v0 }
 0xdaa   : > { %v2655_v12 = vmul.f32 %v2644_v11, %v2621_v22 }
 0xdab   : > { %v2648_v7 = vmul.f32 0.5, %v2647_v44 }
 0xdac   : > { %v2660_v13 = vmul.f32 %v3875_v10, %v2655_v12 }
 0xdad   : > { %v2649_v15 = vsub.f32 1.5, %v2648_v7 }
 0xdae   : > { %v2665_v17 = vadd.f32 %v3876_v47, %v2660_v13 }
 0xdaf   : > { %v2650_v18 = vmul.f32 %v3957_v6, %v2649_v15 }
 0xdb0   : > { %3740 = vmatmul.msk.f32.vlgmr.msrb.gmra.mxu0 %vm911_vm1, %v2665_v17  ;;  %3746 = vmatmul.msk.f32.vlgmr.msrb.gmra.mxu2 %vm911_vm1, %v2665_v17 }
 0xdb1   : > { %3753 = vmatmul.msk.f32.vlgmr.msrb.gmra.mxu3 %vm911_vm1, %v2665_v17  ;;  %v2654_v21 = vsel %vm2653_vm14, %v3957_v6, %v2650_v18 }
 0xdb2   : > { %v2656_v19 = vmul.f32 %v2654_v21, %v4680_v37 }
 0xdb4   : > { %v2661_v46 = vmul.f32 %v3875_v10, %v2656_v19 }
 0xdb6   : > { %v2666_v23 = vadd.f32 %v3876_v47, %v2661_v46 }
 0xdb8   : > { %3741 = vmatmul.msk.f32.gmra.mxu0 %vm911_vm1, %v2666_v23  ;;  %3747 = vmatmul.msk.f32.gmra.mxu2 %vm911_vm1, %v2666_v23 }
 0xdb9   : > { %3754 = vmatmul.msk.f32.gmra.mxu3 %vm911_vm1, %v2666_v23 }
 0xe2d   : > { %v2700_v26 = vpop.f32.mrf.mxu0 }
 0xe2e   : > { %v4712_v22 = vadd.f32 %v3877_v28, %v2700_v26 }
 0xe30   : > { %v2767_v39 = vmul.f32 %v4507_v48, %v4712_v22  ;;  %v2828_v40 = vmul.f32 %v4510_v27, %v4712_v22  ;;  %v2941_v45 = vmul.f32 %v4513_v8, %v4712_v22 }
 0xe33   : > { %v2728_v51 = vpop.f32.mrf.mxu2 }
 0xe34   : > { %v2761_v25 = vpop.f32.mrf.mxu3 }
 0xe35   : > { %v2762_v31 = vadd.f32 %v3878_v2, %v2761_v25  ;;  %v2703_v38 = vpop.f32.mrf.mxu0 }
 0xe36   : > { %v4731_v42 = vadd.f32 %v3877_v28, %v2703_v38 }
 0xe37   : > { %v2881_v36 = vmul.f32 %v4510_v27, %v2762_v31  ;;  %v2826_v37 = vmul.f32 %v4507_v48, %v2762_v31  ;;  %v2994_v20 = vmul.f32 %v4513_v8, %v2762_v31  ;;  %v3080_v54 = vmul.f32 %v4529_v59, %v2762_v31 }
 0xe38   : > { %v2768_v43 = vmul.f32 %v4507_v48, %v4731_v42  ;;  %v2829_v32 = vmul.f32 %v4510_v27, %v4731_v42 }
 0xe3b   : > { %v2731_v29 = vpop.f32.mrf.mxu2 }
 0xe3c   : > { %v2764_v56 = vpop.f32.mrf.mxu3  ;;  %3755 = vmatpush.xpose.msk.msra.mxu1 %vm911_vm1, %v2731_v29  ;;  %3759 = vmatpush.xpose.msk.msra.mxu0 %vm911_vm1, %v2731_v29 }
 0xe3d   : > { %v2765_v61 = vadd.f32 %v3878_v2, %v2764_v56  ;;  %v4002_v2 = vld [vmem:[%s4914_s22 + $0x3] ss:$0 sm:$0xff] }
 0xe3e   : > { %v3027_v28 = vmul.f32 %v4002_v2, %v4712_v22 }
 0xe3f   : > { %v2882_v33 = vmul.f32 %v4510_v27, %v2765_v61  ;;  %v2827_v35 = vmul.f32 %v4507_v48, %v2765_v61  ;;  %v2995_v58 = vmul.f32 %v4513_v8, %v2765_v61  ;;  %v3081_v41 = vmul.f32 %v4529_v59, %v2765_v61 }
 0xe40   : > { %3756 = vmatpush.xpose.msk.msra.mxu1 %vm911_vm1, %v2728_v51  ;;  %3760 = vmatpush.xpose.msk.msra.mxu0 %vm911_vm1, %v2728_v51  ;;  %v2942_v59 = vmul.f32 %v4513_v8, %v4731_v42 }
 0xe41   : > { %2903 = vmatpush.msra.mxu2 %v2882_v33  ;;  %2932 = vmatpush.msra.mxu3 %v2827_v35  ;;  %v3028_v33 = vmul.f32 %v4002_v2, %v4731_v42 }
 0xe43   : > { %2904 = vmatpush.msra.mxu2 %v2881_v36  ;;  %2933 = vmatpush.msra.mxu3 %v2826_v37 }
 0xe44   : > { %3767 = vmatpush.xpose.msk.msrb.mxu1 %vm911_vm1, %v2731_v29  ;;  %3016 = vmatpush.msrb.mxu0 %v2995_v58 }
 0xe45   : > { %3757 = vmatmul.msk.f32.vlgmr.msra.gmra.mxu1 %vm911_vm1, %v2767_v39  ;;  %3761 = vmatmul.msk.f32.vlgmr.msra.gmra.mxu0 %vm911_vm1, %v2828_v40 }
 0xe46   : > { %3017 = vmatpush.msrb.mxu0 %v2994_v20  ;;  %3773 = vmatpush.xpose.msk.msrb.mxu2 %vm911_vm1, %v2731_v29 }
 0xe47   : > { %3102 = vmatpush.msrb.mxu3 %v3081_v41 }
 0xe48   : > { %3768 = vmatpush.xpose.msk.msrb.mxu1 %vm911_vm1, %v2728_v51 }
 0xe49   : > { %3103 = vmatpush.msrb.mxu3 %v3080_v54 }
 0xe4a   : > { %3774 = vmatpush.xpose.msk.msrb.mxu2 %vm911_vm1, %v2728_v51 }
 0xe4d   : > { %3758 = vmatmul.msk.f32.gmra.mxu1 %vm911_vm1, %v2768_v43  ;;  %3762 = vmatmul.msk.f32.gmra.mxu0 %vm911_vm1, %v2829_v32 }
 0xe55   : > { %3769 = vmatmul.msk.f32.vlgmr.msrb.gmra.mxu1 %vm911_vm1, %v2941_v45 }
 0xe5d   : > { %3770 = vmatmul.msk.f32.gmra.mxu1 %vm911_vm1, %v2942_v59 }
 0xec2   : > { %v2853_v57 = vpop.f32.mrf.mxu0  ;;  %v2798_v60 = vpop.f32.mrf.mxu1 }
 0xec3   : > { %v2859_v48 = vsel %vm1024_vm3, %v2853_v57, -inf  ;;  %v2804_v24 = vsel %vm1024_vm3, %v2798_v60, -inf }
 0xec4   : > { %2860 = vmax.xlane.f32.xlu2 %v2859_v48 }
 0xeca   : > { %v2856_v27 = vpop.f32.mrf.mxu0  ;;  %v4750_v55 = vpop.f32.mrf.mxu1 }
 0xecb   : > { %v2862_v50 = vsel %vm1024_vm3, %v2856_v27, -inf  ;;  %v2807_v11 = vsel %vm1024_vm3, %v4750_v55, -inf }
 0xecc   : > { %2863 = vmax.xlane.f32.xlu0 %v2862_v50 }
 0xed2   : > { %v2966_v53 = vpop.f32.mrf.mxu1 }
 0xed3   : > { %v2972_v49 = vsel %vm1024_vm3, %v2966_v53, -inf }
 0xed4   : > { %2805 = vmax.xlane.f32.xlu0 %v2804_v24 }
 0xeda   : > { %v2969_v38 = vpop.f32.mrf.mxu1 }
 0xedb   : > { %v2975_v41 = vsel %vm1024_vm3, %v2969_v38, -inf }
 0xedc   : > { %2973 = vmax.xlane.f32.xlu0 %v2972_v49 }
 0xf37   : > { %v2861_v8 = vpop.xlane.xlu2 %2860 }
 0xf38   : > { %v2865_v62 = vsub.f32 %v2853_v57, %v2861_v8 }
 0xf3a   : > { %v2867_v5 = vmul.f32 1.442695, %v2865_v62 }
 0xf3c   : > { %3958 = vpow2.f32 %v2867_v5 }
 0xf3f   : > { %v2864_v52 = vpop.xlane.xlu0 %2863 }
 0xf40   : > { %v2866_v63 = vsub.f32 %v2856_v27, %v2864_v52 }
 0xf42   : > { %v3959_v1 = vpop.eup %3958  ;;  %v2869_v3 = vmul.f32 1.442695, %v2866_v63 }
 0xf43   : > { %v2871_v4 = vsel %vm1024_vm3, %v3959_v1, 0.0 }
 0xf44   : > { %3960 = vpow2.f32 %v2869_v3  ;;  %2872 = vadd.xlane.f32.xlu1 %v2871_v4  ;;  %v3782_v3 = vld [vmem:[%s4915_s23 + $0x38] sm:$0xff]  ;;  %v3781_v4 = vld [vmem:[%s4915_s23 + $0x30] sm:$0xff] }
 0xf45   : > { %3136 = vmatpush.msra.mxu1 %v3782_v3 }
 0xf47   : > { %v2806_v34 = vpop.xlane.xlu0 %2805  ;;  %3137 = vmatpush.msra.mxu1 %v3781_v4  ;;  %v3881_v4 = vld [vmem:[%s4919_s2 + $0x1] ss:$0 sm:$0xff] }
 0xf48   : > { %v2810_v6 = vsub.f32 %v2798_v60, %v2806_v34 }
 0xf4a   : > { %v3961_v9 = vpop.eup %3960  ;;  %v2812_v10 = vmul.f32 1.442695, %v2810_v6 }
 0xf4b   : > { %v2874_v0 = vsel %vm1024_vm3, %v3961_v9, 0.0 }
 0xf4c   : > { %3962 = vpow2.f32 %v2812_v10  ;;  %2875 = vadd.xlane.f32.xlu2 %v2874_v0  ;;  %2808 = vmax.xlane.f32.xlu1 %v2807_v11 }
 0xf4f   : > { %v2974_v12 = vpop.xlane.xlu0 %2973 }
 0xf50   : > { %v2978_v44 = vsub.f32 %v2966_v53, %v2974_v12 }
 0xf52   : > { %v3963_v47 = vpop.eup %3962  ;;  %v2980_v13 = vmul.f32 1.442695, %v2978_v44 }
 0xf53   : > { %v2816_v7 = vsel %vm1024_vm3, %v3963_v47, 0.0 }
 0xf54   : > { %3964 = vpow2.f32 %v2980_v13  ;;  %2817 = vadd.xlane.f32.xlu0 %v2816_v7  ;;  %v3780_v13 = vld [vmem:[%s4915_s23 + $0x28] sm:$0xff]  ;;  %v3779_v7 = vld [vmem:[%s4915_s23 + $0x20] sm:$0xff] }
 0xf55   : > { %3138 = vmatpush.msra.mxu1 %v3780_v13 }
 0xf57   : > { %3139 = vmatpush.msra.mxu1 %v3779_v7 }
 0xf5a   : > { %v3965_v15 = vpop.eup %3964 }
 0xf5b   : > { %v2984_v17 = vsel %vm1024_vm3, %v3965_v15, 0.0 }
 0xf5c   : > { %2985 = vadd.xlane.f32.xlu0 %v2984_v17 }
 0xfb7   : > { %v2873_v18 = vpop.xlane.xlu1 %2872 }
 0xfb8   : > { %3966 = vrcp.f32 %v2873_v18 }
 0xfbe   : > { %v3967_v21 = vpop.eup %3966 }
 0xfbf   : > { %v2879_v19 = vmul.f32 %v3967_v21, %v3959_v1  ;;  %v2876_v46 = vpop.xlane.xlu2 %2875  ;;  %v2809_v22 = vpop.xlane.xlu1 %2808 }
 0xfc0   : > { %3968 = vrcp.f32 %v2876_v46  ;;  %v2811_v36 = vsub.f32 %v4750_v55, %v2809_v22 }
 0xfc1   : > { %3763 = vmatmul.msk.f32.vlgmr.msra.gmra.mxu2 %vm1024_vm3, %v2879_v19 }
 0xfc2   : > { %v2814_v40 = vmul.f32 1.442695, %v2811_v36 }
 0xfc6   : > { %v3969_v23 = vpop.eup %3968 }
 0xfc7   : > { %v2818_v51 = vpop.xlane.xlu0 %2817  ;;  %v2880_v25 = vmul.f32 %v3969_v23, %v3961_v9 }
 0xfc8   : > { %3970 = vrcp.f32 %v2818_v51 }
 0xfc9   : > { %3764 = vmatmul.msk.f32.gmra.mxu2 %vm1024_vm3, %v2880_v25 }
 0xfce   : > { %v3971_v26 = vpop.eup %3970 }
 0xfcf   : > { %v2824_v29 = vmul.f32 %v3971_v26, %v3963_v47  ;;  %v2986_v56 = vpop.xlane.xlu0 %2985 }
 0xfd0   : > { %3972 = vrcp.f32 %v2986_v56 }
 0xfd1   : > { %3765 = vmatmul.msk.f32.vlgmr.msra.gmra.mxu3 %vm1024_vm3, %v2824_v29  ;;  %3775 = vmatmul.msk.f32.vlgmr.msrb.gmra.mxu2 %vm911_vm1, %v3027_v28  ;;  %3974 = vpow2.f32 %v2814_v40  ;;  %v3879_v29 = vld [vmem:[%s4916_s26 + $0x1] ss:$0 sm:$0xff] }
 0xfd6   : > { %v3973_v31 = vpop.eup %3972 }
 0xfd7   : > { %v2992_v61 = vmul.f32 %v3973_v31, %v3965_v15  ;;  %v3975_v54 = vpop.eup %3974 }
 0xfd8   : > { %v2819_v43 = vsel %vm1024_vm3, %v3975_v54, 0.0 }
 0xfd9   : > { %3771 = vmatmul.msk.f32.vlgmr.msrb.gmra.mxu0 %vm1024_vm3, %v2992_v61  ;;  %3776 = vmatmul.msk.f32.gmra.mxu2 %vm911_vm1, %v3028_v33 }
0x1044   : > { %v4769_v35 = vpop.f32.mrf.mxu2 }
0x104c   : > { %v4771_v58 = vpop.f32.mrf.mxu2 }
0x1054   : > { %v3052_v37 = vpop.f32.mrf.mxu2  ;;  %v2935_v15 = vpop.f32.mrf.mxu3 }
0x1055   : > { %v3058_v39 = vsel %vm1024_vm3, %v3052_v37, -inf  ;;  %v2936_v18 = vadd.f32 %v2935_v15, %v4769_v35  ;;  %v3882_v15 = vld [vmem:[%s4920_s11 + $0x1] ss:$0 sm:$0xff] }
0x1056   : > { %3059 = vmax.xlane.f32.xlu2 %v3058_v39  ;;  %v3019_v21 = vpop.f32.mrf.mxu0 }
0x1057   : > { %v3025_v19 = vadd.f32 %v3019_v21, %v2936_v18 }
0x105c   : > { %v3055_v20 = vpop.f32.mrf.mxu2 }
0x105d   : > { %v3061_v42 = vsel %vm1024_vm3, %v3055_v20, -inf }
0x105e   : > { %2976 = vmax.xlane.f32.xlu2 %v2975_v41  ;;  %3062 = vmax.xlane.f32.xlu1 %v3061_v42 }
0x1066   : > { %2820 = vadd.xlane.f32.xlu1 %v2819_v43  ;;  %v3791_v43 = vld [vmem:[%s4917_s28 + $0x38] sm:$0xff] }
0x1067   : > { %3242 = vmatpush.msra.mxu0 %v3791_v43 }
0x10c9   : > { %v3060_v32 = vpop.xlane.xlu2 %3059 }
0x10ca   : > { %v3064_v45 = vsub.f32 %v3052_v37, %v3060_v32  ;;  %v3790_v32 = vld [vmem:[%s4917_s28 + $0x30] sm:$0xff] }
0x10cb   : > { %3243 = vmatpush.msra.mxu0 %v3790_v32 }
0x10cc   : > { %v3066_v59 = vmul.f32 1.442695, %v3064_v45  ;;  %v3789_v45 = vld [vmem:[%s4917_s28 + $0x28] sm:$0xff] }
0x10cd   : > { %3244 = vmatpush.msra.mxu0 %v3789_v45 }
0x10ce   : > { %3976 = vpow2.f32 %v3066_v59  ;;  %v3788_v59 = vld [vmem:[%s4917_s28 + $0x20] sm:$0xff] }
0x10cf   : > { %3245 = vmatpush.msra.mxu0 %v3788_v59  ;;  %v3798_v59 = vld [vmem:[%s4921_s0 + $0x48] sm:$0xff] }
0x10d1   : > { %v2977_v57 = vpop.xlane.xlu2 %2976  ;;  %v3063_v48 = vpop.xlane.xlu1 %3062 }
0x10d2   : > { %v2979_v60 = vsub.f32 %v2969_v38, %v2977_v57  ;;  %v3065_v27 = vsub.f32 %v3055_v20, %v3063_v48 }
0x10d4   : > { %v3977_v50 = vpop.eup %3976  ;;  %v2982_v55 = vmul.f32 1.442695, %v2979_v60  ;;  %v3068_v24 = vmul.f32 1.442695, %v3065_v27 }
0x10d5   : > { %v3070_v53 = vsel %vm1024_vm3, %v3977_v50, 0.0 }
0x10d6   : > { %3978 = vpow2.f32 %v2982_v55  ;;  %3071 = vadd.xlane.f32.xlu2 %v3070_v53 }
0x10d7   : > { %3980 = vpow2.f32 %v3068_v24 }
0x10d9   : > { %v2821_v49 = vpop.xlane.xlu1 %2820 }
0x10da   : > { %3982 = vrcp.f32 %v2821_v49 }
0x10dc   : > { %v3979_v8 = vpop.eup %3978 }
0x10dd   : > { %v3981_v62 = vpop.eup %3980  ;;  %v2987_v5 = vsel %vm1024_vm3, %v3979_v8, 0.0 }
0x10de   : > { %2988 = vadd.xlane.f32.xlu2 %v2987_v5  ;;  %v3073_v52 = vsel %vm1024_vm3, %v3981_v62, 0.0 }
0x10df   : > { %3074 = vadd.xlane.f32.xlu1 %v3073_v52 }
0x10e0   : > { %v3983_v63 = vpop.eup %3982 }
0x10e1   : > { %v2825_v1 = vmul.f32 %v3983_v63, %v3975_v54  ;;  %v3880_v63 = vld [vmem:[%s4918_s1 + $0x1] ss:$0 sm:$0xff] }
0x10e3   : > { %3766 = vmatmul.msk.f32.gmra.mxu3 %vm1024_vm3, %v2825_v1 }
0x1149   : > { %v3072_v34 = vpop.xlane.xlu2 %3071 }
0x114a   : > { %3984 = vrcp.f32 %v3072_v34 }
0x1150   : > { %v3985_v6 = vpop.eup %3984 }
0x1151   : > { %v3078_v9 = vmul.f32 %v3985_v6, %v3977_v50  ;;  %v2989_v10 = vpop.xlane.xlu2 %2988 }
0x1152   : > { %3986 = vrcp.f32 %v2989_v10  ;;  %v3075_v0 = vpop.xlane.xlu1 %3074 }
0x1153   : > { %3988 = vrcp.f32 %v3075_v0  ;;  %3777 = vmatmul.msk.f32.vlgmr.msrb.gmra.mxu3 %vm1024_vm3, %v3078_v9 }
0x1158   : > { %v3987_v11 = vpop.eup %3986 }
0x1159   : > { %v3989_v12 = vpop.eup %3988  ;;  %v2993_v44 = vmul.f32 %v3987_v11, %v3979_v8 }
0x115a   : > { %v3079_v47 = vmul.f32 %v3989_v12, %v3981_v62 }
0x115b   : > { %3772 = vmatmul.msk.f32.gmra.mxu0 %vm1024_vm3, %v2993_v44 }
0x115c   : > { %3778 = vmatmul.msk.f32.gmra.mxu3 %vm1024_vm3, %v3079_v47 }
0x1166   : > { %v2938_v17 = vpop.f32.mrf.mxu3 }
0x1167   : > { %v2939_v25 = vadd.f32 %v2938_v17, %v4771_v58 }
0x11d6   : > { %v3105_v46 = vpop.f32.mrf.mxu3 }
0x11d7   : > { %v3111_v23 = vadd.f32 %v3105_v46, %v3025_v19 }
0x11d8   : > { %v3022_v51 = vpop.f32.mrf.mxu0 }
0x11d9   : > { %3783 = vmatmul.msk.f32.vlgmr.msra.gmra.mxu1 %vm911_vm1, %v3111_v23  ;;  %v3026_v26 = vadd.f32 %v3022_v51, %v2939_v25  ;;  %v3804_v23 = vld [vmem:[%s4921_s0 + $0x78] sm:$0xff] }
0x11da   : > { %3364 = vmatpush.msra.mxu2 %v3804_v23 }
0x11df   : > { %v3108_v2 = vpop.f32.mrf.mxu3 }
0x11e0   : > { %v3112_v28 = vadd.f32 %v3108_v2, %v3026_v26 }
0x11e2   : > { %3784 = vmatmul.msk.f32.gmra.mxu1 %vm911_vm1, %v3112_v28  ;;  %v3803_v28 = vld [vmem:[%s4921_s0 + $0x70] sm:$0xff] }
0x11e3   : > { %3365 = vmatpush.msra.mxu2 %v3803_v28 }
0x1256   : > { %v3141_v56 = vpop.f32.mrf.mxu1 }
0x1257   : > { %v3147_v31 = vadd.f32 %v3141_v56, %v4666_v14 }
0x1259   : > { %v4795_v61 = vadd.f32 %v3879_v29, %v3147_v31 }
0x125b   : > { %v3160_v33 = vsel %vm911_vm1, %v4795_v61, 0.0 }
0x125c   : > { %3161 = vadd.xlane.f32.xlu0 %v3160_v33  ;;  %v3802_v33 = vld [vmem:[%s4921_s0 + $0x68] sm:$0xff] }
0x125d   : > { %3366 = vmatpush.msra.mxu2 %v3802_v33 }
0x125f   : > { %v3144_v35 = vpop.f32.mrf.mxu1 }
0x1260   : > { %v3148_v22 = vadd.f32 %v3144_v35, %v4671_v16 }
0x1262   : > { %v4800_v58 = vadd.f32 %v3879_v29, %v3148_v22 }
0x1264   : > { %v3163_v36 = vsel %vm911_vm1, %v4800_v58, 0.0 }
0x1265   : > { %3164 = vadd.xlane.f32.xlu1 %v3163_v36 }
0x12cf   : > { %v3162_v37 = vpop.xlane.xlu0 %3161 }
0x12d0   : > { %v3166_v14 = vmul.f32 %v3162_v37, %v4467_v30  ;;  %v3801_v37 = vld [vmem:[%s4921_s0 + $0x60] sm:$0xff] }
0x12d1   : > { %3367 = vmatpush.msra.mxu2 %v3801_v37 }
0x12d2   : > { %v3168_v39 = vsub.f32 %v4795_v61, %v3166_v14 }
0x12d4   : > { %v3170_v40 = vmul.f32 %v3168_v39, %v3168_v39 }
0x12d6   : > { %v3172_v38 = vsel %vm911_vm1, %v3170_v40, 0.0 }
0x12d7   : > { %3173 = vadd.xlane.f32.xlu2 %v3172_v38  ;;  %v3800_v38 = vld [vmem:[%s4921_s0 + $0x58] sm:$0xff] }
0x12d8   : > { %v3165_v16 = vpop.xlane.xlu1 %3164  ;;  %3368 = vmatpush.msra.mxu2 %v3800_v38 }
0x12d9   : > { %v3167_v20 = vmul.f32 %v3165_v16, %v4467_v30 }
0x12db   : > { %v3169_v41 = vsub.f32 %v4800_v58, %v3167_v20 }
0x12dd   : > { %v3171_v42 = vmul.f32 %v3169_v41, %v3169_v41 }
0x12df   : > { %v3175_v54 = vsel %vm911_vm1, %v3171_v42, 0.0  ;;  %v3799_v42 = vld [vmem:[%s4921_s0 + $0x50] sm:$0xff] }
0x12e0   : > { %3176 = vadd.xlane.f32.xlu0 %v3175_v54  ;;  %3369 = vmatpush.msra.mxu2 %v3799_v42 }
0x12e2   : > { %3370 = vmatpush.msra.mxu2 %v3798_v59  ;;  %v3883_v59 = vld [vmem:[%s4180_s24 + $0x1] ss:$0 sm:$0xff] }
0x134a   : > { %v3174_v57 = vpop.xlane.xlu2 %3173 }
0x134b   : > { %v3178_v48 = vmul.f32 %v3174_v57, %v4467_v30 }
0x134d   : > { %v3180_v60 = vadd.f32 1e-05, %v3178_v48 }
0x134f   : > { %3990 = vrsqrt.f32 %v3180_v60  ;;  %vm3188_vm0 = vweird.f32 %v3180_v60 }
0x1353   : > { %v3177_v27 = vpop.xlane.xlu0 %3176 }
0x1354   : > { %v3179_v50 = vmul.f32 %v3177_v27, %v4467_v30  ;;  %v3797_v27 = vld [vmem:[%s4921_s0 + $0x40] sm:$0xff]  ;;  %s4922_s0 = sld [smem:[#allocation3_spill]] }
0x1355   : > { %v3991_v55 = vpop.eup %3990  ;;  %3371 = vmatpush.msra.mxu2 %v3797_v27 }
0x1356   : > { %v3183_v24 = vmul.f32 %v3991_v55, %v3180_v60  ;;  %v3181_v53 = vadd.f32 1e-05, %v3179_v50  ;;  %vm3189_vm15 = vweird.f32 %v3991_v55 }
0x1357   : > { %vm3190_vm2 = vmor %vm3188_vm0, %vm3189_vm15 }
0x1358   : > { %v3184_v49 = vmul.f32 %v3991_v55, %v3183_v24  ;;  %3992 = vrsqrt.f32 %v3181_v53  ;;  %vm3198_vm5 = vweird.f32 %v3181_v53 }
0x135a   : > { %v3185_v8 = vmul.f32 0.5, %v3184_v49 }
0x135c   : > { %v3186_v62 = vsub.f32 1.5, %v3185_v8 }
0x135e   : > { %v3993_v5 = vpop.eup %3992  ;;  %v3187_v52 = vmul.f32 %v3991_v55, %v3186_v62 }
0x135f   : > { %v3193_v1 = vmul.f32 %v3993_v5, %v3181_v53  ;;  %vm3199_vm4 = vweird.f32 %v3993_v5 }
0x1360   : > { %v3191_v3 = vsel %vm3190_vm2, %v3991_v55, %v3187_v52  ;;  %vm3200_vm7 = vmor %vm3198_vm5, %vm3199_vm4 }
0x1361   : > { %v3202_v34 = vmul.f32 %v3191_v3, %v3168_v39  ;;  %v3194_v6 = vmul.f32 %v3993_v5, %v3193_v1 }
0x1363   : > { %v3207_v9 = vmul.f32 %v3880_v63, %v3202_v34  ;;  %v3195_v10 = vmul.f32 0.5, %v3194_v6 }
0x1365   : > { %v3212_v0 = vadd.f32 %v3881_v4, %v3207_v9  ;;  %v3196_v11 = vsub.f32 1.5, %v3195_v10 }
0x1367   : > { %v3197_v12 = vmul.f32 %v3993_v5, %v3196_v11  ;;  %3793 = vmatmul.msk.f32.vlgmr.msra.gmra.mxu0 %vm911_vm1, %v3212_v0 }
0x1369   : > { %v3201_v44 = vsel %vm3200_vm7, %v3993_v5, %v3197_v12 }
0x136a   : > { %v3203_v47 = vmul.f32 %v3201_v44, %v3169_v41 }
0x136c   : > { %v3208_v13 = vmul.f32 %v3880_v63, %v3203_v47 }
0x136e   : > { %v3213_v7 = vadd.f32 %v3881_v4, %v3208_v13 }
0x1370   : > { %3794 = vmatmul.msk.f32.gmra.mxu0 %vm911_vm1, %v3213_v7 }
0x13e4   : > { %v3247_v17 = vpop.f32.mrf.mxu0 }
0x13e5   : > { %v4821_v18 = vadd.f32 %v3882_v15, %v3247_v17 }
0x13e7   : > { %v4824_v21 = vmul.f32 0.70710677, %v4821_v18 }
0x13e9   : > { %v3257_v19 = vmul.f32 %v4824_v21, %v4824_v21 }
0x13eb   : > { %v3258_v46 = vmin.f32 %v3257_v19, 16.0 }
0x13ed   : > { %v3259_v51 = vmul.f32 2.1237322e-06, %v3258_v46  ;;  %v3270_v25 = vmul.f32 3.8918573e-05, %v3258_v46  ;;  %v3250_v26 = vpop.f32.mrf.mxu0 }
0x13ee   : > { %v4829_v2 = vadd.f32 %v3882_v15, %v3250_v26 }
0x13ef   : > { %v3260_v29 = vadd.f32 0.00028619796, %v3259_v51  ;;  %v3271_v56 = vadd.f32 0.001143296, %v3270_v25 }
0x13f0   : > { %v4833_v31 = vmul.f32 0.70710677, %v4829_v2 }
0x13f1   : > { %v3261_v35 = vmul.f32 %v3260_v29, %v3258_v46  ;;  %v3272_v22 = vmul.f32 %v3271_v56, %v3258_v46 }
0x13f2   : > { %v3297_v36 = vmul.f32 %v4833_v31, %v4833_v31 }
0x13f3   : > { %v3273_v14 = vadd.f32 0.014752088, %v3272_v22  ;;  %v3262_v39 = vadd.f32 0.0036580483, %v3261_v35 }
0x13f4   : > { %v3298_v40 = vmin.f32 %v3297_v36, 16.0 }
0x13f5   : > { %v3274_v16 = vmul.f32 %v3273_v14, %v3258_v46  ;;  %v3263_v43 = vmul.f32 %v3262_v39, %v3258_v46  ;;  %v3253_v39 = vmul.f32 0.5, %v4821_v18 }
0x13f6   : > { %v3299_v20 = vmul.f32 2.1237322e-06, %v3298_v40  ;;  %v3310_v41 = vmul.f32 3.8918573e-05, %v3298_v40 }
0x13f7   : > { %v3275_v54 = vadd.f32 0.112945676, %v3274_v16  ;;  %v3264_v55 = vadd.f32 0.05243302, %v3263_v43 }
0x13f8   : > { %v3300_v32 = vadd.f32 0.00028619796, %v3299_v20  ;;  %v3311_v45 = vadd.f32 0.001143296, %v3310_v41 }
0x13f9   : > { %v3276_v57 = vmul.f32 %v3275_v54, %v3258_v46  ;;  %v3265_v5 = vmul.f32 %v3264_v55, %v3258_v46 }
0x13fa   : > { %v3301_v48 = vmul.f32 %v3300_v32, %v3298_v40  ;;  %v3312_v60 = vmul.f32 %v3311_v45, %v3298_v40  ;;  %v3254_v32 = vmul.f32 0.5, %v4829_v2 }
0x13fb   : > { %v3277_v50 = vadd.f32 0.4994258, %v3276_v57  ;;  %v3266_v3 = vadd.f32 0.18741608, %v3265_v5 }
0x13fc   : > { %v3313_v24 = vadd.f32 0.014752088, %v3312_v60  ;;  %v3302_v49 = vadd.f32 0.0036580483, %v3301_v48 }
0x13fd   : > { %v3278_v53 = vmul.f32 %v3277_v50, %v3258_v46  ;;  %v3267_v10 = vmul.f32 %v3266_v3, %v3258_v46 }
0x13fe   : > { %v3314_v8 = vmul.f32 %v3313_v24, %v3298_v40  ;;  %v3303_v63 = vmul.f32 %v3302_v49, %v3298_v40 }
0x13ff   : > { %v3279_v62 = vadd.f32 1.0, %v3278_v53  ;;  %v3268_v13 = vadd.f32 1.1283791, %v3267_v10 }
0x1400   : > { %v3315_v52 = vadd.f32 0.112945676, %v3314_v8  ;;  %v3304_v34 = vadd.f32 0.05243302, %v3303_v63 }
0x1401   : > { %3994 = vrcp.f32 %v3279_v62  ;;  %v3291_v47 = vand.u32 2147483648, %v3279_v62  ;;  %v3289_v15 = vand.u32 2147483647, %v3279_v62  ;;  %vm3285_vm9 = vweird.f32 %v3279_v62 }
0x1402   : > { %v3316_v1 = vmul.f32 %v3315_v52, %v3298_v40  ;;  %v3305_v12 = vmul.f32 %v3304_v34, %v3298_v40  ;;  %v3269_v25 = vmul.f32 %v3268_v13, %v4824_v21  ;;  %v3445_v34 = vld [vmem:[%s4922_s0 + $0x8] sm:$0xff] }
0x1403   : > { %v3292_v23 = vor.u32 1.1754944e-38, %v3291_v47  ;;  %vm3290_vm11 = vcmp.eq.f32.partialorder %v3289_v15, 8.507059e+37  ;;  %3504 = vmatpush.msra.mxu3 %v3445_v34 }
0x1404   : > { %v3317_v4 = vadd.f32 0.4994258, %v3316_v1  ;;  %v3306_v17 = vadd.f32 0.18741608, %v3305_v12 }
0x1406   : > { %v3318_v6 = vmul.f32 %v3317_v4, %v3298_v40  ;;  %v3307_v28 = vmul.f32 %v3306_v17, %v3298_v40 }
0x1407   : > { %v3995_v9 = vpop.eup %3994 }
0x1408   : > { %v3281_v0 = vmul.f32 %v3995_v9, %v3279_v62  ;;  %v3319_v11 = vadd.f32 1.0, %v3318_v6  ;;  %vm3286_vm8 = vweird.f32 %v3995_v9  ;;  %v3308_v36 = vadd.f32 1.1283791, %v3307_v28  ;;  %v3444_v6 = vld [vmem:[%s4922_s0] sm:$0xff]  ;;  %s4923_s0 = sshll.u32 %s4925_s10, 5 }
0x1409   : > { %vm3287_vm10 = vmor %vm3285_vm9, %vm3286_vm8  ;;  %3505 = vmatpush.msra.mxu3 %v3444_v6  ;;  %s902_s1 = scalar_lea.vmem %s4195_s6, %s4923_s0 }
0x140a   : > { %v3282_v44 = vsub.f32 1.0, %v3281_v0  ;;  %3996 = vrcp.f32 %v3319_v11  ;;  %v3331_v22 = vand.u32 2147483648, %v3319_v11  ;;  %v3329_v14 = vand.u32 2147483647, %v3319_v11 }
0x140b   : > { %vm3325_vm13 = vweird.f32 %v3319_v11  ;;  %v3309_v40 = vmul.f32 %v3308_v36, %v4833_v31 }
0x140c   : > { %v3283_v7 = vmul.f32 %v3995_v9, %v3282_v44  ;;  %v3332_v20 = vor.u32 1.1754944e-38, %v3331_v22  ;;  %vm3330_vm15 = vcmp.eq.f32.partialorder %v3329_v14, 8.507059e+37 }
0x140e   : > { %v3284_v19 = vadd.f32 %v3995_v9, %v3283_v7 }
0x1410   : > { %v3997_v51 = vpop.eup %3996  ;;  %v3288_v26 = vsel %vm3287_vm10, %v3995_v9, %v3284_v19  ;;  %v3884_v19 = vld [vmem:[%s4185_s19] ss:$0 sm:$0xff] }
0x1411   : > { %v3293_v46 = vsel %vm3290_vm11, %v3292_v23, %v3288_v26  ;;  %v3321_v29 = vmul.f32 %v3997_v51, %v3319_v11  ;;  %vm3326_vm12 = vweird.f32 %v3997_v51  ;;  %v3885_v26 = vld [vmem:[%s4190_s20] ss:$0 sm:$0xff] }
0x1412   : > { %v3294_v56 = vmul.f32 %v3293_v46, %v3269_v25  ;;  %vm3327_vm14 = vmor %vm3325_vm13, %vm3326_vm12 }
0x1413   : > { %v3322_v33 = vsub.f32 1.0, %v3321_v29 }
0x1414   : > { %v3795_v35 = vclamps-f32 %v3294_v56, 1.0 }
0x1415   : > { %v3323_v37 = vmul.f32 %v3997_v51, %v3322_v33 }
0x1416   : > { %v3337_v38 = vadd.f32 1.0, %v3795_v35 }
0x1417   : > { %v3324_v16 = vadd.f32 %v3997_v51, %v3323_v37 }
0x1418   : > { %v3339_v21 = vmul.f32 %v3337_v38, %v3253_v39 }
0x1419   : > { %v3328_v41 = vsel %vm3327_vm14, %v3997_v51, %v3324_v16 }
0x141a   : > { %v3333_v42 = vsel %vm3330_vm15, %v3332_v20, %v3328_v41  ;;  %3805 = vmatmul.msk.f32.vlgmr.msra.gmra.mxu2 %vm2571_vm6, %v3339_v21 }
0x141b   : > { %v3334_v54 = vmul.f32 %v3333_v42, %v3309_v40 }
0x141d   : > { %v3796_v43 = vclamps-f32 %v3334_v54, 1.0 }
0x141f   : > { %v3338_v45 = vadd.f32 1.0, %v3796_v43 }
0x1421   : > { %v3340_v18 = vmul.f32 %v3338_v45, %v3254_v32 }
0x1423   : > { %3806 = vmatmul.msk.f32.gmra.mxu2 %vm2571_vm6, %v3340_v18 }
0x149d   : > { %v3373_v57 = vpop.f32.mrf.mxu2 }
0x149e   : > { %v3379_v48 = vadd.f32 %v3373_v57, %v4795_v61 }
0x14a0   : > { %v3386_v60 = vadd.f32 %v3883_v59, %v3379_v48 }
0x14a2   : > { %v3390_v31 = vsel %vm911_vm1, %v3386_v60, 0.0 }
0x14a3   : > { %3391 = vadd.xlane.f32.xlu1 %v3390_v31 }
0x14a6   : > { %v3376_v27 = vpop.f32.mrf.mxu2 }
0x14a7   : > { %v3380_v50 = vadd.f32 %v3376_v27, %v4800_v58 }
0x14a9   : > { %v3387_v55 = vadd.f32 %v3883_v59, %v3380_v50 }
0x14ab   : > { %v3393_v24 = vsel %vm911_vm1, %v3387_v55, 0.0 }
0x14ac   : > { %3394 = vadd.xlane.f32.xlu2 %v3393_v24 }
0x1516   : > { %v3392_v2 = vpop.xlane.xlu1 %3391 }
0x1517   : > { %v3396_v53 = vmul.f32 %v3392_v2, %v4467_v30 }
0x1519   : > { %v3398_v49 = vsub.f32 %v3386_v60, %v3396_v53 }
0x151b   : > { %v3400_v8 = vmul.f32 %v3398_v49, %v3398_v49 }
0x151d   : > { %v3402_v61 = vsel %vm911_vm1, %v3400_v8, 0.0 }
0x151e   : > { %3403 = vadd.xlane.f32.xlu0 %v3402_v61 }
0x151f   : > { %v3395_v62 = vpop.xlane.xlu2 %3394 }
0x1520   : > { %v3397_v5 = vmul.f32 %v3395_v62, %v4467_v30 }
0x1522   : > { %v3399_v52 = vsub.f32 %v3387_v55, %v3397_v5 }
0x1524   : > { %v3401_v63 = vmul.f32 %v3399_v52, %v3399_v52 }
0x1526   : > { %v3405_v58 = vsel %vm911_vm1, %v3401_v63, 0.0 }
0x1527   : > { %3406 = vadd.xlane.f32.xlu1 %v3405_v58 }
0x1591   : > { %v3404_v1 = vpop.xlane.xlu0 %3403 }
0x1592   : > { %v3408_v3 = vmul.f32 %v3404_v1, %v4467_v30 }
0x1594   : > { %v3410_v4 = vadd.f32 1e-05, %v3408_v3 }
0x1596   : > { %3998 = vrsqrt.f32 %v3410_v4  ;;  %vm3418_vm6 = vweird.f32 %v3410_v4 }
0x159a   : > { %v3407_v9 = vpop.xlane.xlu1 %3406 }
0x159b   : > { %v3409_v10 = vmul.f32 %v3407_v9, %v4467_v30 }
0x159c   : > { %v3999_v0 = vpop.eup %3998 }
0x159d   : > { %v3413_v11 = vmul.f32 %v3999_v0, %v3410_v4  ;;  %v3411_v12 = vadd.f32 1e-05, %v3409_v10  ;;  %vm3419_vm1 = vweird.f32 %v3999_v0 }
0x159e   : > { %vm3420_vm0 = vmor %vm3418_vm6, %vm3419_vm1 }
0x159f   : > { %v3414_v44 = vmul.f32 %v3999_v0, %v3413_v11  ;;  %4000 = vrsqrt.f32 %v3411_v12  ;;  %vm3428_vm4 = vweird.f32 %v3411_v12 }
0x15a1   : > { %v3415_v47 = vmul.f32 0.5, %v3414_v44 }
0x15a3   : > { %v3416_v13 = vsub.f32 1.5, %v3415_v47 }
0x15a5   : > { %v4001_v7 = vpop.eup %4000  ;;  %v3417_v15 = vmul.f32 %v3999_v0, %v3416_v13 }
0x15a6   : > { %v3423_v17 = vmul.f32 %v4001_v7, %v3411_v12  ;;  %vm3429_vm2 = vweird.f32 %v4001_v7 }
0x15a7   : > { %v3421_v23 = vsel %vm3420_vm0, %v3999_v0, %v3417_v15  ;;  %vm3430_vm5 = vmor %vm3428_vm4, %vm3429_vm2 }
0x15a8   : > { %v3424_v51 = vmul.f32 %v4001_v7, %v3423_v17  ;;  %v3432_v25 = vmul.f32 %v3421_v23, %v3398_v49 }
0x15aa   : > { %v3425_v30 = vmul.f32 0.5, %v3424_v51  ;;  %v3437_v46 = vmul.f32 %v3884_v19, %v3432_v25 }
0x15ac   : > { %v3426_v28 = vsub.f32 1.5, %v3425_v30  ;;  %v3442_v29 = vadd.f32 %v3885_v26, %v3437_v46 }
0x15ae   : > { %v3427_v56 = vmul.f32 %v4001_v7, %v3426_v28  ;;  %3446 = vxpose.xlu2.b32.start [1/2] (short) (narrow) %v3442_v29, 32 }
0x15b0   : > { %v3431_v33 = vsel %vm3430_vm5, %v4001_v7, %v3427_v56 }
0x15b1   : > { %v3433_v35 = vmul.f32 %v3431_v33, %v3399_v52 }
0x15b3   : > { %v3438_v22 = vmul.f32 %v3884_v19, %v3433_v35 }
0x15b5   : > { %v3443_v36 = vadd.f32 %v3885_v26, %v3438_v22 }
0x15b7   : > { %3447 = vxpose.xlu2.b32.end [2/2] (short) (narrow) %v3443_v36, 32 }
0x1648   : > { %v3462_v37 = vpop.trf.xlu2 }
0x1649   : > { %3808 = vmatmul.msk.f32.vlgmr.msra.gmra.mxu3 %vm1024_vm3, %v3462_v37 }
0x1650   : > { %v3463_v14 = vpop.trf.xlu2 }
0x1651   : > { %3809 = vmatmul.msk.f32.gmra.mxu3 %vm1024_vm3, %v3463_v14 }
0x1658   : > { %v3464_v39 = vpop.trf.xlu2 }
0x1659   : > { %3810 = vmatmul.msk.f32.gmra.mxu3 %vm1024_vm3, %v3464_v39 }
0x1660   : > { %v3465_v38 = vpop.trf.xlu2 }
0x1661   : > { %3811 = vmatmul.msk.f32.gmra.mxu3 %vm1024_vm3, %v3465_v38 }
0x16cc   : > { %v3507_v16 = vpop.f32.mrf.mxu3 }
0x16cd   : > { %3519 = vst.msk [vmem:[%s902_s1] sm:$0xff] %vm1024_vm3, %v3507_v16 }
0x16d4   : > { %v3510_v21 = vpop.f32.mrf.mxu3 }
0x16d5   : > { %3520 = vst.msk [vmem:[%s902_s1 + $0x8] sm:$0xff] %vm1024_vm3, %v3510_v21 }
0x16dc   : > { %v3513_v20 = vpop.f32.mrf.mxu3 }
0x16dd   : > { %3521 = vst.msk [vmem:[%s902_s1 + $0x10] sm:$0xff] %vm1024_vm3, %v3513_v20 }
0x16e4   : > { %v3516_v40 = vpop.f32.mrf.mxu3 }
0x16e5   : > { %3522 = vst.msk [vmem:[%s902_s1 + $0x18] sm:$0xff] %vm1024_vm3, %v3516_v40 }
0x16e6 PF: > { %s69_s7 = sadd.s32 1, %s4009_s7  }
0x16e7   : > { %p66_p4 = scmp.ge.s32.totalorder %s69_s7, 4  }
0x16e9   :  { %68 = sbr.rel (!%p66_p4) target bundleno = 47 (0x2f), region = 221 }

</bundles_post_ra>
